<compile_context>
chip_gen: v6e
topology: v6e:2x2x1
jax: 0.10.0
libtpu: 0.0.40
codegen_flags: <defaults>
</compile_context>

<pallas_src>
import math

import jax
import jax.numpy as jnp
from jax.experimental import pallas as pl
from jax.experimental.pallas import tpu as pltpu


# ---- small synthetic configuration -----------------------------------------
DIM = 16            # args.dim (node_dim)
B = 8               # batch size (data_len of one forward call)
SEQ = 6             # args.seq_len
REF = 4             # args.see_ref
HEADS = 2           # args.heads
MAX_CONCEPTS = 3    # args.max_concepts
CONCEPT_NUM = 10    # args.concept_num
PROBLEM_NUM = 20    # args.problem_number
DATA_LEN = 64       # synthetic stand-in for pickle-loaded train_data_len

HD = HEADS * DIM    # 32
G3 = 3 * DIM        # 48 (GRU gate width)


# ---- Pallas kernel: whole sequence in one invocation -------------------------
def cokt_seq_kernel(
    slab_ref,      # (S, B, HD+3D+2)  [qv | xgv | pv | resp]
    k_ref,         # (S, B, REF, HD)
    bgp_ref,       # (S, B, REF, 6D)  bg_context @ (dw0 * bg_integrate)
    wh_ref,        # (S, S+1, B, 1)   precomputed history softmax weights
    whcat_ref,     # (D, HD+3D)       [batch_emb h-part | gru Wh]   (fused)
    hm_ref,        # (1, HEADS)       heads_map
    hiswf_ref,     # (2D, 3D)         (dw1*his_integrate) @ wf_peer
    pwpeer_ref,    # (1, 6D)          predictor row, peer part
    pwhis_ref,     # (1, 2D)          (dw1*his_integrate) @ predictor peer part
    pwh_ref,       # (1, D)           predictor row, h part
    wfpeer_ref,    # (6D, 3D)         (in_map @ gru_Wx), peer part
    out_ref,       # (B, SEQ)
):
    D = DIM
    inv_sqrt_d = 1.0 / math.sqrt(D)

    # small loop-invariant weights hoisted (the two big ones are re-read
    # inside the loop to keep vreg pressure down across the unrolled body)
    W_h = whcat_ref[...]         # (D, HD+3D)
    hm = hm_ref[...]             # (1, HEADS)
    pw_peer = pwpeer_ref[...]    # (1, 6D)
    pw_his = pwhis_ref[...]      # (1, 2D)
    pw_h = pwh_ref[...]          # (1, D)

    h = jnp.zeros((B, D), jnp.float32)
    hr_list = [jnp.zeros((B, 2 * D), jnp.float32)]   # zero initial history slot
    prob_cols = []

    for i in range(SEQ):
        sl = slab_ref[i]                               # (B, 82)
        qv = sl[:, :HD]
        xgv = sl[:, HD:HD + G3]
        pv = sl[:, HD + G3:HD + G3 + 1]
        resp = sl[:, HD + G3 + 1:HD + G3 + 2]

        # ---- one fused h matmul: [query h-part | GRU hidden gates] ----------
        qg = jnp.dot(h, W_h, preferred_element_type=jnp.float32)  # (B, HD+3D)
        q = qg[:, :HD] + qv                                       # (B, HD)
        hg = qg[:, HD:]                                           # (B, 3D)

        # ---- background two-head attention, one-pass softmax over REF -------
        k = k_ref[i]                                   # (B, REF, HD)
        prod = q[:, None, :] * k                       # (B, REF, HD)
        l0 = jnp.sum(prod[:, :, :D], axis=-1, keepdims=True)
        l1 = jnp.sum(prod[:, :, D:], axis=-1, keepdims=True)
        logits = jnp.concatenate([l0, l1], axis=-1) * inv_sqrt_d  # (B, REF, H)
        logits = logits - jnp.max(logits, axis=1, keepdims=True)
        e = jnp.exp(logits)
        sm = e * pl.reciprocal(jnp.sum(e, axis=1, keepdims=True), approx=True)
        w_comb = jnp.sum(sm * hm, axis=-1, keepdims=True)         # (B, REF, 1)
        bg_o = jnp.sum(w_comb * bgp_ref[i], axis=1)               # (B, 6D)

        # ---- history attention (weights precomputed; history in registers) --
        # slot 0 is exactly zero, so the sum starts at t=1 (exact).
        ab = jnp.zeros((B, 2 * D), jnp.float32)
        for t in range(1, i + 1):
            ab = ab + wh_ref[i, t] * hr_list[t]        # (B, 2D)

        # ---- prediction: N=1 matmul as VPU lane reduces (hisW folded) -------
        prob = (jnp.sum(bg_o * pw_peer, axis=-1, keepdims=True)
                + jnp.sum(ab * pw_his, axis=-1, keepdims=True)
                + jnp.sum(h * pw_h, axis=-1, keepdims=True)
                + pv)                                  # (B, 1)
        prob_cols.append(prob)

        # ---- GRU gates: two independent small matmuls feed xg ---------------
        xg = (jnp.dot(bg_o, wfpeer_ref[...], preferred_element_type=jnp.float32)
              + jnp.dot(ab, hiswf_ref[...], preferred_element_type=jnp.float32)
              + xgv)                                   # (B, 3D)
        z = jax.nn.sigmoid(xg[:, :D] + hg[:, :D])
        r = jax.nn.sigmoid(xg[:, D:2 * D] + hg[:, D:2 * D])
        n = jnp.tanh(xg[:, 2 * D:] + r * hg[:, 2 * D:])
        h = (1.0 - z) * n + z * h

        # history stays in vregs: one lane concat, no VMEM store/load
        hr_list.append(jnp.concatenate([h * resp, h * (1.0 - resp)], axis=-1))

    # single output store at the end, directly in (B, SEQ) layout
    out_ref[...] = jnp.concatenate(prob_cols, axis=-1)


def _full_spec(shape):
    nd = len(shape)
    return pl.BlockSpec(shape, lambda i, _nd=nd: (0,) * _nd)


# ---- wrapper -----------------------------------------------------------------
def cokt_forward(params, step_inputs, seq_num):
    (batchW, batchb, bgW, bgb, headsmap, bgintW, bgintb, hisintW,
     hisintb, dirw, predW, predb, inmapW, inmapb, gruWx, gruWh, grub) = params
    v_all, bghv_all, bgr_all, resp_all = step_inputs
    S = v_all.shape[0]
    D = DIM

    # ------- offline parameter folding (exact algebra, no semantic change) ---
    batchW_cat = jnp.transpose(batchW, (1, 0, 2)).reshape(3 * D, HD)
    batchb_cat = batchb.reshape(1, HD)
    bgW_cat = jnp.transpose(bgW, (1, 0, 2)).reshape(3 * D, HD)
    bgb_cat = bgb.reshape(1, HD)

    dw = jax.nn.softmax(dirw, axis=0)                      # (2, 1) constant
    bgintW_s = bgintW * dw[0, 0]
    hisW_s = hisintW * dw[1, 0]                            # (2D, 6D)
    peer_bias = bgintb * dw[0, 0] + hisintb * dw[1, 0]     # (1, 6D)

    wf = inmapW @ gruWx                                    # (10D, 3D) fused
    bf = inmapb @ gruWx + grub                             # (1, 3D)
    wf_peer = wf[:6 * D]                                   # (6D, 3D)
    wf_vr = wf[6 * D:8 * D]
    wf_vnr = wf[8 * D:]
    hisW_wf = hisW_s @ wf_peer                             # (2D, 3D)
    xg_bias = bf + peer_bias @ wf_peer                     # (1, 3D)

    pw_peer = predW[:6 * D, 0][None, :]                    # (1, 6D)
    pw_v = predW[6 * D:8 * D]                              # (2D, 1)
    pw_h = predW[8 * D:, 0][None, :]                       # (1, D)
    pw_his = (hisW_s @ predW[:6 * D]).T                    # (1, 2D)
    prob_bias = predb + peer_bias @ predW[:6 * D]          # (1, 1)

    # fused h-projection weight: [query h-part | GRU hidden->gates]
    W_h_cat = jnp.concatenate([batchW_cat[:D], gruWh], axis=1)   # (D, HD+3D)

    # ------- per-step precompute hoisted out of the sequential recurrence ----
    q_v_pre = v_all @ batchW_cat[D:] + batchb_cat          # (S, B, HD)
    k_all = bghv_all @ bgW_cat + bgb_cat                   # (S, B, REF, HD)
    bg_ctx = jnp.concatenate(
        [bghv_all * bgr_all, bghv_all * (1.0 - bgr_all)], axis=-1)
    bgp_all = bg_ctx @ bgintW_s                            # (S, B, REF, 6D)

    # history-attention softmax weights depend only on the v history
    v_hist = jnp.concatenate(
        [jnp.zeros((1,) + v_all.shape[1:], v_all.dtype), v_all], axis=0)
    logits_h = jnp.einsum('ibd,tbd->itb', v_all, v_hist) / math.sqrt(2 * D)
    valid = (jnp.arange(S + 1)[None, :] <= jnp.arange(S)[:, None])[:, :, None]
    logits_h = jnp.where(valid, logits_h, -1e30)
    logits_h = logits_h - jnp.max(logits_h, axis=1, keepdims=True)
    eh = jnp.exp(logits_h)
    wh_pre = (eh / jnp.sum(eh, axis=1, keepdims=True))[..., None]  # (S,S+1,B,1)

    pv_pre = v_all @ pw_v + prob_bias                      # (S, B, 1)
    xgv_pre = ((v_all * resp_all) @ wf_vr
               + (v_all * (1.0 - resp_all)) @ wf_vnr + xg_bias)   # (S, B, 3D)

    # pack the small per-step tensors into one slab: [qv | xgv | pv | resp]
    slab = jnp.concatenate([q_v_pre, xgv_pre, pv_pre, resp_all], axis=-1)

    kernel_inputs = tuple(
        x.astype(jnp.float32) for x in (
            slab, k_all, bgp_all, wh_pre,
            W_h_cat, headsmap[:, 0][None, :], hisW_wf,
            pw_peer, pw_his, pw_h, wf_peer))

    probs = pl.pallas_call(
        cokt_seq_kernel,
        out_shape=jax.ShapeDtypeStruct((B, S), jnp.float32),
        grid_spec=pltpu.PrefetchScalarGridSpec(
            num_scalar_prefetch=0,
            # single invocation: the recurrence is an in-kernel unrolled loop,
            # so there is no per-step grid overhead / DMA / masked HBM store.
            grid=(1,),
            in_specs=[_full_spec(tuple(x.shape)) for x in kernel_inputs],
            out_specs=pl.BlockSpec((B, S), lambda i: (0, 0)),
        ),
        compiler_params=pltpu.CompilerParams(
            dimension_semantics=("arbitrary",)),
    )(*kernel_inputs)
    # TODO(synk): if B/SEQ scale up, add a leading "parallel" batch grid axis
    # (2 TensorCores on v7x) and re-derive block sizes against 64 MiB VMEM.

    # ragged gather of valid prefixes, as in the PyTorch forward
    return jnp.concatenate([probs[b, :seq_num[b]] for b in range(B)], axis=0)


# ---- plain-JAX glue (embedding lookups / gathers) ----------------------------
def obtain_prob_rep(prob_id, skills, prob_cat, concepts_cat):
    prob_rep = prob_cat[prob_id]                          # (..., D)
    filt = (skills != 0).astype(jnp.float32)
    fsum = jnp.sum(filt, axis=-1)
    div = jnp.where(fsum == 0, 1.0, fsum)[..., None]
    rel = concepts_cat[skills]                            # (..., K, D)
    mean_c = jnp.sum(rel, axis=-2) / div
    return jnp.concatenate([mean_c, prob_rep], axis=-1)   # (..., 2D)


def build_step_inputs(prob_ids, skills, responses, bg_indices,
                      prob_emb, concept_emb, states,
                      bg_problem_ids, bg_response_ids, bg_concept_ids):
    prob_cat = jnp.concatenate(
        [jnp.zeros((1, DIM), jnp.float32), prob_emb], axis=0)
    concepts_cat = jnp.concatenate(
        [jnp.zeros((1, DIM), jnp.float32), concept_emb], axis=0)

    v_all = obtain_prob_rep(prob_ids, skills, prob_cat, concepts_cat)       # (S,B,2D)

    all_bg_hidden = states[bg_indices]                                      # (S,B,R,D)
    all_prob = bg_problem_ids[bg_indices]                                   # (S,B,R)
    all_concepts = bg_concept_ids[bg_indices]                               # (S,B,R,K)
    all_bg_v = obtain_prob_rep(all_prob, all_concepts, prob_cat, concepts_cat)
    all_hidden_v = jnp.concatenate([all_bg_hidden, all_bg_v], axis=-1)      # (S,B,R,3D)
    bg_r = bg_response_ids[bg_indices].astype(jnp.float32)[..., None]       # (S,B,R,1)
    resp = responses.astype(jnp.float32)[..., None]                         # (S,B,1)
    return (v_all.astype(jnp.float32), all_hidden_v.astype(jnp.float32),
            bg_r, resp)


def init_params(key):
    D = DIM
    ks = jax.random.split(key, 17)

    def rn(k, shape, scale=0.1):
        return (jax.random.normal(k, shape) * scale).astype(jnp.float32)

    batchW = rn(ks[0], (HEADS, 3 * D, D))     # batch_emb (Linear 3D->D) per head
    batchb = rn(ks[1], (HEADS, D))
    bgW = rn(ks[2], (HEADS, 3 * D, D))        # bg_emb (Linear 3D->D) per head
    bgb = rn(ks[3], (HEADS, D))
    headsmap = rn(ks[4], (HEADS, 1), 1.0)     # heads_map
    bgintW = rn(ks[5], (6 * D, 6 * D))        # bg_integrate
    bgintb = rn(ks[6], (1, 6 * D))
    hisintW = rn(ks[7], (2 * D, 6 * D))       # his_integrate
    hisintb = rn(ks[8], (1, 6 * D))
    dirw = rn(ks[9], (2, 1), 1.0)             # direction_weight
    predW = rn(ks[10], (9 * D, 1))            # predictor
    predb = rn(ks[11], (1, 1))
    inmapW = rn(ks[12], (10 * D, 4 * D))      # in_map
    inmapb = rn(ks[13], (1, 4 * D))
    gruWx = rn(ks[14], (4 * D, 3 * D))        # mygru: input->gates [z|r|n]
    gruWh = rn(ks[15], (D, 3 * D))            # mygru: hidden->gates
    grub = rn(ks[16], (1, 3 * D))
    return (batchW, batchb, bgW, bgb, headsmap, bgintW, bgintb, hisintW,
            hisintb, dirw, predW, predb, inmapW, inmapb, gruWx, gruWh, grub)


if __name__ == "__main__":
    key = jax.random.PRNGKey(0)
    k_param, k_emb, k_data = jax.random.split(key, 3)
    params = init_params(k_param)

    ke = jax.random.split(k_emb, 6)
    concept_emb = (jax.random.normal(ke[0], (CONCEPT_NUM - 1, DIM)) * 0.1
                   ).astype(jnp.float32)
    prob_emb = (jax.random.normal(ke[1], (PROBLEM_NUM - 1, DIM)) * 0.1
                ).astype(jnp.float32)
    states = (jax.random.normal(ke[2], (DATA_LEN, DIM)) * 0.1
              ).astype(jnp.float32)
    bg_problem_ids = jax.random.randint(ke[3], (DATA_LEN,), 0, PROBLEM_NUM)
    bg_response_ids = jax.random.randint(ke[4], (DATA_LEN,), 0, 2)
    bg_concept_ids = jax.random.randint(ke[5], (DATA_LEN, MAX_CONCEPTS),
                                        0, CONCEPT_NUM)

    kd = jax.random.split(k_data, 4)
    prob_ids = jax.random.randint(kd[0], (SEQ, B), 0, PROBLEM_NUM)
    skills = jax.random.randint(kd[1], (SEQ, B, MAX_CONCEPTS), 0, CONCEPT_NUM)
    responses = jax.random.randint(kd[2], (SEQ, B), 0, 2)
    bg_indices = jax.random.randint(kd[3], (SEQ, B, REF), 0, DATA_LEN)

    seq_num = [SEQ, SEQ - 1, SEQ, 3, SEQ, 2, SEQ, 4]   # per-sequence valid lengths

    step_inputs = build_step_inputs(
        prob_ids, skills, responses, bg_indices,
        prob_emb, concept_emb, states,
        bg_problem_ids, bg_response_ids, bg_concept_ids)

    out = cokt_forward(params, step_inputs, seq_num)
    out = jax.block_until_ready(out)
    assert out.shape == (sum(seq_num),)
    print("KERNEL_OK")
</pallas_src>

<mosaic_0001>
module attributes {stable_mosaic.version = 11 : i64} {
  func.func @cokt_seq_kernel(%arg0: i32, %arg1: memref<6x8x82xf32, #tpu.memory_space<vmem>>, %arg2: memref<6x8x4x32xf32, #tpu.memory_space<vmem>>, %arg3: memref<6x8x4x96xf32, #tpu.memory_space<vmem>>, %arg4: memref<6x7x8x1xf32, #tpu.memory_space<vmem>>, %arg5: memref<16x80xf32, #tpu.memory_space<vmem>>, %arg6: memref<1x2xf32, #tpu.memory_space<vmem>>, %arg7: memref<32x48xf32, #tpu.memory_space<vmem>>, %arg8: memref<1x96xf32, #tpu.memory_space<vmem>>, %arg9: memref<1x32xf32, #tpu.memory_space<vmem>>, %arg10: memref<1x16xf32, #tpu.memory_space<vmem>>, %arg11: memref<96x48xf32, #tpu.memory_space<vmem>>, %arg12: memref<8x6xf32, #tpu.memory_space<vmem>>) attributes {dimension_semantics = [#tpu.dimension_semantics<arbitrary>], iteration_bounds = array<i64: 1>, scalar_prefetch = 0 : i64, scratch_operands = 0 : i64, tpu.core_type = #tpu.core_type<tc>, window_params = [{pipeline_mode = #tpu.pipeline_mode<synchronous>, transform_indices = @transform_0, window_bounds = array<i64: 6, 8, 82>}, {pipeline_mode = #tpu.pipeline_mode<synchronous>, transform_indices = @transform_1, window_bounds = array<i64: 6, 8, 4, 32>}, {pipeline_mode = #tpu.pipeline_mode<synchronous>, transform_indices = @transform_2, window_bounds = array<i64: 6, 8, 4, 96>}, {pipeline_mode = #tpu.pipeline_mode<synchronous>, transform_indices = @transform_3, window_bounds = array<i64: 6, 7, 8, 1>}, {pipeline_mode = #tpu.pipeline_mode<synchronous>, transform_indices = @transform_4, window_bounds = array<i64: 16, 80>}, {pipeline_mode = #tpu.pipeline_mode<synchronous>, transform_indices = @transform_5, window_bounds = array<i64: 1, 2>}, {pipeline_mode = #tpu.pipeline_mode<synchronous>, transform_indices = @transform_6, window_bounds = array<i64: 32, 48>}, {pipeline_mode = #tpu.pipeline_mode<synchronous>, transform_indices = @transform_7, window_bounds = array<i64: 1, 96>}, {pipeline_mode = #tpu.pipeline_mode<synchronous>, transform_indices = @transform_8, window_bounds = array<i64: 1, 32>}, {pipeline_mode = #tpu.pipeline_mode<synchronous>, transform_indices = @transform_9, window_bounds = array<i64: 1, 16>}, {pipeline_mode = #tpu.pipeline_mode<synchronous>, transform_indices = @transform_10, window_bounds = array<i64: 96, 48>}, {pipeline_mode = #tpu.pipeline_mode<synchronous>, transform_indices = @transform_11, window_bounds = array<i64: 8, 6>}]} {
    %c0 = arith.constant 0 : index
    %c0_0 = arith.constant 0 : index
    %0 = vector.load %arg5[%c0, %c0_0] : memref<16x80xf32, #tpu.memory_space<vmem>>, vector<16x80xf32>
    %c0_1 = arith.constant 0 : index
    %c0_2 = arith.constant 0 : index
    %1 = vector.load %arg6[%c0_1, %c0_2] : memref<1x2xf32, #tpu.memory_space<vmem>>, vector<1x2xf32>
    %c0_3 = arith.constant 0 : index
    %c0_4 = arith.constant 0 : index
    %2 = vector.load %arg8[%c0_3, %c0_4] : memref<1x96xf32, #tpu.memory_space<vmem>>, vector<1x96xf32>
    %c0_5 = arith.constant 0 : index
    %c0_6 = arith.constant 0 : index
    %3 = vector.load %arg9[%c0_5, %c0_6] : memref<1x32xf32, #tpu.memory_space<vmem>>, vector<1x32xf32>
    %c0_7 = arith.constant 0 : index
    %c0_8 = arith.constant 0 : index
    %4 = vector.load %arg10[%c0_7, %c0_8] : memref<1x16xf32, #tpu.memory_space<vmem>>, vector<1x16xf32>
    %cst = arith.constant 0.000000e+00 : f32
    %5 = vector.broadcast %cst : f32 to vector<8x16xf32>
    %c0_9 = arith.constant 0 : index
    %c0_10 = arith.constant 0 : index
    %c0_11 = arith.constant 0 : index
    %6 = vector.load %arg1[%c0_9, %c0_10, %c0_11] : memref<6x8x82xf32, #tpu.memory_space<vmem>>, vector<1x8x82xf32>
    %7 = vector.shape_cast %6 : vector<1x8x82xf32> to vector<8x82xf32>
    %8 = vector.extract_strided_slice %7 {offsets = [0, 0], sizes = [8, 32], strides = [1, 1]} : vector<8x82xf32> to vector<8x32xf32>
    %9 = vector.extract_strided_slice %7 {offsets = [0, 32], sizes = [8, 48], strides = [1, 1]} : vector<8x82xf32> to vector<8x48xf32>
    %10 = vector.extract_strided_slice %7 {offsets = [0, 80], sizes = [8, 1], strides = [1, 1]} : vector<8x82xf32> to vector<8x1xf32>
    %11 = vector.extract_strided_slice %7 {offsets = [0, 81], sizes = [8, 1], strides = [1, 1]} : vector<8x82xf32> to vector<8x1xf32>
    %cst_12 = arith.constant dense<0.000000e+00> : vector<8x80xf32>
    %12 = tpu.matmul %5, %0, %cst_12 {dimension_numbers = #tpu.dot_dimension_numbers<[1], [0], [0], [1], [0, 0, 1, 1], [], []>} : vector<8x16xf32>, vector<16x80xf32>, vector<8x80xf32> -> vector<8x80xf32>
    %13 = vector.extract_strided_slice %12 {offsets = [0, 0], sizes = [8, 32], strides = [1, 1]} : vector<8x80xf32> to vector<8x32xf32>
    %14 = arith.addf %13, %8 : vector<8x32xf32>
    %15 = vector.extract_strided_slice %12 {offsets = [0, 32], sizes = [8, 48], strides = [1, 1]} : vector<8x80xf32> to vector<8x48xf32>
    %c0_13 = arith.constant 0 : index
    %c0_14 = arith.constant 0 : index
    %c0_15 = arith.constant 0 : index
    %c0_16 = arith.constant 0 : index
    %16 = vector.load %arg2[%c0_13, %c0_14, %c0_15, %c0_16] : memref<6x8x4x32xf32, #tpu.memory_space<vmem>>, vector<1x8x4x32xf32>
    %17 = vector.shape_cast %16 : vector<1x8x4x32xf32> to vector<8x4x32xf32>
    %18 = vector.shape_cast %14 : vector<8x32xf32> to vector<8x1x32xf32>
    %19 = vector.broadcast %18 : vector<8x1x32xf32> to vector<8x4x32xf32>
    %20 = arith.mulf %19, %17 : vector<8x4x32xf32>
    %21 = vector.extract_strided_slice %20 {offsets = [0, 0, 0], sizes = [8, 4, 16], strides = [1, 1, 1]} : vector<8x4x32xf32> to vector<8x4x16xf32>
    %cst_17 = arith.constant dense<0.000000e+00> : vector<8x4xf32>
    %22 = vector.multi_reduction <add>, %21, %cst_17 [2] : vector<8x4x16xf32> to vector<8x4xf32>
    %23 = vector.shape_cast %22 : vector<8x4xf32> to vector<8x4x1xf32>
    %24 = vector.extract_strided_slice %20 {offsets = [0, 0, 16], sizes = [8, 4, 16], strides = [1, 1, 1]} : vector<8x4x32xf32> to vector<8x4x16xf32>
    %cst_18 = arith.constant dense<0.000000e+00> : vector<8x4xf32>
    %25 = vector.multi_reduction <add>, %24, %cst_18 [2] : vector<8x4x16xf32> to vector<8x4xf32>
    %26 = vector.shape_cast %25 : vector<8x4xf32> to vector<8x4x1xf32>
    %27 = tpu.concatenate %23, %26 in 2 : vector<8x4x1xf32>, vector<8x4x1xf32> -> vector<8x4x2xf32>
    %cst_19 = arith.constant 2.500000e-01 : f32
    %28 = vector.broadcast %cst_19 : f32 to vector<8x4x2xf32>
    %29 = arith.mulf %27, %28 : vector<8x4x2xf32>
    %cst_20 = arith.constant dense<0xFF800000> : vector<8x2xf32>
    %30 = vector.multi_reduction <maximumf>, %29, %cst_20 [1] : vector<8x4x2xf32> to vector<8x2xf32>
    %31 = vector.shape_cast %30 : vector<8x2xf32> to vector<8x1x2xf32>
    %32 = vector.broadcast %31 : vector<8x1x2xf32> to vector<8x4x2xf32>
    %33 = arith.subf %29, %32 : vector<8x4x2xf32>
    %34 = math.exp %33 : vector<8x4x2xf32>
    %cst_21 = arith.constant dense<0.000000e+00> : vector<8x2xf32>
    %35 = vector.multi_reduction <add>, %34, %cst_21 [1] : vector<8x4x2xf32> to vector<8x2xf32>
    %36 = vector.shape_cast %35 : vector<8x2xf32> to vector<8x1x2xf32>
    %37 = tpu.reciprocal %36 {approx = true} : vector<8x1x2xf32> -> vector<8x1x2xf32>
    %38 = vector.broadcast %37 : vector<8x1x2xf32> to vector<8x4x2xf32>
    %39 = arith.mulf %34, %38 : vector<8x4x2xf32>
    %40 = vector.shape_cast %1 : vector<1x2xf32> to vector<1x1x2xf32>
    %41 = vector.broadcast %40 : vector<1x1x2xf32> to vector<8x4x2xf32>
    %42 = arith.mulf %39, %41 : vector<8x4x2xf32>
    %cst_22 = arith.constant dense<0.000000e+00> : vector<8x4xf32>
    %43 = vector.multi_reduction <add>, %42, %cst_22 [2] : vector<8x4x2xf32> to vector<8x4xf32>
    %44 = vector.shape_cast %43 : vector<8x4xf32> to vector<8x4x1xf32>
    %c0_23 = arith.constant 0 : index
    %c0_24 = arith.constant 0 : index
    %c0_25 = arith.constant 0 : index
    %c0_26 = arith.constant 0 : index
    %45 = vector.load %arg3[%c0_23, %c0_24, %c0_25, %c0_26] : memref<6x8x4x96xf32, #tpu.memory_space<vmem>>, vector<1x8x4x96xf32>
    %46 = vector.shape_cast %45 : vector<1x8x4x96xf32> to vector<8x4x96xf32>
    %47 = vector.broadcast %44 : vector<8x4x1xf32> to vector<8x4x96xf32>
    %48 = arith.mulf %47, %46 : vector<8x4x96xf32>
    %cst_27 = arith.constant dense<0.000000e+00> : vector<8x96xf32>
    %49 = vector.multi_reduction <add>, %48, %cst_27 [1] : vector<8x4x96xf32> to vector<8x96xf32>
    %cst_28 = arith.constant 0.000000e+00 : f32
    %50 = vector.broadcast %cst_28 : f32 to vector<8x32xf32>
    %51 = vector.broadcast %2 : vector<1x96xf32> to vector<8x96xf32>
    %52 = arith.mulf %49, %51 : vector<8x96xf32>
    %cst_29 = arith.constant dense<0.000000e+00> : vector<8xf32>
    %53 = vector.multi_reduction <add>, %52, %cst_29 [1] : vector<8x96xf32> to vector<8xf32>
    %54 = vector.shape_cast %53 : vector<8xf32> to vector<8x1xf32>
    %55 = vector.broadcast %3 : vector<1x32xf32> to vector<8x32xf32>
    %56 = arith.mulf %50, %55 : vector<8x32xf32>
    %cst_30 = arith.constant dense<0.000000e+00> : vector<8xf32>
    %57 = vector.multi_reduction <add>, %56, %cst_30 [1] : vector<8x32xf32> to vector<8xf32>
    %58 = vector.shape_cast %57 : vector<8xf32> to vector<8x1xf32>
    %59 = arith.addf %54, %58 : vector<8x1xf32>
    %60 = vector.broadcast %4 : vector<1x16xf32> to vector<8x16xf32>
    %61 = arith.mulf %5, %60 : vector<8x16xf32>
    %cst_31 = arith.constant dense<0.000000e+00> : vector<8xf32>
    %62 = vector.multi_reduction <add>, %61, %cst_31 [1] : vector<8x16xf32> to vector<8xf32>
    %63 = vector.shape_cast %62 : vector<8xf32> to vector<8x1xf32>
    %64 = arith.addf %59, %63 : vector<8x1xf32>
    %65 = arith.addf %64, %10 : vector<8x1xf32>
    %c0_32 = arith.constant 0 : index
    %c0_33 = arith.constant 0 : index
    %66 = vector.load %arg11[%c0_32, %c0_33] : memref<96x48xf32, #tpu.memory_space<vmem>>, vector<96x48xf32>
    %cst_34 = arith.constant dense<0.000000e+00> : vector<8x48xf32>
    %67 = tpu.matmul %49, %66, %cst_34 {dimension_numbers = #tpu.dot_dimension_numbers<[1], [0], [0], [1], [0, 0, 1, 1], [], []>} : vector<8x96xf32>, vector<96x48xf32>, vector<8x48xf32> -> vector<8x48xf32>
    %c0_35 = arith.constant 0 : index
    %c0_36 = arith.constant 0 : index
    %68 = vector.load %arg7[%c0_35, %c0_36] : memref<32x48xf32, #tpu.memory_space<vmem>>, vector<32x48xf32>
    %cst_37 = arith.constant dense<0.000000e+00> : vector<8x48xf32>
    %69 = tpu.matmul %50, %68, %cst_37 {dimension_numbers = #tpu.dot_dimension_numbers<[1], [0], [0], [1], [0, 0, 1, 1], [], []>} : vector<8x32xf32>, vector<32x48xf32>, vector<8x48xf32> -> vector<8x48xf32>
    %70 = arith.addf %67, %69 : vector<8x48xf32>
    %71 = arith.addf %70, %9 : vector<8x48xf32>
    %72 = vector.extract_strided_slice %71 {offsets = [0, 0], sizes = [8, 16], strides = [1, 1]} : vector<8x48xf32> to vector<8x16xf32>
    %73 = vector.extract_strided_slice %15 {offsets = [0, 0], sizes = [8, 16], strides = [1, 1]} : vector<8x48xf32> to vector<8x16xf32>
    %74 = arith.addf %72, %73 : vector<8x16xf32>
    %75 = arith.negf %74 : vector<8x16xf32>
    %76 = math.exp %75 : vector<8x16xf32>
    %cst_38 = arith.constant 1.000000e+00 : f32
    %77 = vector.broadcast %cst_38 : f32 to vector<8x16xf32>
    %78 = arith.addf %77, %76 : vector<8x16xf32>
    %79 = arith.divf %77, %78 : vector<8x16xf32>
    %80 = vector.extract_strided_slice %71 {offsets = [0, 16], sizes = [8, 16], strides = [1, 1]} : vector<8x48xf32> to vector<8x16xf32>
    %81 = vector.extract_strided_slice %15 {offsets = [0, 16], sizes = [8, 16], strides = [1, 1]} : vector<8x48xf32> to vector<8x16xf32>
    %82 = arith.addf %80, %81 : vector<8x16xf32>
    %83 = arith.negf %82 : vector<8x16xf32>
    %84 = math.exp %83 : vector<8x16xf32>
    %cst_39 = arith.constant 1.000000e+00 : f32
    %85 = vector.broadcast %cst_39 : f32 to vector<8x16xf32>
    %86 = arith.addf %85, %84 : vector<8x16xf32>
    %87 = arith.divf %85, %86 : vector<8x16xf32>
    %88 = vector.extract_strided_slice %71 {offsets = [0, 32], sizes = [8, 16], strides = [1, 1]} : vector<8x48xf32> to vector<8x16xf32>
    %89 = vector.extract_strided_slice %15 {offsets = [0, 32], sizes = [8, 16], strides = [1, 1]} : vector<8x48xf32> to vector<8x16xf32>
    %90 = arith.mulf %87, %89 : vector<8x16xf32>
    %91 = arith.addf %88, %90 : vector<8x16xf32>
    %92 = math.tanh %91 : vector<8x16xf32>
    %cst_40 = arith.constant 1.000000e+00 : f32
    %93 = vector.broadcast %cst_40 : f32 to vector<8x16xf32>
    %94 = arith.subf %93, %79 : vector<8x16xf32>
    %95 = arith.mulf %94, %92 : vector<8x16xf32>
    %96 = arith.mulf %79, %5 : vector<8x16xf32>
    %97 = arith.addf %95, %96 : vector<8x16xf32>
    %98 = vector.broadcast %11 : vector<8x1xf32> to vector<8x16xf32>
    %99 = arith.mulf %97, %98 : vector<8x16xf32>
    %cst_41 = arith.constant 1.000000e+00 : f32
    %100 = vector.broadcast %cst_41 : f32 to vector<8x1xf32>
    %101 = arith.subf %100, %11 : vector<8x1xf32>
    %102 = vector.broadcast %101 : vector<8x1xf32> to vector<8x16xf32>
    %103 = arith.mulf %97, %102 : vector<8x16xf32>
    %104 = tpu.concatenate %99, %103 in 1 : vector<8x16xf32>, vector<8x16xf32> -> vector<8x32xf32>
    %c1 = arith.constant 1 : index
    %c0_42 = arith.constant 0 : index
    %c0_43 = arith.constant 0 : index
    %105 = vector.load %arg1[%c1, %c0_42, %c0_43] : memref<6x8x82xf32, #tpu.memory_space<vmem>>, vector<1x8x82xf32>
    %106 = vector.shape_cast %105 : vector<1x8x82xf32> to vector<8x82xf32>
    %107 = vector.extract_strided_slice %106 {offsets = [0, 0], sizes = [8, 32], strides = [1, 1]} : vector<8x82xf32> to vector<8x32xf32>
    %108 = vector.extract_strided_slice %106 {offsets = [0, 32], sizes = [8, 48], strides = [1, 1]} : vector<8x82xf32> to vector<8x48xf32>
    %109 = vector.extract_strided_slice %106 {offsets = [0, 80], sizes = [8, 1], strides = [1, 1]} : vector<8x82xf32> to vector<8x1xf32>
    %110 = vector.extract_strided_slice %106 {offsets = [0, 81], sizes = [8, 1], strides = [1, 1]} : vector<8x82xf32> to vector<8x1xf32>
    %cst_44 = arith.constant dense<0.000000e+00> : vector<8x80xf32>
    %111 = tpu.matmul %97, %0, %cst_44 {dimension_numbers = #tpu.dot_dimension_numbers<[1], [0], [0], [1], [0, 0, 1, 1], [], []>} : vector<8x16xf32>, vector<16x80xf32>, vector<8x80xf32> -> vector<8x80xf32>
    %112 = vector.extract_strided_slice %111 {offsets = [0, 0], sizes = [8, 32], strides = [1, 1]} : vector<8x80xf32> to vector<8x32xf32>
    %113 = arith.addf %112, %107 : vector<8x32xf32>
    %114 = vector.extract_strided_slice %111 {offsets = [0, 32], sizes = [8, 48], strides = [1, 1]} : vector<8x80xf32> to vector<8x48xf32>
    %c1_45 = arith.constant 1 : index
    %c0_46 = arith.constant 0 : index
    %c0_47 = arith.constant 0 : index
    %c0_48 = arith.constant 0 : index
    %115 = vector.load %arg2[%c1_45, %c0_46, %c0_47, %c0_48] : memref<6x8x4x32xf32, #tpu.memory_space<vmem>>, vector<1x8x4x32xf32>
    %116 = vector.shape_cast %115 : vector<1x8x4x32xf32> to vector<8x4x32xf32>
    %117 = vector.shape_cast %113 : vector<8x32xf32> to vector<8x1x32xf32>
    %118 = vector.broadcast %117 : vector<8x1x32xf32> to vector<8x4x32xf32>
    %119 = arith.mulf %118, %116 : vector<8x4x32xf32>
    %120 = vector.extract_strided_slice %119 {offsets = [0, 0, 0], sizes = [8, 4, 16], strides = [1, 1, 1]} : vector<8x4x32xf32> to vector<8x4x16xf32>
    %cst_49 = arith.constant dense<0.000000e+00> : vector<8x4xf32>
    %121 = vector.multi_reduction <add>, %120, %cst_49 [2] : vector<8x4x16xf32> to vector<8x4xf32>
    %122 = vector.shape_cast %121 : vector<8x4xf32> to vector<8x4x1xf32>
    %123 = vector.extract_strided_slice %119 {offsets = [0, 0, 16], sizes = [8, 4, 16], strides = [1, 1, 1]} : vector<8x4x32xf32> to vector<8x4x16xf32>
    %cst_50 = arith.constant dense<0.000000e+00> : vector<8x4xf32>
    %124 = vector.multi_reduction <add>, %123, %cst_50 [2] : vector<8x4x16xf32> to vector<8x4xf32>
    %125 = vector.shape_cast %124 : vector<8x4xf32> to vector<8x4x1xf32>
    %126 = tpu.concatenate %122, %125 in 2 : vector<8x4x1xf32>, vector<8x4x1xf32> -> vector<8x4x2xf32>
    %cst_51 = arith.constant 2.500000e-01 : f32
    %127 = vector.broadcast %cst_51 : f32 to vector<8x4x2xf32>
    %128 = arith.mulf %126, %127 : vector<8x4x2xf32>
    %cst_52 = arith.constant dense<0xFF800000> : vector<8x2xf32>
    %129 = vector.multi_reduction <maximumf>, %128, %cst_52 [1] : vector<8x4x2xf32> to vector<8x2xf32>
    %130 = vector.shape_cast %129 : vector<8x2xf32> to vector<8x1x2xf32>
    %131 = vector.broadcast %130 : vector<8x1x2xf32> to vector<8x4x2xf32>
    %132 = arith.subf %128, %131 : vector<8x4x2xf32>
    %133 = math.exp %132 : vector<8x4x2xf32>
    %cst_53 = arith.constant dense<0.000000e+00> : vector<8x2xf32>
    %134 = vector.multi_reduction <add>, %133, %cst_53 [1] : vector<8x4x2xf32> to vector<8x2xf32>
    %135 = vector.shape_cast %134 : vector<8x2xf32> to vector<8x1x2xf32>
    %136 = tpu.reciprocal %135 {approx = true} : vector<8x1x2xf32> -> vector<8x1x2xf32>
    %137 = vector.broadcast %136 : vector<8x1x2xf32> to vector<8x4x2xf32>
    %138 = arith.mulf %133, %137 : vector<8x4x2xf32>
    %139 = vector.shape_cast %1 : vector<1x2xf32> to vector<1x1x2xf32>
    %140 = vector.broadcast %139 : vector<1x1x2xf32> to vector<8x4x2xf32>
    %141 = arith.mulf %138, %140 : vector<8x4x2xf32>
    %cst_54 = arith.constant dense<0.000000e+00> : vector<8x4xf32>
    %142 = vector.multi_reduction <add>, %141, %cst_54 [2] : vector<8x4x2xf32> to vector<8x4xf32>
    %143 = vector.shape_cast %142 : vector<8x4xf32> to vector<8x4x1xf32>
    %c1_55 = arith.constant 1 : index
    %c0_56 = arith.constant 0 : index
    %c0_57 = arith.constant 0 : index
    %c0_58 = arith.constant 0 : index
    %144 = vector.load %arg3[%c1_55, %c0_56, %c0_57, %c0_58] : memref<6x8x4x96xf32, #tpu.memory_space<vmem>>, vector<1x8x4x96xf32>
    %145 = vector.shape_cast %144 : vector<1x8x4x96xf32> to vector<8x4x96xf32>
    %146 = vector.broadcast %143 : vector<8x4x1xf32> to vector<8x4x96xf32>
    %147 = arith.mulf %146, %145 : vector<8x4x96xf32>
    %cst_59 = arith.constant dense<0.000000e+00> : vector<8x96xf32>
    %148 = vector.multi_reduction <add>, %147, %cst_59 [1] : vector<8x4x96xf32> to vector<8x96xf32>
    %cst_60 = arith.constant 0.000000e+00 : f32
    %149 = vector.broadcast %cst_60 : f32 to vector<8x32xf32>
    %c1_61 = arith.constant 1 : index
    %c1_62 = arith.constant 1 : index
    %c0_63 = arith.constant 0 : index
    %c0_64 = arith.constant 0 : index
    %150 = vector.load %arg4[%c1_61, %c1_62, %c0_63, %c0_64] : memref<6x7x8x1xf32, #tpu.memory_space<vmem>>, vector<1x1x8x1xf32>
    %151 = vector.shape_cast %150 : vector<1x1x8x1xf32> to vector<8x1xf32>
    %152 = vector.broadcast %151 : vector<8x1xf32> to vector<8x32xf32>
    %153 = arith.mulf %152, %104 : vector<8x32xf32>
    %154 = arith.addf %149, %153 : vector<8x32xf32>
    %155 = vector.broadcast %2 : vector<1x96xf32> to vector<8x96xf32>
    %156 = arith.mulf %148, %155 : vector<8x96xf32>
    %cst_65 = arith.constant dense<0.000000e+00> : vector<8xf32>
    %157 = vector.multi_reduction <add>, %156, %cst_65 [1] : vector<8x96xf32> to vector<8xf32>
    %158 = vector.shape_cast %157 : vector<8xf32> to vector<8x1xf32>
    %159 = vector.broadcast %3 : vector<1x32xf32> to vector<8x32xf32>
    %160 = arith.mulf %154, %159 : vector<8x32xf32>
    %cst_66 = arith.constant dense<0.000000e+00> : vector<8xf32>
    %161 = vector.multi_reduction <add>, %160, %cst_66 [1] : vector<8x32xf32> to vector<8xf32>
    %162 = vector.shape_cast %161 : vector<8xf32> to vector<8x1xf32>
    %163 = arith.addf %158, %162 : vector<8x1xf32>
    %164 = vector.broadcast %4 : vector<1x16xf32> to vector<8x16xf32>
    %165 = arith.mulf %97, %164 : vector<8x16xf32>
    %cst_67 = arith.constant dense<0.000000e+00> : vector<8xf32>
    %166 = vector.multi_reduction <add>, %165, %cst_67 [1] : vector<8x16xf32> to vector<8xf32>
    %167 = vector.shape_cast %166 : vector<8xf32> to vector<8x1xf32>
    %168 = arith.addf %163, %167 : vector<8x1xf32>
    %169 = arith.addf %168, %109 : vector<8x1xf32>
    %c0_68 = arith.constant 0 : index
    %c0_69 = arith.constant 0 : index
    %170 = vector.load %arg11[%c0_68, %c0_69] : memref<96x48xf32, #tpu.memory_space<vmem>>, vector<96x48xf32>
    %cst_70 = arith.constant dense<0.000000e+00> : vector<8x48xf32>
    %171 = tpu.matmul %148, %170, %cst_70 {dimension_numbers = #tpu.dot_dimension_numbers<[1], [0], [0], [1], [0, 0, 1, 1], [], []>} : vector<8x96xf32>, vector<96x48xf32>, vector<8x48xf32> -> vector<8x48xf32>
    %c0_71 = arith.constant 0 : index
    %c0_72 = arith.constant 0 : index
    %172 = vector.load %arg7[%c0_71, %c0_72] : memref<32x48xf32, #tpu.memory_space<vmem>>, vector<32x48xf32>
    %cst_73 = arith.constant dense<0.000000e+00> : vector<8x48xf32>
    %173 = tpu.matmul %154, %172, %cst_73 {dimension_numbers = #tpu.dot_dimension_numbers<[1], [0], [0], [1], [0, 0, 1, 1], [], []>} : vector<8x32xf32>, vector<32x48xf32>, vector<8x48xf32> -> vector<8x48xf32>
    %174 = arith.addf %171, %173 : vector<8x48xf32>
    %175 = arith.addf %174, %108 : vector<8x48xf32>
    %176 = vector.extract_strided_slice %175 {offsets = [0, 0], sizes = [8, 16], strides = [1, 1]} : vector<8x48xf32> to vector<8x16xf32>
    %177 = vector.extract_strided_slice %114 {offsets = [0, 0], sizes = [8, 16], strides = [1, 1]} : vector<8x48xf32> to vector<8x16xf32>
    %178 = arith.addf %176, %177 : vector<8x16xf32>
    %179 = arith.negf %178 : vector<8x16xf32>
    %180 = math.exp %179 : vector<8x16xf32>
    %cst_74 = arith.constant 1.000000e+00 : f32
    %181 = vector.broadcast %cst_74 : f32 to vector<8x16xf32>
    %182 = arith.addf %181, %180 : vector<8x16xf32>
    %183 = arith.divf %181, %182 : vector<8x16xf32>
    %184 = vector.extract_strided_slice %175 {offsets = [0, 16], sizes = [8, 16], strides = [1, 1]} : vector<8x48xf32> to vector<8x16xf32>
    %185 = vector.extract_strided_slice %114 {offsets = [0, 16], sizes = [8, 16], strides = [1, 1]} : vector<8x48xf32> to vector<8x16xf32>
    %186 = arith.addf %184, %185 : vector<8x16xf32>
    %187 = arith.negf %186 : vector<8x16xf32>
    %188 = math.exp %187 : vector<8x16xf32>
    %cst_75 = arith.constant 1.000000e+00 : f32
    %189 = vector.broadcast %cst_75 : f32 to vector<8x16xf32>
    %190 = arith.addf %189, %188 : vector<8x16xf32>
    %191 = arith.divf %189, %190 : vector<8x16xf32>
    %192 = vector.extract_strided_slice %175 {offsets = [0, 32], sizes = [8, 16], strides = [1, 1]} : vector<8x48xf32> to vector<8x16xf32>
    %193 = vector.extract_strided_slice %114 {offsets = [0, 32], sizes = [8, 16], strides = [1, 1]} : vector<8x48xf32> to vector<8x16xf32>
    %194 = arith.mulf %191, %193 : vector<8x16xf32>
    %195 = arith.addf %192, %194 : vector<8x16xf32>
    %196 = math.tanh %195 : vector<8x16xf32>
    %cst_76 = arith.constant 1.000000e+00 : f32
    %197 = vector.broadcast %cst_76 : f32 to vector<8x16xf32>
    %198 = arith.subf %197, %183 : vector<8x16xf32>
    %199 = arith.mulf %198, %196 : vector<8x16xf32>
    %200 = arith.mulf %183, %97 : vector<8x16xf32>
    %201 = arith.addf %199, %200 : vector<8x16xf32>
    %202 = vector.broadcast %110 : vector<8x1xf32> to vector<8x16xf32>
    %203 = arith.mulf %201, %202 : vector<8x16xf32>
    %cst_77 = arith.constant 1.000000e+00 : f32
    %204 = vector.broadcast %cst_77 : f32 to vector<8x1xf32>
    %205 = arith.subf %204, %110 : vector<8x1xf32>
    %206 = vector.broadcast %205 : vector<8x1xf32> to vector<8x16xf32>
    %207 = arith.mulf %201, %206 : vector<8x16xf32>
    %208 = tpu.concatenate %203, %207 in 1 : vector<8x16xf32>, vector<8x16xf32> -> vector<8x32xf32>
    %c2 = arith.constant 2 : index
    %c0_78 = arith.constant 0 : index
    %c0_79 = arith.constant 0 : index
    %209 = vector.load %arg1[%c2, %c0_78, %c0_79] : memref<6x8x82xf32, #tpu.memory_space<vmem>>, vector<1x8x82xf32>
    %210 = vector.shape_cast %209 : vector<1x8x82xf32> to vector<8x82xf32>
    %211 = vector.extract_strided_slice %210 {offsets = [0, 0], sizes = [8, 32], strides = [1, 1]} : vector<8x82xf32> to vector<8x32xf32>
    %212 = vector.extract_strided_slice %210 {offsets = [0, 32], sizes = [8, 48], strides = [1, 1]} : vector<8x82xf32> to vector<8x48xf32>
    %213 = vector.extract_strided_slice %210 {offsets = [0, 80], sizes = [8, 1], strides = [1, 1]} : vector<8x82xf32> to vector<8x1xf32>
    %214 = vector.extract_strided_slice %210 {offsets = [0, 81], sizes = [8, 1], strides = [1, 1]} : vector<8x82xf32> to vector<8x1xf32>
    %cst_80 = arith.constant dense<0.000000e+00> : vector<8x80xf32>
    %215 = tpu.matmul %201, %0, %cst_80 {dimension_numbers = #tpu.dot_dimension_numbers<[1], [0], [0], [1], [0, 0, 1, 1], [], []>} : vector<8x16xf32>, vector<16x80xf32>, vector<8x80xf32> -> vector<8x80xf32>
    %216 = vector.extract_strided_slice %215 {offsets = [0, 0], sizes = [8, 32], strides = [1, 1]} : vector<8x80xf32> to vector<8x32xf32>
    %217 = arith.addf %216, %211 : vector<8x32xf32>
    %218 = vector.extract_strided_slice %215 {offsets = [0, 32], sizes = [8, 48], strides = [1, 1]} : vector<8x80xf32> to vector<8x48xf32>
    %c2_81 = arith.constant 2 : index
    %c0_82 = arith.constant 0 : index
    %c0_83 = arith.constant 0 : index
    %c0_84 = arith.constant 0 : index
    %219 = vector.load %arg2[%c2_81, %c0_82, %c0_83, %c0_84] : memref<6x8x4x32xf32, #tpu.memory_space<vmem>>, vector<1x8x4x32xf32>
    %220 = vector.shape_cast %219 : vector<1x8x4x32xf32> to vector<8x4x32xf32>
    %221 = vector.shape_cast %217 : vector<8x32xf32> to vector<8x1x32xf32>
    %222 = vector.broadcast %221 : vector<8x1x32xf32> to vector<8x4x32xf32>
    %223 = arith.mulf %222, %220 : vector<8x4x32xf32>
    %224 = vector.extract_strided_slice %223 {offsets = [0, 0, 0], sizes = [8, 4, 16], strides = [1, 1, 1]} : vector<8x4x32xf32> to vector<8x4x16xf32>
    %cst_85 = arith.constant dense<0.000000e+00> : vector<8x4xf32>
    %225 = vector.multi_reduction <add>, %224, %cst_85 [2] : vector<8x4x16xf32> to vector<8x4xf32>
    %226 = vector.shape_cast %225 : vector<8x4xf32> to vector<8x4x1xf32>
    %227 = vector.extract_strided_slice %223 {offsets = [0, 0, 16], sizes = [8, 4, 16], strides = [1, 1, 1]} : vector<8x4x32xf32> to vector<8x4x16xf32>
    %cst_86 = arith.constant dense<0.000000e+00> : vector<8x4xf32>
    %228 = vector.multi_reduction <add>, %227, %cst_86 [2] : vector<8x4x16xf32> to vector<8x4xf32>
    %229 = vector.shape_cast %228 : vector<8x4xf32> to vector<8x4x1xf32>
    %230 = tpu.concatenate %226, %229 in 2 : vector<8x4x1xf32>, vector<8x4x1xf32> -> vector<8x4x2xf32>
    %cst_87 = arith.constant 2.500000e-01 : f32
    %231 = vector.broadcast %cst_87 : f32 to vector<8x4x2xf32>
    %232 = arith.mulf %230, %231 : vector<8x4x2xf32>
    %cst_88 = arith.constant dense<0xFF800000> : vector<8x2xf32>
    %233 = vector.multi_reduction <maximumf>, %232, %cst_88 [1] : vector<8x4x2xf32> to vector<8x2xf32>
    %234 = vector.shape_cast %233 : vector<8x2xf32> to vector<8x1x2xf32>
    %235 = vector.broadcast %234 : vector<8x1x2xf32> to vector<8x4x2xf32>
    %236 = arith.subf %232, %235 : vector<8x4x2xf32>
    %237 = math.exp %236 : vector<8x4x2xf32>
    %cst_89 = arith.constant dense<0.000000e+00> : vector<8x2xf32>
    %238 = vector.multi_reduction <add>, %237, %cst_89 [1] : vector<8x4x2xf32> to vector<8x2xf32>
    %239 = vector.shape_cast %238 : vector<8x2xf32> to vector<8x1x2xf32>
    %240 = tpu.reciprocal %239 {approx = true} : vector<8x1x2xf32> -> vector<8x1x2xf32>
    %241 = vector.broadcast %240 : vector<8x1x2xf32> to vector<8x4x2xf32>
    %242 = arith.mulf %237, %241 : vector<8x4x2xf32>
    %243 = vector.shape_cast %1 : vector<1x2xf32> to vector<1x1x2xf32>
    %244 = vector.broadcast %243 : vector<1x1x2xf32> to vector<8x4x2xf32>
    %245 = arith.mulf %242, %244 : vector<8x4x2xf32>
    %cst_90 = arith.constant dense<0.000000e+00> : vector<8x4xf32>
    %246 = vector.multi_reduction <add>, %245, %cst_90 [2] : vector<8x4x2xf32> to vector<8x4xf32>
    %247 = vector.shape_cast %246 : vector<8x4xf32> to vector<8x4x1xf32>
    %c2_91 = arith.constant 2 : index
    %c0_92 = arith.constant 0 : index
    %c0_93 = arith.constant 0 : index
    %c0_94 = arith.constant 0 : index
    %248 = vector.load %arg3[%c2_91, %c0_92, %c0_93, %c0_94] : memref<6x8x4x96xf32, #tpu.memory_space<vmem>>, vector<1x8x4x96xf32>
    %249 = vector.shape_cast %248 : vector<1x8x4x96xf32> to vector<8x4x96xf32>
    %250 = vector.broadcast %247 : vector<8x4x1xf32> to vector<8x4x96xf32>
    %251 = arith.mulf %250, %249 : vector<8x4x96xf32>
    %cst_95 = arith.constant dense<0.000000e+00> : vector<8x96xf32>
    %252 = vector.multi_reduction <add>, %251, %cst_95 [1] : vector<8x4x96xf32> to vector<8x96xf32>
    %cst_96 = arith.constant 0.000000e+00 : f32
    %253 = vector.broadcast %cst_96 : f32 to vector<8x32xf32>
    %c2_97 = arith.constant 2 : index
    %c1_98 = arith.constant 1 : index
    %c0_99 = arith.constant 0 : index
    %c0_100 = arith.constant 0 : index
    %254 = vector.load %arg4[%c2_97, %c1_98, %c0_99, %c0_100] : memref<6x7x8x1xf32, #tpu.memory_space<vmem>>, vector<1x1x8x1xf32>
    %255 = vector.shape_cast %254 : vector<1x1x8x1xf32> to vector<8x1xf32>
    %256 = vector.broadcast %255 : vector<8x1xf32> to vector<8x32xf32>
    %257 = arith.mulf %256, %104 : vector<8x32xf32>
    %258 = arith.addf %253, %257 : vector<8x32xf32>
    %c2_101 = arith.constant 2 : index
    %c2_102 = arith.constant 2 : index
    %c0_103 = arith.constant 0 : index
    %c0_104 = arith.constant 0 : index
    %259 = vector.load %arg4[%c2_101, %c2_102, %c0_103, %c0_104] : memref<6x7x8x1xf32, #tpu.memory_space<vmem>>, vector<1x1x8x1xf32>
    %260 = vector.shape_cast %259 : vector<1x1x8x1xf32> to vector<8x1xf32>
    %261 = vector.broadcast %260 : vector<8x1xf32> to vector<8x32xf32>
    %262 = arith.mulf %261, %208 : vector<8x32xf32>
    %263 = arith.addf %258, %262 : vector<8x32xf32>
    %264 = vector.broadcast %2 : vector<1x96xf32> to vector<8x96xf32>
    %265 = arith.mulf %252, %264 : vector<8x96xf32>
    %cst_105 = arith.constant dense<0.000000e+00> : vector<8xf32>
    %266 = vector.multi_reduction <add>, %265, %cst_105 [1] : vector<8x96xf32> to vector<8xf32>
    %267 = vector.shape_cast %266 : vector<8xf32> to vector<8x1xf32>
    %268 = vector.broadcast %3 : vector<1x32xf32> to vector<8x32xf32>
    %269 = arith.mulf %263, %268 : vector<8x32xf32>
    %cst_106 = arith.constant dense<0.000000e+00> : vector<8xf32>
    %270 = vector.multi_reduction <add>, %269, %cst_106 [1] : vector<8x32xf32> to vector<8xf32>
    %271 = vector.shape_cast %270 : vector<8xf32> to vector<8x1xf32>
    %272 = arith.addf %267, %271 : vector<8x1xf32>
    %273 = vector.broadcast %4 : vector<1x16xf32> to vector<8x16xf32>
    %274 = arith.mulf %201, %273 : vector<8x16xf32>
    %cst_107 = arith.constant dense<0.000000e+00> : vector<8xf32>
    %275 = vector.multi_reduction <add>, %274, %cst_107 [1] : vector<8x16xf32> to vector<8xf32>
    %276 = vector.shape_cast %275 : vector<8xf32> to vector<8x1xf32>
    %277 = arith.addf %272, %276 : vector<8x1xf32>
    %278 = arith.addf %277, %213 : vector<8x1xf32>
    %c0_108 = arith.constant 0 : index
    %c0_109 = arith.constant 0 : index
    %279 = vector.load %arg11[%c0_108, %c0_109] : memref<96x48xf32, #tpu.memory_space<vmem>>, vector<96x48xf32>
    %cst_110 = arith.constant dense<0.000000e+00> : vector<8x48xf32>
    %280 = tpu.matmul %252, %279, %cst_110 {dimension_numbers = #tpu.dot_dimension_numbers<[1], [0], [0], [1], [0, 0, 1, 1], [], []>} : vector<8x96xf32>, vector<96x48xf32>, vector<8x48xf32> -> vector<8x48xf32>
    %c0_111 = arith.constant 0 : index
    %c0_112 = arith.constant 0 : index
    %281 = vector.load %arg7[%c0_111, %c0_112] : memref<32x48xf32, #tpu.memory_space<vmem>>, vector<32x48xf32>
    %cst_113 = arith.constant dense<0.000000e+00> : vector<8x48xf32>
    %282 = tpu.matmul %263, %281, %cst_113 {dimension_numbers = #tpu.dot_dimension_numbers<[1], [0], [0], [1], [0, 0, 1, 1], [], []>} : vector<8x32xf32>, vector<32x48xf32>, vector<8x48xf32> -> vector<8x48xf32>
    %283 = arith.addf %280, %282 : vector<8x48xf32>
    %284 = arith.addf %283, %212 : vector<8x48xf32>
    %285 = vector.extract_strided_slice %284 {offsets = [0, 0], sizes = [8, 16], strides = [1, 1]} : vector<8x48xf32> to vector<8x16xf32>
    %286 = vector.extract_strided_slice %218 {offsets = [0, 0], sizes = [8, 16], strides = [1, 1]} : vector<8x48xf32> to vector<8x16xf32>
    %287 = arith.addf %285, %286 : vector<8x16xf32>
    %288 = arith.negf %287 : vector<8x16xf32>
    %289 = math.exp %288 : vector<8x16xf32>
    %cst_114 = arith.constant 1.000000e+00 : f32
    %290 = vector.broadcast %cst_114 : f32 to vector<8x16xf32>
    %291 = arith.addf %290, %289 : vector<8x16xf32>
    %292 = arith.divf %290, %291 : vector<8x16xf32>
    %293 = vector.extract_strided_slice %284 {offsets = [0, 16], sizes = [8, 16], strides = [1, 1]} : vector<8x48xf32> to vector<8x16xf32>
    %294 = vector.extract_strided_slice %218 {offsets = [0, 16], sizes = [8, 16], strides = [1, 1]} : vector<8x48xf32> to vector<8x16xf32>
    %295 = arith.addf %293, %294 : vector<8x16xf32>
    %296 = arith.negf %295 : vector<8x16xf32>
    %297 = math.exp %296 : vector<8x16xf32>
    %cst_115 = arith.constant 1.000000e+00 : f32
    %298 = vector.broadcast %cst_115 : f32 to vector<8x16xf32>
    %299 = arith.addf %298, %297 : vector<8x16xf32>
    %300 = arith.divf %298, %299 : vector<8x16xf32>
    %301 = vector.extract_strided_slice %284 {offsets = [0, 32], sizes = [8, 16], strides = [1, 1]} : vector<8x48xf32> to vector<8x16xf32>
    %302 = vector.extract_strided_slice %218 {offsets = [0, 32], sizes = [8, 16], strides = [1, 1]} : vector<8x48xf32> to vector<8x16xf32>
    %303 = arith.mulf %300, %302 : vector<8x16xf32>
    %304 = arith.addf %301, %303 : vector<8x16xf32>
    %305 = math.tanh %304 : vector<8x16xf32>
    %cst_116 = arith.constant 1.000000e+00 : f32
    %306 = vector.broadcast %cst_116 : f32 to vector<8x16xf32>
    %307 = arith.subf %306, %292 : vector<8x16xf32>
    %308 = arith.mulf %307, %305 : vector<8x16xf32>
    %309 = arith.mulf %292, %201 : vector<8x16xf32>
    %310 = arith.addf %308, %309 : vector<8x16xf32>
    %311 = vector.broadcast %214 : vector<8x1xf32> to vector<8x16xf32>
    %312 = arith.mulf %310, %311 : vector<8x16xf32>
    %cst_117 = arith.constant 1.000000e+00 : f32
    %313 = vector.broadcast %cst_117 : f32 to vector<8x1xf32>
    %314 = arith.subf %313, %214 : vector<8x1xf32>
    %315 = vector.broadcast %314 : vector<8x1xf32> to vector<8x16xf32>
    %316 = arith.mulf %310, %315 : vector<8x16xf32>
    %317 = tpu.concatenate %312, %316 in 1 : vector<8x16xf32>, vector<8x16xf32> -> vector<8x32xf32>
    %c3 = arith.constant 3 : index
    %c0_118 = arith.constant 0 : index
    %c0_119 = arith.constant 0 : index
    %318 = vector.load %arg1[%c3, %c0_118, %c0_119] : memref<6x8x82xf32, #tpu.memory_space<vmem>>, vector<1x8x82xf32>
    %319 = vector.shape_cast %318 : vector<1x8x82xf32> to vector<8x82xf32>
    %320 = vector.extract_strided_slice %319 {offsets = [0, 0], sizes = [8, 32], strides = [1, 1]} : vector<8x82xf32> to vector<8x32xf32>
    %321 = vector.extract_strided_slice %319 {offsets = [0, 32], sizes = [8, 48], strides = [1, 1]} : vector<8x82xf32> to vector<8x48xf32>
    %322 = vector.extract_strided_slice %319 {offsets = [0, 80], sizes = [8, 1], strides = [1, 1]} : vector<8x82xf32> to vector<8x1xf32>
    %323 = vector.extract_strided_slice %319 {offsets = [0, 81], sizes = [8, 1], strides = [1, 1]} : vector<8x82xf32> to vector<8x1xf32>
    %cst_120 = arith.constant dense<0.000000e+00> : vector<8x80xf32>
    %324 = tpu.matmul %310, %0, %cst_120 {dimension_numbers = #tpu.dot_dimension_numbers<[1], [0], [0], [1], [0, 0, 1, 1], [], []>} : vector<8x16xf32>, vector<16x80xf32>, vector<8x80xf32> -> vector<8x80xf32>
    %325 = vector.extract_strided_slice %324 {offsets = [0, 0], sizes = [8, 32], strides = [1, 1]} : vector<8x80xf32> to vector<8x32xf32>
    %326 = arith.addf %325, %320 : vector<8x32xf32>
    %327 = vector.extract_strided_slice %324 {offsets = [0, 32], sizes = [8, 48], strides = [1, 1]} : vector<8x80xf32> to vector<8x48xf32>
    %c3_121 = arith.constant 3 : index
    %c0_122 = arith.constant 0 : index
    %c0_123 = arith.constant 0 : index
    %c0_124 = arith.constant 0 : index
    %328 = vector.load %arg2[%c3_121, %c0_122, %c0_123, %c0_124] : memref<6x8x4x32xf32, #tpu.memory_space<vmem>>, vector<1x8x4x32xf32>
    %329 = vector.shape_cast %328 : vector<1x8x4x32xf32> to vector<8x4x32xf32>
    %330 = vector.shape_cast %326 : vector<8x32xf32> to vector<8x1x32xf32>
    %331 = vector.broadcast %330 : vector<8x1x32xf32> to vector<8x4x32xf32>
    %332 = arith.mulf %331, %329 : vector<8x4x32xf32>
    %333 = vector.extract_strided_slice %332 {offsets = [0, 0, 0], sizes = [8, 4, 16], strides = [1, 1, 1]} : vector<8x4x32xf32> to vector<8x4x16xf32>
    %cst_125 = arith.constant dense<0.000000e+00> : vector<8x4xf32>
    %334 = vector.multi_reduction <add>, %333, %cst_125 [2] : vector<8x4x16xf32> to vector<8x4xf32>
    %335 = vector.shape_cast %334 : vector<8x4xf32> to vector<8x4x1xf32>
    %336 = vector.extract_strided_slice %332 {offsets = [0, 0, 16], sizes = [8, 4, 16], strides = [1, 1, 1]} : vector<8x4x32xf32> to vector<8x4x16xf32>
    %cst_126 = arith.constant dense<0.000000e+00> : vector<8x4xf32>
    %337 = vector.multi_reduction <add>, %336, %cst_126 [2] : vector<8x4x16xf32> to vector<8x4xf32>
    %338 = vector.shape_cast %337 : vector<8x4xf32> to vector<8x4x1xf32>
    %339 = tpu.concatenate %335, %338 in 2 : vector<8x4x1xf32>, vector<8x4x1xf32> -> vector<8x4x2xf32>
    %cst_127 = arith.constant 2.500000e-01 : f32
    %340 = vector.broadcast %cst_127 : f32 to vector<8x4x2xf32>
    %341 = arith.mulf %339, %340 : vector<8x4x2xf32>
    %cst_128 = arith.constant dense<0xFF800000> : vector<8x2xf32>
    %342 = vector.multi_reduction <maximumf>, %341, %cst_128 [1] : vector<8x4x2xf32> to vector<8x2xf32>
    %343 = vector.shape_cast %342 : vector<8x2xf32> to vector<8x1x2xf32>
    %344 = vector.broadcast %343 : vector<8x1x2xf32> to vector<8x4x2xf32>
    %345 = arith.subf %341, %344 : vector<8x4x2xf32>
    %346 = math.exp %345 : vector<8x4x2xf32>
    %cst_129 = arith.constant dense<0.000000e+00> : vector<8x2xf32>
    %347 = vector.multi_reduction <add>, %346, %cst_129 [1] : vector<8x4x2xf32> to vector<8x2xf32>
    %348 = vector.shape_cast %347 : vector<8x2xf32> to vector<8x1x2xf32>
    %349 = tpu.reciprocal %348 {approx = true} : vector<8x1x2xf32> -> vector<8x1x2xf32>
    %350 = vector.broadcast %349 : vector<8x1x2xf32> to vector<8x4x2xf32>
    %351 = arith.mulf %346, %350 : vector<8x4x2xf32>
    %352 = vector.shape_cast %1 : vector<1x2xf32> to vector<1x1x2xf32>
    %353 = vector.broadcast %352 : vector<1x1x2xf32> to vector<8x4x2xf32>
    %354 = arith.mulf %351, %353 : vector<8x4x2xf32>
    %cst_130 = arith.constant dense<0.000000e+00> : vector<8x4xf32>
    %355 = vector.multi_reduction <add>, %354, %cst_130 [2] : vector<8x4x2xf32> to vector<8x4xf32>
    %356 = vector.shape_cast %355 : vector<8x4xf32> to vector<8x4x1xf32>
    %c3_131 = arith.constant 3 : index
    %c0_132 = arith.constant 0 : index
    %c0_133 = arith.constant 0 : index
    %c0_134 = arith.constant 0 : index
    %357 = vector.load %arg3[%c3_131, %c0_132, %c0_133, %c0_134] : memref<6x8x4x96xf32, #tpu.memory_space<vmem>>, vector<1x8x4x96xf32>
    %358 = vector.shape_cast %357 : vector<1x8x4x96xf32> to vector<8x4x96xf32>
    %359 = vector.broadcast %356 : vector<8x4x1xf32> to vector<8x4x96xf32>
    %360 = arith.mulf %359, %358 : vector<8x4x96xf32>
    %cst_135 = arith.constant dense<0.000000e+00> : vector<8x96xf32>
    %361 = vector.multi_reduction <add>, %360, %cst_135 [1] : vector<8x4x96xf32> to vector<8x96xf32>
    %cst_136 = arith.constant 0.000000e+00 : f32
    %362 = vector.broadcast %cst_136 : f32 to vector<8x32xf32>
    %c3_137 = arith.constant 3 : index
    %c1_138 = arith.constant 1 : index
    %c0_139 = arith.constant 0 : index
    %c0_140 = arith.constant 0 : index
    %363 = vector.load %arg4[%c3_137, %c1_138, %c0_139, %c0_140] : memref<6x7x8x1xf32, #tpu.memory_space<vmem>>, vector<1x1x8x1xf32>
    %364 = vector.shape_cast %363 : vector<1x1x8x1xf32> to vector<8x1xf32>
    %365 = vector.broadcast %364 : vector<8x1xf32> to vector<8x32xf32>
    %366 = arith.mulf %365, %104 : vector<8x32xf32>
    %367 = arith.addf %362, %366 : vector<8x32xf32>
    %c3_141 = arith.constant 3 : index
    %c2_142 = arith.constant 2 : index
    %c0_143 = arith.constant 0 : index
    %c0_144 = arith.constant 0 : index
    %368 = vector.load %arg4[%c3_141, %c2_142, %c0_143, %c0_144] : memref<6x7x8x1xf32, #tpu.memory_space<vmem>>, vector<1x1x8x1xf32>
    %369 = vector.shape_cast %368 : vector<1x1x8x1xf32> to vector<8x1xf32>
    %370 = vector.broadcast %369 : vector<8x1xf32> to vector<8x32xf32>
    %371 = arith.mulf %370, %208 : vector<8x32xf32>
    %372 = arith.addf %367, %371 : vector<8x32xf32>
    %c3_145 = arith.constant 3 : index
    %c3_146 = arith.constant 3 : index
    %c0_147 = arith.constant 0 : index
    %c0_148 = arith.constant 0 : index
    %373 = vector.load %arg4[%c3_145, %c3_146, %c0_147, %c0_148] : memref<6x7x8x1xf32, #tpu.memory_space<vmem>>, vector<1x1x8x1xf32>
    %374 = vector.shape_cast %373 : vector<1x1x8x1xf32> to vector<8x1xf32>
    %375 = vector.broadcast %374 : vector<8x1xf32> to vector<8x32xf32>
    %376 = arith.mulf %375, %317 : vector<8x32xf32>
    %377 = arith.addf %372, %376 : vector<8x32xf32>
    %378 = vector.broadcast %2 : vector<1x96xf32> to vector<8x96xf32>
    %379 = arith.mulf %361, %378 : vector<8x96xf32>
    %cst_149 = arith.constant dense<0.000000e+00> : vector<8xf32>
    %380 = vector.multi_reduction <add>, %379, %cst_149 [1] : vector<8x96xf32> to vector<8xf32>
    %381 = vector.shape_cast %380 : vector<8xf32> to vector<8x1xf32>
    %382 = vector.broadcast %3 : vector<1x32xf32> to vector<8x32xf32>
    %383 = arith.mulf %377, %382 : vector<8x32xf32>
    %cst_150 = arith.constant dense<0.000000e+00> : vector<8xf32>
    %384 = vector.multi_reduction <add>, %383, %cst_150 [1] : vector<8x32xf32> to vector<8xf32>
    %385 = vector.shape_cast %384 : vector<8xf32> to vector<8x1xf32>
    %386 = arith.addf %381, %385 : vector<8x1xf32>
    %387 = vector.broadcast %4 : vector<1x16xf32> to vector<8x16xf32>
    %388 = arith.mulf %310, %387 : vector<8x16xf32>
    %cst_151 = arith.constant dense<0.000000e+00> : vector<8xf32>
    %389 = vector.multi_reduction <add>, %388, %cst_151 [1] : vector<8x16xf32> to vector<8xf32>
    %390 = vector.shape_cast %389 : vector<8xf32> to vector<8x1xf32>
    %391 = arith.addf %386, %390 : vector<8x1xf32>
    %392 = arith.addf %391, %322 : vector<8x1xf32>
    %c0_152 = arith.constant 0 : index
    %c0_153 = arith.constant 0 : index
    %393 = vector.load %arg11[%c0_152, %c0_153] : memref<96x48xf32, #tpu.memory_space<vmem>>, vector<96x48xf32>
    %cst_154 = arith.constant dense<0.000000e+00> : vector<8x48xf32>
    %394 = tpu.matmul %361, %393, %cst_154 {dimension_numbers = #tpu.dot_dimension_numbers<[1], [0], [0], [1], [0, 0, 1, 1], [], []>} : vector<8x96xf32>, vector<96x48xf32>, vector<8x48xf32> -> vector<8x48xf32>
    %c0_155 = arith.constant 0 : index
    %c0_156 = arith.constant 0 : index
    %395 = vector.load %arg7[%c0_155, %c0_156] : memref<32x48xf32, #tpu.memory_space<vmem>>, vector<32x48xf32>
    %cst_157 = arith.constant dense<0.000000e+00> : vector<8x48xf32>
    %396 = tpu.matmul %377, %395, %cst_157 {dimension_numbers = #tpu.dot_dimension_numbers<[1], [0], [0], [1], [0, 0, 1, 1], [], []>} : vector<8x32xf32>, vector<32x48xf32>, vector<8x48xf32> -> vector<8x48xf32>
    %397 = arith.addf %394, %396 : vector<8x48xf32>
    %398 = arith.addf %397, %321 : vector<8x48xf32>
    %399 = vector.extract_strided_slice %398 {offsets = [0, 0], sizes = [8, 16], strides = [1, 1]} : vector<8x48xf32> to vector<8x16xf32>
    %400 = vector.extract_strided_slice %327 {offsets = [0, 0], sizes = [8, 16], strides = [1, 1]} : vector<8x48xf32> to vector<8x16xf32>
    %401 = arith.addf %399, %400 : vector<8x16xf32>
    %402 = arith.negf %401 : vector<8x16xf32>
    %403 = math.exp %402 : vector<8x16xf32>
    %cst_158 = arith.constant 1.000000e+00 : f32
    %404 = vector.broadcast %cst_158 : f32 to vector<8x16xf32>
    %405 = arith.addf %404, %403 : vector<8x16xf32>
    %406 = arith.divf %404, %405 : vector<8x16xf32>
    %407 = vector.extract_strided_slice %398 {offsets = [0, 16], sizes = [8, 16], strides = [1, 1]} : vector<8x48xf32> to vector<8x16xf32>
    %408 = vector.extract_strided_slice %327 {offsets = [0, 16], sizes = [8, 16], strides = [1, 1]} : vector<8x48xf32> to vector<8x16xf32>
    %409 = arith.addf %407, %408 : vector<8x16xf32>
    %410 = arith.negf %409 : vector<8x16xf32>
    %411 = math.exp %410 : vector<8x16xf32>
    %cst_159 = arith.constant 1.000000e+00 : f32
    %412 = vector.broadcast %cst_159 : f32 to vector<8x16xf32>
    %413 = arith.addf %412, %411 : vector<8x16xf32>
    %414 = arith.divf %412, %413 : vector<8x16xf32>
    %415 = vector.extract_strided_slice %398 {offsets = [0, 32], sizes = [8, 16], strides = [1, 1]} : vector<8x48xf32> to vector<8x16xf32>
    %416 = vector.extract_strided_slice %327 {offsets = [0, 32], sizes = [8, 16], strides = [1, 1]} : vector<8x48xf32> to vector<8x16xf32>
    %417 = arith.mulf %414, %416 : vector<8x16xf32>
    %418 = arith.addf %415, %417 : vector<8x16xf32>
    %419 = math.tanh %418 : vector<8x16xf32>
    %cst_160 = arith.constant 1.000000e+00 : f32
    %420 = vector.broadcast %cst_160 : f32 to vector<8x16xf32>
    %421 = arith.subf %420, %406 : vector<8x16xf32>
    %422 = arith.mulf %421, %419 : vector<8x16xf32>
    %423 = arith.mulf %406, %310 : vector<8x16xf32>
    %424 = arith.addf %422, %423 : vector<8x16xf32>
    %425 = vector.broadcast %323 : vector<8x1xf32> to vector<8x16xf32>
    %426 = arith.mulf %424, %425 : vector<8x16xf32>
    %cst_161 = arith.constant 1.000000e+00 : f32
    %427 = vector.broadcast %cst_161 : f32 to vector<8x1xf32>
    %428 = arith.subf %427, %323 : vector<8x1xf32>
    %429 = vector.broadcast %428 : vector<8x1xf32> to vector<8x16xf32>
    %430 = arith.mulf %424, %429 : vector<8x16xf32>
    %431 = tpu.concatenate %426, %430 in 1 : vector<8x16xf32>, vector<8x16xf32> -> vector<8x32xf32>
    %c4 = arith.constant 4 : index
    %c0_162 = arith.constant 0 : index
    %c0_163 = arith.constant 0 : index
    %432 = vector.load %arg1[%c4, %c0_162, %c0_163] : memref<6x8x82xf32, #tpu.memory_space<vmem>>, vector<1x8x82xf32>
    %433 = vector.shape_cast %432 : vector<1x8x82xf32> to vector<8x82xf32>
    %434 = vector.extract_strided_slice %433 {offsets = [0, 0], sizes = [8, 32], strides = [1, 1]} : vector<8x82xf32> to vector<8x32xf32>
    %435 = vector.extract_strided_slice %433 {offsets = [0, 32], sizes = [8, 48], strides = [1, 1]} : vector<8x82xf32> to vector<8x48xf32>
    %436 = vector.extract_strided_slice %433 {offsets = [0, 80], sizes = [8, 1], strides = [1, 1]} : vector<8x82xf32> to vector<8x1xf32>
    %437 = vector.extract_strided_slice %433 {offsets = [0, 81], sizes = [8, 1], strides = [1, 1]} : vector<8x82xf32> to vector<8x1xf32>
    %cst_164 = arith.constant dense<0.000000e+00> : vector<8x80xf32>
    %438 = tpu.matmul %424, %0, %cst_164 {dimension_numbers = #tpu.dot_dimension_numbers<[1], [0], [0], [1], [0, 0, 1, 1], [], []>} : vector<8x16xf32>, vector<16x80xf32>, vector<8x80xf32> -> vector<8x80xf32>
    %439 = vector.extract_strided_slice %438 {offsets = [0, 0], sizes = [8, 32], strides = [1, 1]} : vector<8x80xf32> to vector<8x32xf32>
    %440 = arith.addf %439, %434 : vector<8x32xf32>
    %441 = vector.extract_strided_slice %438 {offsets = [0, 32], sizes = [8, 48], strides = [1, 1]} : vector<8x80xf32> to vector<8x48xf32>
    %c4_165 = arith.constant 4 : index
    %c0_166 = arith.constant 0 : index
    %c0_167 = arith.constant 0 : index
    %c0_168 = arith.constant 0 : index
    %442 = vector.load %arg2[%c4_165, %c0_166, %c0_167, %c0_168] : memref<6x8x4x32xf32, #tpu.memory_space<vmem>>, vector<1x8x4x32xf32>
    %443 = vector.shape_cast %442 : vector<1x8x4x32xf32> to vector<8x4x32xf32>
    %444 = vector.shape_cast %440 : vector<8x32xf32> to vector<8x1x32xf32>
    %445 = vector.broadcast %444 : vector<8x1x32xf32> to vector<8x4x32xf32>
    %446 = arith.mulf %445, %443 : vector<8x4x32xf32>
    %447 = vector.extract_strided_slice %446 {offsets = [0, 0, 0], sizes = [8, 4, 16], strides = [1, 1, 1]} : vector<8x4x32xf32> to vector<8x4x16xf32>
    %cst_169 = arith.constant dense<0.000000e+00> : vector<8x4xf32>
    %448 = vector.multi_reduction <add>, %447, %cst_169 [2] : vector<8x4x16xf32> to vector<8x4xf32>
    %449 = vector.shape_cast %448 : vector<8x4xf32> to vector<8x4x1xf32>
    %450 = vector.extract_strided_slice %446 {offsets = [0, 0, 16], sizes = [8, 4, 16], strides = [1, 1, 1]} : vector<8x4x32xf32> to vector<8x4x16xf32>
    %cst_170 = arith.constant dense<0.000000e+00> : vector<8x4xf32>
    %451 = vector.multi_reduction <add>, %450, %cst_170 [2] : vector<8x4x16xf32> to vector<8x4xf32>
    %452 = vector.shape_cast %451 : vector<8x4xf32> to vector<8x4x1xf32>
    %453 = tpu.concatenate %449, %452 in 2 : vector<8x4x1xf32>, vector<8x4x1xf32> -> vector<8x4x2xf32>
    %cst_171 = arith.constant 2.500000e-01 : f32
    %454 = vector.broadcast %cst_171 : f32 to vector<8x4x2xf32>
    %455 = arith.mulf %453, %454 : vector<8x4x2xf32>
    %cst_172 = arith.constant dense<0xFF800000> : vector<8x2xf32>
    %456 = vector.multi_reduction <maximumf>, %455, %cst_172 [1] : vector<8x4x2xf32> to vector<8x2xf32>
    %457 = vector.shape_cast %456 : vector<8x2xf32> to vector<8x1x2xf32>
    %458 = vector.broadcast %457 : vector<8x1x2xf32> to vector<8x4x2xf32>
    %459 = arith.subf %455, %458 : vector<8x4x2xf32>
    %460 = math.exp %459 : vector<8x4x2xf32>
    %cst_173 = arith.constant dense<0.000000e+00> : vector<8x2xf32>
    %461 = vector.multi_reduction <add>, %460, %cst_173 [1] : vector<8x4x2xf32> to vector<8x2xf32>
    %462 = vector.shape_cast %461 : vector<8x2xf32> to vector<8x1x2xf32>
    %463 = tpu.reciprocal %462 {approx = true} : vector<8x1x2xf32> -> vector<8x1x2xf32>
    %464 = vector.broadcast %463 : vector<8x1x2xf32> to vector<8x4x2xf32>
    %465 = arith.mulf %460, %464 : vector<8x4x2xf32>
    %466 = vector.shape_cast %1 : vector<1x2xf32> to vector<1x1x2xf32>
    %467 = vector.broadcast %466 : vector<1x1x2xf32> to vector<8x4x2xf32>
    %468 = arith.mulf %465, %467 : vector<8x4x2xf32>
    %cst_174 = arith.constant dense<0.000000e+00> : vector<8x4xf32>
    %469 = vector.multi_reduction <add>, %468, %cst_174 [2] : vector<8x4x2xf32> to vector<8x4xf32>
    %470 = vector.shape_cast %469 : vector<8x4xf32> to vector<8x4x1xf32>
    %c4_175 = arith.constant 4 : index
    %c0_176 = arith.constant 0 : index
    %c0_177 = arith.constant 0 : index
    %c0_178 = arith.constant 0 : index
    %471 = vector.load %arg3[%c4_175, %c0_176, %c0_177, %c0_178] : memref<6x8x4x96xf32, #tpu.memory_space<vmem>>, vector<1x8x4x96xf32>
    %472 = vector.shape_cast %471 : vector<1x8x4x96xf32> to vector<8x4x96xf32>
    %473 = vector.broadcast %470 : vector<8x4x1xf32> to vector<8x4x96xf32>
    %474 = arith.mulf %473, %472 : vector<8x4x96xf32>
    %cst_179 = arith.constant dense<0.000000e+00> : vector<8x96xf32>
    %475 = vector.multi_reduction <add>, %474, %cst_179 [1] : vector<8x4x96xf32> to vector<8x96xf32>
    %cst_180 = arith.constant 0.000000e+00 : f32
    %476 = vector.broadcast %cst_180 : f32 to vector<8x32xf32>
    %c4_181 = arith.constant 4 : index
    %c1_182 = arith.constant 1 : index
    %c0_183 = arith.constant 0 : index
    %c0_184 = arith.constant 0 : index
    %477 = vector.load %arg4[%c4_181, %c1_182, %c0_183, %c0_184] : memref<6x7x8x1xf32, #tpu.memory_space<vmem>>, vector<1x1x8x1xf32>
    %478 = vector.shape_cast %477 : vector<1x1x8x1xf32> to vector<8x1xf32>
    %479 = vector.broadcast %478 : vector<8x1xf32> to vector<8x32xf32>
    %480 = arith.mulf %479, %104 : vector<8x32xf32>
    %481 = arith.addf %476, %480 : vector<8x32xf32>
    %c4_185 = arith.constant 4 : index
    %c2_186 = arith.constant 2 : index
    %c0_187 = arith.constant 0 : index
    %c0_188 = arith.constant 0 : index
    %482 = vector.load %arg4[%c4_185, %c2_186, %c0_187, %c0_188] : memref<6x7x8x1xf32, #tpu.memory_space<vmem>>, vector<1x1x8x1xf32>
    %483 = vector.shape_cast %482 : vector<1x1x8x1xf32> to vector<8x1xf32>
    %484 = vector.broadcast %483 : vector<8x1xf32> to vector<8x32xf32>
    %485 = arith.mulf %484, %208 : vector<8x32xf32>
    %486 = arith.addf %481, %485 : vector<8x32xf32>
    %c4_189 = arith.constant 4 : index
    %c3_190 = arith.constant 3 : index
    %c0_191 = arith.constant 0 : index
    %c0_192 = arith.constant 0 : index
    %487 = vector.load %arg4[%c4_189, %c3_190, %c0_191, %c0_192] : memref<6x7x8x1xf32, #tpu.memory_space<vmem>>, vector<1x1x8x1xf32>
    %488 = vector.shape_cast %487 : vector<1x1x8x1xf32> to vector<8x1xf32>
    %489 = vector.broadcast %488 : vector<8x1xf32> to vector<8x32xf32>
    %490 = arith.mulf %489, %317 : vector<8x32xf32>
    %491 = arith.addf %486, %490 : vector<8x32xf32>
    %c4_193 = arith.constant 4 : index
    %c4_194 = arith.constant 4 : index
    %c0_195 = arith.constant 0 : index
    %c0_196 = arith.constant 0 : index
    %492 = vector.load %arg4[%c4_193, %c4_194, %c0_195, %c0_196] : memref<6x7x8x1xf32, #tpu.memory_space<vmem>>, vector<1x1x8x1xf32>
    %493 = vector.shape_cast %492 : vector<1x1x8x1xf32> to vector<8x1xf32>
    %494 = vector.broadcast %493 : vector<8x1xf32> to vector<8x32xf32>
    %495 = arith.mulf %494, %431 : vector<8x32xf32>
    %496 = arith.addf %491, %495 : vector<8x32xf32>
    %497 = vector.broadcast %2 : vector<1x96xf32> to vector<8x96xf32>
    %498 = arith.mulf %475, %497 : vector<8x96xf32>
    %cst_197 = arith.constant dense<0.000000e+00> : vector<8xf32>
    %499 = vector.multi_reduction <add>, %498, %cst_197 [1] : vector<8x96xf32> to vector<8xf32>
    %500 = vector.shape_cast %499 : vector<8xf32> to vector<8x1xf32>
    %501 = vector.broadcast %3 : vector<1x32xf32> to vector<8x32xf32>
    %502 = arith.mulf %496, %501 : vector<8x32xf32>
    %cst_198 = arith.constant dense<0.000000e+00> : vector<8xf32>
    %503 = vector.multi_reduction <add>, %502, %cst_198 [1] : vector<8x32xf32> to vector<8xf32>
    %504 = vector.shape_cast %503 : vector<8xf32> to vector<8x1xf32>
    %505 = arith.addf %500, %504 : vector<8x1xf32>
    %506 = vector.broadcast %4 : vector<1x16xf32> to vector<8x16xf32>
    %507 = arith.mulf %424, %506 : vector<8x16xf32>
    %cst_199 = arith.constant dense<0.000000e+00> : vector<8xf32>
    %508 = vector.multi_reduction <add>, %507, %cst_199 [1] : vector<8x16xf32> to vector<8xf32>
    %509 = vector.shape_cast %508 : vector<8xf32> to vector<8x1xf32>
    %510 = arith.addf %505, %509 : vector<8x1xf32>
    %511 = arith.addf %510, %436 : vector<8x1xf32>
    %c0_200 = arith.constant 0 : index
    %c0_201 = arith.constant 0 : index
    %512 = vector.load %arg11[%c0_200, %c0_201] : memref<96x48xf32, #tpu.memory_space<vmem>>, vector<96x48xf32>
    %cst_202 = arith.constant dense<0.000000e+00> : vector<8x48xf32>
    %513 = tpu.matmul %475, %512, %cst_202 {dimension_numbers = #tpu.dot_dimension_numbers<[1], [0], [0], [1], [0, 0, 1, 1], [], []>} : vector<8x96xf32>, vector<96x48xf32>, vector<8x48xf32> -> vector<8x48xf32>
    %c0_203 = arith.constant 0 : index
    %c0_204 = arith.constant 0 : index
    %514 = vector.load %arg7[%c0_203, %c0_204] : memref<32x48xf32, #tpu.memory_space<vmem>>, vector<32x48xf32>
    %cst_205 = arith.constant dense<0.000000e+00> : vector<8x48xf32>
    %515 = tpu.matmul %496, %514, %cst_205 {dimension_numbers = #tpu.dot_dimension_numbers<[1], [0], [0], [1], [0, 0, 1, 1], [], []>} : vector<8x32xf32>, vector<32x48xf32>, vector<8x48xf32> -> vector<8x48xf32>
    %516 = arith.addf %513, %515 : vector<8x48xf32>
    %517 = arith.addf %516, %435 : vector<8x48xf32>
    %518 = vector.extract_strided_slice %517 {offsets = [0, 0], sizes = [8, 16], strides = [1, 1]} : vector<8x48xf32> to vector<8x16xf32>
    %519 = vector.extract_strided_slice %441 {offsets = [0, 0], sizes = [8, 16], strides = [1, 1]} : vector<8x48xf32> to vector<8x16xf32>
    %520 = arith.addf %518, %519 : vector<8x16xf32>
    %521 = arith.negf %520 : vector<8x16xf32>
    %522 = math.exp %521 : vector<8x16xf32>
    %cst_206 = arith.constant 1.000000e+00 : f32
    %523 = vector.broadcast %cst_206 : f32 to vector<8x16xf32>
    %524 = arith.addf %523, %522 : vector<8x16xf32>
    %525 = arith.divf %523, %524 : vector<8x16xf32>
    %526 = vector.extract_strided_slice %517 {offsets = [0, 16], sizes = [8, 16], strides = [1, 1]} : vector<8x48xf32> to vector<8x16xf32>
    %527 = vector.extract_strided_slice %441 {offsets = [0, 16], sizes = [8, 16], strides = [1, 1]} : vector<8x48xf32> to vector<8x16xf32>
    %528 = arith.addf %526, %527 : vector<8x16xf32>
    %529 = arith.negf %528 : vector<8x16xf32>
    %530 = math.exp %529 : vector<8x16xf32>
    %cst_207 = arith.constant 1.000000e+00 : f32
    %531 = vector.broadcast %cst_207 : f32 to vector<8x16xf32>
    %532 = arith.addf %531, %530 : vector<8x16xf32>
    %533 = arith.divf %531, %532 : vector<8x16xf32>
    %534 = vector.extract_strided_slice %517 {offsets = [0, 32], sizes = [8, 16], strides = [1, 1]} : vector<8x48xf32> to vector<8x16xf32>
    %535 = vector.extract_strided_slice %441 {offsets = [0, 32], sizes = [8, 16], strides = [1, 1]} : vector<8x48xf32> to vector<8x16xf32>
    %536 = arith.mulf %533, %535 : vector<8x16xf32>
    %537 = arith.addf %534, %536 : vector<8x16xf32>
    %538 = math.tanh %537 : vector<8x16xf32>
    %cst_208 = arith.constant 1.000000e+00 : f32
    %539 = vector.broadcast %cst_208 : f32 to vector<8x16xf32>
    %540 = arith.subf %539, %525 : vector<8x16xf32>
    %541 = arith.mulf %540, %538 : vector<8x16xf32>
    %542 = arith.mulf %525, %424 : vector<8x16xf32>
    %543 = arith.addf %541, %542 : vector<8x16xf32>
    %544 = vector.broadcast %437 : vector<8x1xf32> to vector<8x16xf32>
    %545 = arith.mulf %543, %544 : vector<8x16xf32>
    %cst_209 = arith.constant 1.000000e+00 : f32
    %546 = vector.broadcast %cst_209 : f32 to vector<8x1xf32>
    %547 = arith.subf %546, %437 : vector<8x1xf32>
    %548 = vector.broadcast %547 : vector<8x1xf32> to vector<8x16xf32>
    %549 = arith.mulf %543, %548 : vector<8x16xf32>
    %550 = tpu.concatenate %545, %549 in 1 : vector<8x16xf32>, vector<8x16xf32> -> vector<8x32xf32>
    %c5 = arith.constant 5 : index
    %c0_210 = arith.constant 0 : index
    %c0_211 = arith.constant 0 : index
    %551 = vector.load %arg1[%c5, %c0_210, %c0_211] : memref<6x8x82xf32, #tpu.memory_space<vmem>>, vector<1x8x82xf32>
    %552 = vector.shape_cast %551 : vector<1x8x82xf32> to vector<8x82xf32>
    %553 = vector.extract_strided_slice %552 {offsets = [0, 0], sizes = [8, 32], strides = [1, 1]} : vector<8x82xf32> to vector<8x32xf32>
    %554 = vector.extract_strided_slice %552 {offsets = [0, 80], sizes = [8, 1], strides = [1, 1]} : vector<8x82xf32> to vector<8x1xf32>
    %cst_212 = arith.constant dense<0.000000e+00> : vector<8x80xf32>
    %555 = tpu.matmul %543, %0, %cst_212 {dimension_numbers = #tpu.dot_dimension_numbers<[1], [0], [0], [1], [0, 0, 1, 1], [], []>} : vector<8x16xf32>, vector<16x80xf32>, vector<8x80xf32> -> vector<8x80xf32>
    %556 = vector.extract_strided_slice %555 {offsets = [0, 0], sizes = [8, 32], strides = [1, 1]} : vector<8x80xf32> to vector<8x32xf32>
    %557 = arith.addf %556, %553 : vector<8x32xf32>
    %c5_213 = arith.constant 5 : index
    %c0_214 = arith.constant 0 : index
    %c0_215 = arith.constant 0 : index
    %c0_216 = arith.constant 0 : index
    %558 = vector.load %arg2[%c5_213, %c0_214, %c0_215, %c0_216] : memref<6x8x4x32xf32, #tpu.memory_space<vmem>>, vector<1x8x4x32xf32>
    %559 = vector.shape_cast %558 : vector<1x8x4x32xf32> to vector<8x4x32xf32>
    %560 = vector.shape_cast %557 : vector<8x32xf32> to vector<8x1x32xf32>
    %561 = vector.broadcast %560 : vector<8x1x32xf32> to vector<8x4x32xf32>
    %562 = arith.mulf %561, %559 : vector<8x4x32xf32>
    %563 = vector.extract_strided_slice %562 {offsets = [0, 0, 0], sizes = [8, 4, 16], strides = [1, 1, 1]} : vector<8x4x32xf32> to vector<8x4x16xf32>
    %cst_217 = arith.constant dense<0.000000e+00> : vector<8x4xf32>
    %564 = vector.multi_reduction <add>, %563, %cst_217 [2] : vector<8x4x16xf32> to vector<8x4xf32>
    %565 = vector.shape_cast %564 : vector<8x4xf32> to vector<8x4x1xf32>
    %566 = vector.extract_strided_slice %562 {offsets = [0, 0, 16], sizes = [8, 4, 16], strides = [1, 1, 1]} : vector<8x4x32xf32> to vector<8x4x16xf32>
    %cst_218 = arith.constant dense<0.000000e+00> : vector<8x4xf32>
    %567 = vector.multi_reduction <add>, %566, %cst_218 [2] : vector<8x4x16xf32> to vector<8x4xf32>
    %568 = vector.shape_cast %567 : vector<8x4xf32> to vector<8x4x1xf32>
    %569 = tpu.concatenate %565, %568 in 2 : vector<8x4x1xf32>, vector<8x4x1xf32> -> vector<8x4x2xf32>
    %cst_219 = arith.constant 2.500000e-01 : f32
    %570 = vector.broadcast %cst_219 : f32 to vector<8x4x2xf32>
    %571 = arith.mulf %569, %570 : vector<8x4x2xf32>
    %cst_220 = arith.constant dense<0xFF800000> : vector<8x2xf32>
    %572 = vector.multi_reduction <maximumf>, %571, %cst_220 [1] : vector<8x4x2xf32> to vector<8x2xf32>
    %573 = vector.shape_cast %572 : vector<8x2xf32> to vector<8x1x2xf32>
    %574 = vector.broadcast %573 : vector<8x1x2xf32> to vector<8x4x2xf32>
    %575 = arith.subf %571, %574 : vector<8x4x2xf32>
    %576 = math.exp %575 : vector<8x4x2xf32>
    %cst_221 = arith.constant dense<0.000000e+00> : vector<8x2xf32>
    %577 = vector.multi_reduction <add>, %576, %cst_221 [1] : vector<8x4x2xf32> to vector<8x2xf32>
    %578 = vector.shape_cast %577 : vector<8x2xf32> to vector<8x1x2xf32>
    %579 = tpu.reciprocal %578 {approx = true} : vector<8x1x2xf32> -> vector<8x1x2xf32>
    %580 = vector.broadcast %579 : vector<8x1x2xf32> to vector<8x4x2xf32>
    %581 = arith.mulf %576, %580 : vector<8x4x2xf32>
    %582 = vector.shape_cast %1 : vector<1x2xf32> to vector<1x1x2xf32>
    %583 = vector.broadcast %582 : vector<1x1x2xf32> to vector<8x4x2xf32>
    %584 = arith.mulf %581, %583 : vector<8x4x2xf32>
    %cst_222 = arith.constant dense<0.000000e+00> : vector<8x4xf32>
    %585 = vector.multi_reduction <add>, %584, %cst_222 [2] : vector<8x4x2xf32> to vector<8x4xf32>
    %586 = vector.shape_cast %585 : vector<8x4xf32> to vector<8x4x1xf32>
    %c5_223 = arith.constant 5 : index
    %c0_224 = arith.constant 0 : index
    %c0_225 = arith.constant 0 : index
    %c0_226 = arith.constant 0 : index
    %587 = vector.load %arg3[%c5_223, %c0_224, %c0_225, %c0_226] : memref<6x8x4x96xf32, #tpu.memory_space<vmem>>, vector<1x8x4x96xf32>
    %588 = vector.shape_cast %587 : vector<1x8x4x96xf32> to vector<8x4x96xf32>
    %589 = vector.broadcast %586 : vector<8x4x1xf32> to vector<8x4x96xf32>
    %590 = arith.mulf %589, %588 : vector<8x4x96xf32>
    %cst_227 = arith.constant dense<0.000000e+00> : vector<8x96xf32>
    %591 = vector.multi_reduction <add>, %590, %cst_227 [1] : vector<8x4x96xf32> to vector<8x96xf32>
    %cst_228 = arith.constant 0.000000e+00 : f32
    %592 = vector.broadcast %cst_228 : f32 to vector<8x32xf32>
    %c5_229 = arith.constant 5 : index
    %c1_230 = arith.constant 1 : index
    %c0_231 = arith.constant 0 : index
    %c0_232 = arith.constant 0 : index
    %593 = vector.load %arg4[%c5_229, %c1_230, %c0_231, %c0_232] : memref<6x7x8x1xf32, #tpu.memory_space<vmem>>, vector<1x1x8x1xf32>
    %594 = vector.shape_cast %593 : vector<1x1x8x1xf32> to vector<8x1xf32>
    %595 = vector.broadcast %594 : vector<8x1xf32> to vector<8x32xf32>
    %596 = arith.mulf %595, %104 : vector<8x32xf32>
    %597 = arith.addf %592, %596 : vector<8x32xf32>
    %c5_233 = arith.constant 5 : index
    %c2_234 = arith.constant 2 : index
    %c0_235 = arith.constant 0 : index
    %c0_236 = arith.constant 0 : index
    %598 = vector.load %arg4[%c5_233, %c2_234, %c0_235, %c0_236] : memref<6x7x8x1xf32, #tpu.memory_space<vmem>>, vector<1x1x8x1xf32>
    %599 = vector.shape_cast %598 : vector<1x1x8x1xf32> to vector<8x1xf32>
    %600 = vector.broadcast %599 : vector<8x1xf32> to vector<8x32xf32>
    %601 = arith.mulf %600, %208 : vector<8x32xf32>
    %602 = arith.addf %597, %601 : vector<8x32xf32>
    %c5_237 = arith.constant 5 : index
    %c3_238 = arith.constant 3 : index
    %c0_239 = arith.constant 0 : index
    %c0_240 = arith.constant 0 : index
    %603 = vector.load %arg4[%c5_237, %c3_238, %c0_239, %c0_240] : memref<6x7x8x1xf32, #tpu.memory_space<vmem>>, vector<1x1x8x1xf32>
    %604 = vector.shape_cast %603 : vector<1x1x8x1xf32> to vector<8x1xf32>
    %605 = vector.broadcast %604 : vector<8x1xf32> to vector<8x32xf32>
    %606 = arith.mulf %605, %317 : vector<8x32xf32>
    %607 = arith.addf %602, %606 : vector<8x32xf32>
    %c5_241 = arith.constant 5 : index
    %c4_242 = arith.constant 4 : index
    %c0_243 = arith.constant 0 : index
    %c0_244 = arith.constant 0 : index
    %608 = vector.load %arg4[%c5_241, %c4_242, %c0_243, %c0_244] : memref<6x7x8x1xf32, #tpu.memory_space<vmem>>, vector<1x1x8x1xf32>
    %609 = vector.shape_cast %608 : vector<1x1x8x1xf32> to vector<8x1xf32>
    %610 = vector.broadcast %609 : vector<8x1xf32> to vector<8x32xf32>
    %611 = arith.mulf %610, %431 : vector<8x32xf32>
    %612 = arith.addf %607, %611 : vector<8x32xf32>
    %c5_245 = arith.constant 5 : index
    %c5_246 = arith.constant 5 : index
    %c0_247 = arith.constant 0 : index
    %c0_248 = arith.constant 0 : index
    %613 = vector.load %arg4[%c5_245, %c5_246, %c0_247, %c0_248] : memref<6x7x8x1xf32, #tpu.memory_space<vmem>>, vector<1x1x8x1xf32>
    %614 = vector.shape_cast %613 : vector<1x1x8x1xf32> to vector<8x1xf32>
    %615 = vector.broadcast %614 : vector<8x1xf32> to vector<8x32xf32>
    %616 = arith.mulf %615, %550 : vector<8x32xf32>
    %617 = arith.addf %612, %616 : vector<8x32xf32>
    %618 = vector.broadcast %2 : vector<1x96xf32> to vector<8x96xf32>
    %619 = arith.mulf %591, %618 : vector<8x96xf32>
    %cst_249 = arith.constant dense<0.000000e+00> : vector<8xf32>
    %620 = vector.multi_reduction <add>, %619, %cst_249 [1] : vector<8x96xf32> to vector<8xf32>
    %621 = vector.shape_cast %620 : vector<8xf32> to vector<8x1xf32>
    %622 = vector.broadcast %3 : vector<1x32xf32> to vector<8x32xf32>
    %623 = arith.mulf %617, %622 : vector<8x32xf32>
    %cst_250 = arith.constant dense<0.000000e+00> : vector<8xf32>
    %624 = vector.multi_reduction <add>, %623, %cst_250 [1] : vector<8x32xf32> to vector<8xf32>
    %625 = vector.shape_cast %624 : vector<8xf32> to vector<8x1xf32>
    %626 = arith.addf %621, %625 : vector<8x1xf32>
    %627 = vector.broadcast %4 : vector<1x16xf32> to vector<8x16xf32>
    %628 = arith.mulf %543, %627 : vector<8x16xf32>
    %cst_251 = arith.constant dense<0.000000e+00> : vector<8xf32>
    %629 = vector.multi_reduction <add>, %628, %cst_251 [1] : vector<8x16xf32> to vector<8xf32>
    %630 = vector.shape_cast %629 : vector<8xf32> to vector<8x1xf32>
    %631 = arith.addf %626, %630 : vector<8x1xf32>
    %632 = arith.addf %631, %554 : vector<8x1xf32>
    %633 = tpu.concatenate %65, %169, %278, %392, %511, %632 in 1 : vector<8x1xf32>, vector<8x1xf32>, vector<8x1xf32>, vector<8x1xf32>, vector<8x1xf32>, vector<8x1xf32> -> vector<8x6xf32>
    %c0_252 = arith.constant 0 : index
    %c0_253 = arith.constant 0 : index
    %634 = vector.load %arg12[%c0_252, %c0_253] : memref<8x6xf32, #tpu.memory_space<vmem>>, vector<8x6xf32>
    tpu.vector_store %arg12[%c0_252, %c0_253], %633 {strides = array<i32>} : memref<8x6xf32, #tpu.memory_space<vmem>>, vector<8x6xf32>,
    return
  }
  func.func @transform_0(%arg0: i32) -> (i32, i32, i32) {
    %c0_i32 = arith.constant 0 : i32
    %c0_i32_0 = arith.constant 0 : i32
    %c0_i32_1 = arith.constant 0 : i32
    %c0_i32_2 = arith.constant 0 : i32
    return %c0_i32, %c0_i32_0, %c0_i32_1 : i32, i32, i32
  }
  func.func @transform_1(%arg0: i32) -> (i32, i32, i32, i32) {
    %c0_i32 = arith.constant 0 : i32
    %c0_i32_0 = arith.constant 0 : i32
    %c0_i32_1 = arith.constant 0 : i32
    %c0_i32_2 = arith.constant 0 : i32
    %c0_i32_3 = arith.constant 0 : i32
    return %c0_i32, %c0_i32_0, %c0_i32_1, %c0_i32_2 : i32, i32, i32, i32
  }
  func.func @transform_2(%arg0: i32) -> (i32, i32, i32, i32) {
    %c0_i32 = arith.constant 0 : i32
    %c0_i32_0 = arith.constant 0 : i32
    %c0_i32_1 = arith.constant 0 : i32
    %c0_i32_2 = arith.constant 0 : i32
    %c0_i32_3 = arith.constant 0 : i32
    return %c0_i32, %c0_i32_0, %c0_i32_1, %c0_i32_2 : i32, i32, i32, i32
  }
  func.func @transform_3(%arg0: i32) -> (i32, i32, i32, i32) {
    %c0_i32 = arith.constant 0 : i32
    %c0_i32_0 = arith.constant 0 : i32
    %c0_i32_1 = arith.constant 0 : i32
    %c0_i32_2 = arith.constant 0 : i32
    %c0_i32_3 = arith.constant 0 : i32
    return %c0_i32, %c0_i32_0, %c0_i32_1, %c0_i32_2 : i32, i32, i32, i32
  }
  func.func @transform_4(%arg0: i32) -> (i32, i32) {
    %c0_i32 = arith.constant 0 : i32
    %c0_i32_0 = arith.constant 0 : i32
    %c0_i32_1 = arith.constant 0 : i32
    return %c0_i32, %c0_i32_0 : i32, i32
  }
  func.func @transform_5(%arg0: i32) -> (i32, i32) {
    %c0_i32 = arith.constant 0 : i32
    %c0_i32_0 = arith.constant 0 : i32
    %c0_i32_1 = arith.constant 0 : i32
    return %c0_i32, %c0_i32_0 : i32, i32
  }
  func.func @transform_6(%arg0: i32) -> (i32, i32) {
    %c0_i32 = arith.constant 0 : i32
    %c0_i32_0 = arith.constant 0 : i32
    %c0_i32_1 = arith.constant 0 : i32
    return %c0_i32, %c0_i32_0 : i32, i32
  }
  func.func @transform_7(%arg0: i32) -> (i32, i32) {
    %c0_i32 = arith.constant 0 : i32
    %c0_i32_0 = arith.constant 0 : i32
    %c0_i32_1 = arith.constant 0 : i32
    return %c0_i32, %c0_i32_0 : i32, i32
  }
  func.func @transform_8(%arg0: i32) -> (i32, i32) {
    %c0_i32 = arith.constant 0 : i32
    %c0_i32_0 = arith.constant 0 : i32
    %c0_i32_1 = arith.constant 0 : i32
    return %c0_i32, %c0_i32_0 : i32, i32
  }
  func.func @transform_9(%arg0: i32) -> (i32, i32) {
    %c0_i32 = arith.constant 0 : i32
    %c0_i32_0 = arith.constant 0 : i32
    %c0_i32_1 = arith.constant 0 : i32
    return %c0_i32, %c0_i32_0 : i32, i32
  }
  func.func @transform_10(%arg0: i32) -> (i32, i32) {
    %c0_i32 = arith.constant 0 : i32
    %c0_i32_0 = arith.constant 0 : i32
    %c0_i32_1 = arith.constant 0 : i32
    return %c0_i32, %c0_i32_0 : i32, i32
  }
  func.func @transform_11(%arg0: i32) -> (i32, i32) {
    %c0_i32 = arith.constant 0 : i32
    %c0_i32_0 = arith.constant 0 : i32
    %c0_i32_1 = arith.constant 0 : i32
    return %c0_i32, %c0_i32_0 : i32, i32
  }
}

</mosaic_0001>

<bundles_post_ra>
// kernel: tpu_custom_call.1
= control target key start
LH: loop header
LB: loop body
LE: loop exit
PB: predicated region body
PF: predicated region fallthrough
CT: control target
= control target key end

     0   :  { %v5625_v1 = vmov 0.0   ;;  %vm5626_vm0 = vmmov 0   ;;  %s7598_s0 = inlined_call_operand.vmem [shape: f32[6,8,82], index: 0, kind: input, shape index: {}]   ;;  %s7599_s1 = inlined_call_operand.vmem [shape: f32[6,8,4,32], index: 1, kind: input, shape index: {}]   ;;  %s7600_s2 = inlined_call_operand.vmem [shape: f32[6,8,4,96], index: 2, kind: input, shape index: {}]   ;;  %s7601_s3 = inlined_call_operand.vmem [shape: f32[6,7,8,1], index: 3, kind: input, shape index: {}]   ;;  %s7602_s4 = inlined_call_operand.vmem [shape: f32[16,80], index: 4, kind: input, shape index: {}]   ;;  %s7603_s5 = inlined_call_operand.vmem [shape: f32[1,2], index: 5, kind: input, shape index: {}]   ;;  %s7604_s6 = inlined_call_operand.vmem [shape: f32[32,48], index: 6, kind: input, shape index: {}]   ;;  %s7605_s7 = inlined_call_operand.vmem [shape: f32[1,96], index: 7, kind: input, shape index: {}]   ;;  %s7606_s8 = inlined_call_operand.vmem [shape: f32[1,32], index: 8, kind: input, shape index: {}]   ;;  %s7607_s9 = inlined_call_operand.vmem [shape: f32[1,16], index: 9, kind: input, shape index: {}]   ;;  %s7608_s10 = inlined_call_operand.vmem [shape: f32[96,48], index: 10, kind: input, shape index: {}]   ;;  %s7609_s11 = inlined_call_operand.hbm [shape: f32[8,6], index: 11, kind: output, shape index: {}]  }
   0x1   :  { %v5704_v0 = vld [vmem:[%s7602_s4 + $0x8] sm:$0xff]  ;;  %5051 = vmatprep.subr.mxu0 %v5625_v1  ;;  %v5710_v2 = vld [vmem:[%s7602_s4] sm:$0xff]  ;;  %5055 = vmatprep.mubr.msk.f32.mxu0 %vm5626_vm0, %v5625_v1 }
   0x2   :  { %16 = vsyncpa [#allocation3], 0  ;;  %5052 = vmatpush3.msra.mxu0 %v5704_v0  ;;  %5058 = vmatprep.subr.mxu1 %v5625_v1  ;;  %v5627_v3 = vmov 1966171168   ;;  %v134_v5 = vlaneseq  ;;  %v5727_v8 = vld [vmem:[%s7598_s0] sm:$0xff]  ;;  %s5628_s29 = smov 112  }
   0x3   :  { %5053 = vmatprep.subr.mxu0 %v5625_v1  ;;  %5066 = vmatprep.mubr.msk.f32.mxu1 %vm5626_vm0, %v5625_v1  ;;  %v132_v4 = vunpack.c.l.s4 %v5627_v3  ;;  %v121_v19 = vld [vmem:[%s7599_s1] sm:$0xf]  ;;  %v123_v24 = vld [vmem:[%s7599_s1 + $0x8] sm:$0xf]  ;;  %v122_v30 = vld [vmem:[%s7599_s1 + $0x4] sm:$0xf] }
   0x4   :  { %5054 = vmatpush3.msra.mxu0 %v5710_v2  ;;  %v135_v7 = vshrl.u32 %v134_v5, 7  ;;  %v124_v34 = vld [vmem:[%s7599_s1 + $0xc] sm:$0xf]  ;;  %v125_v38 = vld [vmem:[%s7599_s1 + $0x10] sm:$0xf]  ;;  %vm227_vm1 = vcmask 125952  }
   0x5   :  { %5056 = vmatmul.mubr.f32.vlgmr.msra.gmra.mxu0 %v5625_v1  ;;  %5069 = vmatprep.subr.mxu0 %v5625_v1  ;;  %v133_v6 = vunpack.c.0.s8 %v132_v4  ;;  %v126_v42 = vld [vmem:[%s7599_s1 + $0x14] sm:$0xf]  ;;  %v127_v45 = vld [vmem:[%s7599_s1 + $0x18] sm:$0xf]  ;;  %v128_v48 = vld [vmem:[%s7599_s1 + $0x1c] sm:$0xf] }
   0x6   :  { %5093 = vmatprep.mubr.msk.f32.mxu0 %vm5626_vm0, %v5625_v1  ;;  %v5736_v15 = vsub.s32 0, %v135_v7  ;;  %vm308_vm2 = vcmask 7168   ;;  %vm325_vm3 = vcmask 11264   ;;  %s5629_s15 = smov 96   ;;  %s5630_s20 = smov 80   ;;  %vm532_vm4 = vcmask 781312  }
   0x7   :  { %v5729_v9 = vsub.s32 %v133_v6, %v135_v7  ;;  %vm612_vm5 = vcmask 1041409   ;;  %vm615_vm6 = vcmask 1042434   ;;  %vm618_vm7 = vcmask 1043459   ;;  %s5631_s30 = smov 16   ;;  %s5636_s18 = smov 50  }
   0x8   :  { %vm621_vm8 = vcmask 1044484   ;;  %vm624_vm9 = vcmask 1045509   ;;  %vm627_vm10 = vcmask 1046534   ;;  %vm630_vm11 = vcmask 1047559   ;;  %s5639_s23 = smov 52   ;;  %s5640_s24 = smov [#allocation2]  }
   0x9   :  { %vm633_vm12 = vcmask 785408   ;;  %vm46_vm13 = vcmask 130048   ;;  %vm644_vm14 = vcmask 261120   ;;  %vm4796_vm15 = vcmask 15360   ;;  %s4812_s25 = sshll.u32 %s5640_s24, 4  ;;  %s4813_s25 = int_to_ptr.vmem [resolvable:$true] %s4812_s25 }
   0xa   :  { %p5608_p1 = scmp.lt.s32.totalorder %s4813_s25, %s4813_s25 }
  0xc5   :  { %v5731_v10 = vpop.f32.mrf.mxu0 }
  0xc6   :  { %v120_v11 = vadd.f32 %v5731_v10, %v5727_v8 }
  0xc7   :  { %v5057_v12 = vpop.f32.mrf.mxu0 }
  0xc8   :  { %v130_v13 = vcombine.high %v120_v11, %v120_v11  ;;  %v137_v14 = vrot.slane %v120_v11, %v5729_v9 }
  0xca   :  { %v144_v16 = vrot.slane %v130_v13, %v5729_v9  ;;  %v145_v17 = vcombine.high %v137_v14, %v137_v14  ;;  %v153_v18 = vrot.slane %v137_v14, %v5729_v9 }
  0xcc   :  { %v146_v20 = vcombine.high %v144_v16, %v144_v16  ;;  %v182_v21 = vrot.slane %v153_v18, %v5736_v15  ;;  %v175_v22 = vcombine.high %v153_v18, %v153_v18  ;;  %v167_v23 = vrot.slane %v145_v17, %v5729_v9 }
  0xcd   :  { %v160_v25 = vrot.slane %v144_v16, %v5729_v9 }
  0xce   :  { %v219_v26 = vmul.f32 %v182_v21, %v121_v19  ;;  %v190_v27 = vrot.slane %v175_v22, %v5736_v15  ;;  %v186_v28 = vrot.slane %v167_v23, %v5736_v15  ;;  %v177_v29 = vcombine.high %v167_v23, %v167_v23 }
  0xcf   :  { %v174_v33 = vrot.slane %v146_v20, %v5729_v9  ;;  %v198_v36 = vrot.slane %v160_v25, %v5736_v15  ;;  %v176_v37 = vcombine.high %v160_v25, %v160_v25 }
  0xd0   :  { %260 = vrot.lane.b32.xlu0 %v219_v26, %s5628_s29  ;;  %v221_v31 = vmul.f32 %v190_v27, %v123_v24  ;;  %v194_v32 = vrot.slane %v177_v29, %v5736_v15  ;;  %v220_v35 = vmul.f32 %v186_v28, %v122_v30  ;;  %v228_v51 = vsel %vm227_vm1, %v219_v26, 0.0 }
  0xd1   :  { %v202_v40 = vrot.slane %v174_v33, %v5736_v15  ;;  %v178_v41 = vcombine.high %v174_v33, %v174_v33  ;;  %v223_v43 = vmul.f32 %v198_v36, %v125_v38  ;;  %v206_v44 = vrot.slane %v176_v37, %v5736_v15 }
  0xd2   :  { %264 = vrot.lane.b32.xlu1 %v221_v31, %s5628_s29  ;;  %v222_v39 = vmul.f32 %v194_v32, %v124_v34  ;;  %v231_v52 = vsel %vm227_vm1, %v220_v35, 0.0  ;;  %v234_v53 = vsel %vm227_vm1, %v221_v31, 0.0 }
  0xd3   :  { %v224_v46 = vmul.f32 %v202_v40, %v126_v42  ;;  %v210_v47 = vrot.slane %v178_v41, %v5736_v15  ;;  %v225_v49 = vmul.f32 %v206_v44, %v127_v45  ;;  %v240_v55 = vsel %vm227_vm1, %v223_v43, 0.0 }
  0xd4   :  { %262 = vrot.lane.b32.xlu0 %v220_v35, %s5628_s29  ;;  %v237_v54 = vsel %vm227_vm1, %v222_v39, 0.0 }
  0xd5   :  { %v226_v50 = vmul.f32 %v210_v47, %v128_v48  ;;  %v243_v56 = vsel %vm227_vm1, %v224_v46, 0.0  ;;  %v246_v57 = vsel %vm227_vm1, %v225_v49, 0.0 }
  0xd6   :  { %266 = vrot.lane.b32.xlu1 %v222_v39, %s5628_s29 }
  0xd7   :  { %v249_v58 = vsel %vm227_vm1, %v226_v50, 0.0 }
  0xd8   :  { %268 = vrot.lane.b32.xlu0 %v223_v43, %s5628_s29 }
  0xda   :  { %270 = vrot.lane.b32.xlu1 %v224_v46, %s5628_s29 }
  0xdc   :  { %272 = vrot.lane.b32.xlu0 %v225_v49, %s5628_s29 }
  0xde   :  { %274 = vrot.lane.b32.xlu1 %v226_v50, %s5628_s29 }
  0xfb   :  { %229 = vadd.xlane.f32.xlu0 %v228_v51 }
 0x102   :  { %232 = vadd.xlane.f32.xlu1 %v231_v52 }
 0x106   :  { %235 = vadd.xlane.f32.xlu1 %v234_v53 }
 0x10a   :  { %238 = vadd.xlane.f32.xlu1 %v237_v54 }
 0x10e   :  { %241 = vadd.xlane.f32.xlu1 %v240_v55 }
 0x112   :  { %244 = vadd.xlane.f32.xlu1 %v243_v56 }
 0x116   :  { %247 = vadd.xlane.f32.xlu1 %v246_v57 }
 0x11a   :  { %250 = vadd.xlane.f32.xlu1 %v249_v58 }
 0x142   :  { %v261_v59 = vpop.permute.xlu0 %260 }
 0x143   :  { %v284_v60 = vsel %vm227_vm1, %v261_v59, 0.0 }
 0x144   :  { %285 = vadd.xlane.f32.xlu0 %v284_v60  ;;  %v265_v63 = vpop.permute.xlu1 %264 }
 0x145   :  { %v290_v3 = vsel %vm227_vm1, %v265_v63, 0.0 }
 0x146   :  { %v263_v61 = vpop.permute.xlu0 %262 }
 0x147   :  { %v287_v62 = vsel %vm227_vm1, %v263_v61, 0.0 }
 0x148   :  { %288 = vadd.xlane.f32.xlu0 %v287_v62  ;;  %v267_v5 = vpop.permute.xlu1 %266 }
 0x149   :  { %v293_v7 = vsel %vm227_vm1, %v267_v5, 0.0 }
 0x14a   :  { %v269_v4 = vpop.permute.xlu0 %268 }
 0x14b   :  { %v296_v6 = vsel %vm227_vm1, %v269_v4, 0.0 }
 0x14c   :  { %291 = vadd.xlane.f32.xlu0 %v290_v3  ;;  %v271_v11 = vpop.permute.xlu1 %270 }
 0x14d   :  { %v299_v12 = vsel %vm227_vm1, %v271_v11, 0.0 }
 0x14e   :  { %v273_v13 = vpop.permute.xlu0 %272 }
 0x14f   :  { %v302_v14 = vsel %vm227_vm1, %v273_v13, 0.0 }
 0x150   :  { %297 = vadd.xlane.f32.xlu0 %v296_v6  ;;  %v275_v16 = vpop.permute.xlu1 %274 }
 0x151   :  { %v305_v17 = vsel %vm227_vm1, %v275_v16, 0.0 }
 0x154   :  { %294 = vadd.xlane.f32.xlu0 %v293_v7 }
 0x158   :  { %300 = vadd.xlane.f32.xlu0 %v299_v12 }
 0x15c   :  { %303 = vadd.xlane.f32.xlu0 %v302_v14 }
 0x160   :  { %306 = vadd.xlane.f32.xlu0 %v305_v17 }
 0x184   :  { %v230_v19 = vpop.xlane.xlu0 %229 }
 0x18b   :  { %v233_v18 = vpop.xlane.xlu1 %232 }
 0x18f   :  { %v236_v20 = vpop.xlane.xlu1 %235 }
 0x193   :  { %v239_v26 = vpop.xlane.xlu1 %238 }
 0x197   :  { %v242_v37 = vpop.xlane.xlu1 %241 }
 0x19b   :  { %v245_v52 = vpop.xlane.xlu1 %244 }
 0x19f   :  { %v248_v11 = vpop.xlane.xlu1 %247 }
 0x1cd   :  { %v286_v21 = vpop.xlane.xlu0 %285 }
 0x1ce   :  { %v309_v22 = vsel %vm308_vm2, %v230_v19, %v286_v21 }
 0x1cf   :  { %v317_v23 = vmul.f32 0.25, %v309_v22 }
 0x1d1   :  { %v326_v24 = vsel %vm325_vm3, %v317_v23, -inf  ;;  %v289_v25 = vpop.xlane.xlu0 %288 }
 0x1d2   :  { %v327_v27 = vrot.slane %v326_v24, 4  ;;  %v310_v28 = vsel %vm308_vm2, %v233_v18, %v289_v25 }
 0x1d3   :  { %v318_v29 = vmul.f32 0.25, %v310_v28 }
 0x1d4   :  { %v328_v30 = vmax.f32 %v326_v24, %v327_v27 }
 0x1d5   :  { %v333_v31 = vsel %vm325_vm3, %v318_v29, -inf  ;;  %v292_v32 = vpop.xlane.xlu0 %291 }
 0x1d6   :  { %v329_v33 = vrot.slane %v328_v30, 2  ;;  %v334_v34 = vrot.slane %v333_v31, 4  ;;  %v311_v35 = vsel %vm308_vm2, %v236_v20, %v292_v32 }
 0x1d7   :  { %v319_v36 = vmul.f32 0.25, %v311_v35 }
 0x1d8   :  { %v330_v38 = vmax.f32 %v328_v30, %v329_v33  ;;  %v335_v39 = vmax.f32 %v333_v31, %v334_v34  ;;  %v251_v30 = vpop.xlane.xlu1 %250 }
 0x1d9   :  { %v340_v40 = vsel %vm325_vm3, %v319_v36, -inf  ;;  %v298_v41 = vpop.xlane.xlu0 %297 }
 0x1da   :  { %v331_v42 = vrot.slane %v330_v38, 1  ;;  %v336_v43 = vrot.slane %v335_v39, 2  ;;  %v341_v44 = vrot.slane %v340_v40, 4  ;;  %v313_v45 = vsel %vm308_vm2, %v242_v37, %v298_v41 }
 0x1db   :  { %v321_v46 = vmul.f32 0.25, %v313_v45 }
 0x1dc   :  { %v332_v47 = vmax.f32 %v330_v38, %v331_v42  ;;  %v337_v48 = vmax.f32 %v335_v39, %v336_v43  ;;  %v342_v49 = vmax.f32 %v340_v40, %v341_v44 }
 0x1dd   :  { %v354_v50 = vsel %vm325_vm3, %v321_v46, -inf  ;;  %v295_v51 = vpop.xlane.xlu0 %294 }
 0x1de   :  { %v382_v53 = vsub.f32 %v317_v23, %v332_v47  ;;  %v338_v54 = vrot.slane %v337_v48, 1  ;;  %v343_v55 = vrot.slane %v342_v49, 2  ;;  %v355_v56 = vrot.slane %v354_v50, 4 }
 0x1df   :  { %v312_v57 = vsel %vm308_vm2, %v239_v26, %v295_v51 }
 0x1e0   :  { %v390_v58 = vmul.f32 1.442695, %v382_v53  ;;  %v339_v59 = vmax.f32 %v337_v48, %v338_v54  ;;  %v344_v60 = vmax.f32 %v342_v49, %v343_v55  ;;  %v356_v61 = vmax.f32 %v354_v50, %v355_v56 }
 0x1e1   :  { %v320_v62 = vmul.f32 0.25, %v312_v57  ;;  %v301_v63 = vpop.xlane.xlu0 %300 }
 0x1e2   :  { %5317 = vpow2.f32 %v390_v58  ;;  %v383_v3 = vsub.f32 %v318_v29, %v339_v59  ;;  %v345_v4 = vrot.slane %v344_v60, 1  ;;  %v357_v5 = vrot.slane %v356_v61, 2 }
 0x1e3   :  { %v347_v6 = vsel %vm325_vm3, %v320_v62, -inf  ;;  %v314_v7 = vsel %vm308_vm2, %v245_v52, %v301_v63 }
 0x1e4   :  { %v392_v12 = vmul.f32 1.442695, %v383_v3  ;;  %v346_v13 = vmax.f32 %v344_v60, %v345_v4  ;;  %v358_v14 = vmax.f32 %v356_v61, %v357_v5  ;;  %v348_v16 = vrot.slane %v347_v6, 4 }
 0x1e5   :  { %v322_v17 = vmul.f32 0.25, %v314_v7  ;;  %v304_v18 = vpop.xlane.xlu0 %303 }
 0x1e6   :  { %5319 = vpow2.f32 %v392_v12  ;;  %v384_v19 = vsub.f32 %v319_v36, %v346_v13  ;;  %v359_v20 = vrot.slane %v358_v14, 1  ;;  %v349_v21 = vmax.f32 %v347_v6, %v348_v16 }
 0x1e7   :  { %v361_v22 = vsel %vm325_vm3, %v322_v17, -inf  ;;  %v315_v23 = vsel %vm308_vm2, %v248_v11, %v304_v18 }
 0x1e8   :  { %v394_v24 = vmul.f32 1.442695, %v384_v19  ;;  %v360_v25 = vmax.f32 %v358_v14, %v359_v20  ;;  %v350_v26 = vrot.slane %v349_v21, 2  ;;  %v362_v27 = vrot.slane %v361_v22, 4 }
 0x1e9   :  { %v323_v28 = vmul.f32 0.25, %v315_v23  ;;  %v307_v29 = vpop.xlane.xlu0 %306 }
 0x1ea   :  { %5321 = vpow2.f32 %v394_v24  ;;  %v386_v31 = vsub.f32 %v321_v46, %v360_v25  ;;  %v351_v32 = vmax.f32 %v349_v21, %v350_v26  ;;  %v363_v33 = vmax.f32 %v361_v22, %v362_v27 }
 0x1eb   :  { %v368_v34 = vsel %vm325_vm3, %v323_v28, -inf  ;;  %v316_v35 = vsel %vm308_vm2, %v251_v30, %v307_v29 }
 0x1ec   :  { %v398_v36 = vmul.f32 1.442695, %v386_v31  ;;  %v352_v37 = vrot.slane %v351_v32, 1  ;;  %v364_v38 = vrot.slane %v363_v33, 2  ;;  %v369_v39 = vrot.slane %v368_v34, 4 }
 0x1ed   :  { %v324_v40 = vmul.f32 0.25, %v316_v35 }
 0x1ee   :  { %5323 = vpow2.f32 %v398_v36  ;;  %v353_v41 = vmax.f32 %v351_v32, %v352_v37  ;;  %v365_v42 = vmax.f32 %v363_v33, %v364_v38  ;;  %v370_v43 = vmax.f32 %v368_v34, %v369_v39 }
 0x1ef   :  { %v5814_v44 = vpop.eup %5317  ;;  %v375_v45 = vsel %vm325_vm3, %v324_v40, -inf }
 0x1f0   :  { %v406_v46 = vsel %vm325_vm3, %v5814_v44, 0.0  ;;  %v385_v47 = vsub.f32 %v320_v62, %v353_v41  ;;  %v366_v48 = vrot.slane %v365_v42, 1  ;;  %v371_v49 = vrot.slane %v370_v43, 2 }
 0x1f1   :  { %v407_v50 = vrot.slane %v406_v46, 4  ;;  %v376_v51 = vrot.slane %v375_v45, 4 }
 0x1f2   :  { %v396_v52 = vmul.f32 1.442695, %v385_v47  ;;  %v367_v53 = vmax.f32 %v365_v42, %v366_v48  ;;  %v372_v54 = vmax.f32 %v370_v43, %v371_v49 }
 0x1f3   :  { %v5819_v55 = vpop.eup %5319  ;;  %v408_v56 = vadd.f32 %v407_v50, %v406_v46  ;;  %v377_v57 = vmax.f32 %v375_v45, %v376_v51 }
 0x1f4   :  { %v413_v58 = vsel %vm325_vm3, %v5819_v55, 0.0  ;;  %5325 = vpow2.f32 %v396_v52  ;;  %v387_v59 = vsub.f32 %v322_v17, %v367_v53  ;;  %v373_v60 = vrot.slane %v372_v54, 1 }
 0x1f5   :  { %v409_v61 = vrot.slane %v408_v56, 2  ;;  %v414_v63 = vrot.slane %v413_v58, 4  ;;  %v378_v62 = vrot.slane %v377_v57, 2 }
 0x1f6   :  { %v400_v3 = vmul.f32 1.442695, %v387_v59  ;;  %v374_v4 = vmax.f32 %v372_v54, %v373_v60  ;;  %v4820_v54 = vld [vmem:[%s7603_s5] ss:$0 sm:$0xff] }
 0x1f7   :  { %v5823_v5 = vpop.eup %5321  ;;  %v415_v6 = vadd.f32 %v414_v63, %v413_v58  ;;  %v379_v7 = vmax.f32 %v377_v57, %v378_v62  ;;  %v410_v11 = vadd.f32 %v409_v61, %v408_v56 }
 0x1f8   :  { %v420_v12 = vsel %vm325_vm3, %v5823_v5, 0.0  ;;  %5327 = vpow2.f32 %v400_v3  ;;  %v388_v13 = vsub.f32 %v323_v28, %v374_v4 }
 0x1f9   :  { %v416_v14 = vrot.slane %v415_v6, 2  ;;  %v421_v16 = vrot.slane %v420_v12, 4  ;;  %v380_v18 = vrot.slane %v379_v7, 1  ;;  %v411_v17 = vrot.slane %v410_v11, 1 }
 0x1fa   :  { %v402_v19 = vmul.f32 1.442695, %v388_v13 }
 0x1fb   :  { %v5827_v20 = vpop.eup %5323  ;;  %v422_v21 = vadd.f32 %v421_v16, %v420_v12  ;;  %v381_v22 = vmax.f32 %v379_v7, %v380_v18  ;;  %v412_v23 = vadd.f32 %v411_v17, %v410_v11  ;;  %v417_v24 = vadd.f32 %v416_v14, %v415_v6 }
 0x1fc   :  { %v434_v25 = vsel %vm325_vm3, %v5827_v20, 0.0  ;;  %5329 = vpow2.f32 %v402_v19 }
 0x1fd   :  { %v423_v26 = vrot.slane %v422_v21, 2  ;;  %v435_v27 = vrot.slane %v434_v25, 4  ;;  %v389_v29 = vsub.f32 %v324_v40, %v381_v22  ;;  %5331 = vrcp.f32 %v412_v23 }
 0x1fe   :  { %v418_v28 = vrot.slane %v417_v24, 1 }
 0x1ff   :  { %v436_v30 = vadd.f32 %v435_v27, %v434_v25  ;;  %v404_v31 = vmul.f32 1.442695, %v389_v29  ;;  %v424_v32 = vadd.f32 %v423_v26, %v422_v21 }
 0x200   :  { %v419_v33 = vadd.f32 %v418_v28, %v417_v24 }
 0x201   :  { %v5831_v34 = vpop.eup %5325  ;;  %v437_v35 = vrot.slane %v436_v30, 2  ;;  %5333 = vpow2.f32 %v404_v31  ;;  %v425_v36 = vrot.slane %v424_v32, 1 }
 0x202   :  { %v427_v37 = vsel %vm325_vm3, %v5831_v34, 0.0  ;;  %5335 = vrcp.f32 %v419_v33 }
 0x203   :  { %v428_v38 = vrot.slane %v427_v37, 4  ;;  %v426_v39 = vadd.f32 %v425_v36, %v424_v32  ;;  %v438_v41 = vadd.f32 %v437_v35, %v436_v30 }
 0x205   :  { %v5835_v42 = vpop.eup %5327  ;;  %v429_v40 = vadd.f32 %v428_v38, %v427_v37  ;;  %5337 = vrcp.f32 %v426_v39  ;;  %v439_v43 = vrot.slane %v438_v41, 1 }
 0x206   :  { %v441_v45 = vsel %vm325_vm3, %v5835_v42, 0.0 }
 0x207   :  { %v430_v46 = vrot.slane %v429_v40, 2  ;;  %v442_v47 = vrot.slane %v441_v45, 4  ;;  %v440_v48 = vadd.f32 %v439_v43, %v438_v41 }
 0x209   :  { %v5330_v49 = vpop.eup %5329  ;;  %v443_v50 = vadd.f32 %v442_v47, %v441_v45  ;;  %5339 = vrcp.f32 %v440_v48  ;;  %v431_v51 = vadd.f32 %v430_v46, %v429_v40 }
 0x20a   :  { %v5332_v52 = vpop.eup %5331  ;;  %v448_v53 = vsel %vm325_vm3, %v5330_v49, 0.0 }
 0x20b   :  { %v444_v56 = vrot.slane %v443_v50, 2  ;;  %v449_v57 = vrot.slane %v448_v53, 4  ;;  %v470_v58 = vmul.f32 %v5332_v52, %v5814_v44  ;;  %v432_v59 = vrot.slane %v431_v51, 1  ;;  %v669_v52 = vld [vmem:[%s7608_s10 + $0x40] sm:$0xff] }
 0x20d   :  { %v450_v60 = vadd.f32 %v449_v57, %v448_v53  ;;  %v484_v61 = vmul.f32 %v4820_v54, %v470_v58  ;;  %v433_v63 = vadd.f32 %v432_v59, %v431_v51  ;;  %v445_v62 = vadd.f32 %v444_v56, %v443_v50  ;;  %v670_v51 = vld [vmem:[%s7608_s10 + $0x48] sm:$0xff]  ;;  %v668_v53 = vld [vmem:[%s7608_s10 + $0x38] sm:$0xff]  ;;  %v665_v57 = vld [vmem:[%s7608_s10 + $0x20] sm:$0xff] }
 0x20e   :  { %v5334_v3 = vpop.eup %5333  ;;  %v666_v56 = vld [vmem:[%s7608_s10 + $0x28] sm:$0xff]  ;;  %v5904_v58 = vld [vmem:[%s7604_s6 + $0x10] sm:$0xff]  ;;  %v664_v59 = vld [vmem:[%s7608_s10 + $0x18] sm:$0xff] }
 0x20f   :  { %v5336_v4 = vpop.eup %5335  ;;  %v451_v6 = vrot.slane %v450_v60, 2  ;;  %v455_v7 = vsel %vm325_vm3, %v5334_v3, 0.0  ;;  %v492_v11 = vsel %vm325_vm3, %v484_v61, 0.0  ;;  %5341 = vrcp.f32 %v433_v63  ;;  %v663_v61 = vld [vmem:[%s7608_s10 + $0x10] sm:$0xff]  ;;  %v5927_v63 = vld [vmem:[%s7604_s6] sm:$0xff] }
 0x210   :  { %v456_v12 = vrot.slane %v455_v7, 4  ;;  %493 = vadd.xlane.f32.xlu1 %v492_v11  ;;  %v471_v13 = vmul.f32 %v5336_v4, %v5819_v55  ;;  %v446_v14 = vrot.slane %v445_v62, 1 }
 0x211   :  { %v452_v16 = vadd.f32 %v451_v6, %v450_v60  ;;  %v5915_v60 = vld [vmem:[%s7604_s6 + $0x8] sm:$0xff] }
 0x212   :  { %v5338_v44 = vpop.eup %5337  ;;  %v457_v18 = vadd.f32 %v456_v12, %v455_v7  ;;  %v485_v17 = vmul.f32 %v4820_v54, %v471_v13  ;;  %v447_v19 = vadd.f32 %v446_v14, %v445_v62  ;;  %v662_v62 = vld [vmem:[%s7608_s10 + $0x8] sm:$0xff]  ;;  %v517_v7 = vld [vmem:[%s7600_s2 + $0x4] sm:$0xf] }
 0x213   :  { %v472_v21 = vmul.f32 %v5338_v44, %v5823_v5  ;;  %v453_v22 = vrot.slane %v452_v16, 1  ;;  %v518_v14 = vld [vmem:[%s7600_s2 + $0x8] sm:$0xf] }
 0x214   :  { %v458_v23 = vrot.slane %v457_v18, 2  ;;  %v495_v24 = vsel %vm325_vm3, %v485_v17, 0.0  ;;  %5343 = vrcp.f32 %v447_v19 }
 0x215   :  { %496 = vadd.xlane.f32.xlu0 %v495_v24  ;;  %v486_v25 = vmul.f32 %v4820_v54, %v472_v21  ;;  %v454_v26 = vadd.f32 %v453_v22, %v452_v16  ;;  %v520_v21 = vld [vmem:[%s7600_s2 + $0x10] sm:$0xf] }
 0x216   :  { %v5340_v27 = vpop.eup %5339  ;;  %v459_v29 = vadd.f32 %v458_v23, %v457_v18 }
 0x217   :  { %v498_v55 = vsel %vm325_vm3, %v486_v25, 0.0  ;;  %v474_v28 = vmul.f32 %v5340_v27, %v5827_v20  ;;  %5345 = vrcp.f32 %v454_v26 }
 0x218   :  { %499 = vadd.xlane.f32.xlu1 %v498_v55  ;;  %v460_v30 = vrot.slane %v459_v29, 1 }
 0x219   :  { %v488_v31 = vmul.f32 %v4820_v54, %v474_v28 }
 0x21a   :  { %v461_v32 = vadd.f32 %v460_v30, %v459_v29 }
 0x21b   :  { %v504_v5 = vsel %vm325_vm3, %v488_v31, 0.0 }
 0x21c   :  { %v5342_v33 = vpop.eup %5341  ;;  %505 = vadd.xlane.f32.xlu1 %v504_v5  ;;  %5347 = vrcp.f32 %v461_v32 }
 0x21d   :  { %v473_v35 = vmul.f32 %v5342_v33, %v5831_v34  ;;  %v519_v33 = vld [vmem:[%s7600_s2 + $0xc] sm:$0xf] }
 0x21f   :  { %v487_v36 = vmul.f32 %v4820_v54, %v473_v35 }
 0x221   :  { %v5344_v37 = vpop.eup %5343  ;;  %v501_v38 = vsel %vm325_vm3, %v487_v36, 0.0 }
 0x222   :  { %502 = vadd.xlane.f32.xlu0 %v501_v38  ;;  %v475_v39 = vmul.f32 %v5344_v37, %v5835_v42  ;;  %v672_v42 = vld [vmem:[%s7608_s10 + $0x58] sm:$0xff] }
 0x223   :  { %5070 = vmatpush3.msra.mxu0 %v672_v42  ;;  %v521_v42 = vld [vmem:[%s7600_s2 + $0x14] sm:$0xf] }
 0x224   :  { %v5346_v20 = vpop.eup %5345  ;;  %v489_v41 = vmul.f32 %v4820_v54, %v475_v39  ;;  %5071 = vmatprep.subr.mxu0 %v5625_v1 }
 0x225   :  { %v476_v40 = vmul.f32 %v5346_v20, %v5330_v49  ;;  %v671_v49 = vld [vmem:[%s7608_s10 + $0x50] sm:$0xff] }
 0x226   :  { %v507_v43 = vsel %vm325_vm3, %v489_v41, 0.0  ;;  %5072 = vmatpush3.msra.mxu0 %v671_v49 }
 0x227   :  { %508 = vadd.xlane.f32.xlu0 %v507_v43  ;;  %v490_v45 = vmul.f32 %v4820_v54, %v476_v40  ;;  %5073 = vmatprep.subr.mxu0 %v5625_v1  ;;  %v5969_v40 = vld [vmem:[%s7605_s7] ss:$0 sm:$0xff] }
 0x228   :  { %5074 = vmatpush3.msra.mxu0 %v670_v51 }
 0x229   :  { %v5348_v46 = vpop.eup %5347  ;;  %v510_v47 = vsel %vm325_vm3, %v490_v45, 0.0  ;;  %5075 = vmatprep.subr.mxu0 %v5625_v1 }
 0x22a   :  { %511 = vadd.xlane.f32.xlu1 %v510_v47  ;;  %v477_v48 = vmul.f32 %v5348_v46, %v5334_v3  ;;  %5076 = vmatpush3.msra.mxu0 %v669_v52  ;;  %v516_v3 = vld [vmem:[%s7600_s2] sm:$0xf] }
 0x22b   :  { %5077 = vmatprep.subr.mxu0 %v5625_v1 }
 0x22c   :  { %v491_v34 = vmul.f32 %v4820_v54, %v477_v48  ;;  %5078 = vmatpush3.msra.mxu0 %v668_v53  ;;  %v667_v54 = vld [vmem:[%s7608_s10 + $0x30] sm:$0xff] }
 0x22d   :  { %5079 = vmatprep.subr.mxu0 %v5625_v1 }
 0x22e   :  { %v513_v50 = vsel %vm325_vm3, %v491_v34, 0.0  ;;  %5080 = vmatpush3.msra.mxu0 %v667_v54 }
 0x22f   :  { %514 = vadd.xlane.f32.xlu0 %v513_v50  ;;  %5081 = vmatprep.subr.mxu0 %v5625_v1 }
 0x230   :  { %5082 = vmatpush3.msra.mxu0 %v666_v56  ;;  %v522_v56 = vld [vmem:[%s7600_s2 + $0x18] sm:$0xf] }
 0x231   :  { %5083 = vmatprep.subr.mxu0 %v5625_v1 }
 0x232   :  { %5084 = vmatpush3.msra.mxu0 %v665_v57 }
 0x233   :  { %5085 = vmatprep.subr.mxu0 %v5625_v1 }
 0x234   :  { %5086 = vmatpush3.msra.mxu0 %v664_v59 }
 0x235   :  { %5087 = vmatprep.subr.mxu0 %v5625_v1 }
 0x236   :  { %5088 = vmatpush3.msra.mxu0 %v663_v61 }
 0x237   :  { %5089 = vmatprep.subr.mxu0 %v5625_v1 }
 0x238   :  { %5090 = vmatpush3.msra.mxu0 %v662_v62 }
 0x239   :  { %5091 = vmatprep.subr.mxu0 %v5625_v1 }
 0x23b   :  { %837 = vrot.lane.b32.xlu1 %v5727_v8, %s5629_s15  ;;  %v5893_v8 = vld [vmem:[%s7604_s6 + $0x18] sm:$0xff] }
 0x23c   :  { %5059 = vmatpush3.msra.mxu1 %v5893_v8 }
 0x23d   :  { %5060 = vmatprep.subr.mxu1 %v5625_v1 }
 0x23e   :  { %5061 = vmatpush3.msra.mxu1 %v5904_v58 }
 0x23f   :  { %852 = vrot.lane.b32.xlu1 %v5731_v10, %s5630_s20  ;;  %5062 = vmatprep.subr.mxu1 %v5625_v1 }
 0x240   :  { %5063 = vmatpush3.msra.mxu1 %v5915_v60 }
 0x241   :  { %5064 = vmatprep.subr.mxu1 %v5625_v1 }
 0x242   :  { %5065 = vmatpush3.msra.mxu1 %v5927_v63 }
 0x243   :  { %5067 = vmatmul.mubr.f32.vlgmr.msra.gmra.mxu1 %v5625_v1  ;;  %5096 = vmatprep.subr.mxu1 %v5625_v1 }
 0x244   :  { %5097 = vmatpush3.msra.mxu1 %v5704_v0  ;;  %5100 = vmatprep.mubr.msk.f32.mxu1 %vm5626_vm0, %v5625_v1 }
 0x245   :  { %842 = vrot.lane.b32.xlu0 %v5731_v10, %s5629_s15  ;;  %v661_v10 = vld [vmem:[%s7608_s10] sm:$0xff]  ;;  %5098 = vmatprep.subr.mxu1 %v5625_v1 }
 0x246   :  { %5092 = vmatpush3.msra.mxu0 %v661_v10  ;;  %5099 = vmatpush3.msra.mxu1 %v5710_v2 }
 0x247   :  { %5141 = vmatprep.subr.mxu0 %v5625_v1  ;;  %5103 = vmatprep.subr.mxu1 %v5625_v1 }
 0x299   :  { %v494_v4 = vpop.xlane.xlu1 %493 }
 0x29a   :  { %v524_v6 = vmul.f32 %v516_v3, %v494_v4 }
 0x29c   :  { %v533_v0 = vsel %vm532_vm4, %v524_v6, 0.0 }
 0x29d   :  { %v534_v11 = vrot.slane %v533_v0, 4 }
 0x29e   :  { %v497_v12 = vpop.xlane.xlu0 %496 }
 0x29f   :  { %v535_v2 = vadd.f32 %v534_v11, %v533_v0  ;;  %v525_v13 = vmul.f32 %v517_v7, %v497_v12 }
 0x2a1   :  { %v536_v16 = vrot.slane %v535_v2, 2  ;;  %v540_v44 = vsel %vm532_vm4, %v525_v13, 0.0  ;;  %v500_v18 = vpop.xlane.xlu1 %499  ;;  %v523_v13 = vld [vmem:[%s7600_s2 + $0x1c] sm:$0xf] }
 0x2a2   :  { %v541_v17 = vrot.slane %v540_v44, 4  ;;  %v526_v19 = vmul.f32 %v518_v14, %v500_v18 }
 0x2a3   :  { %v537_v22 = vadd.f32 %v536_v16, %v535_v2 }
 0x2a4   :  { %v542_v23 = vadd.f32 %v541_v17, %v540_v44  ;;  %v547_v24 = vsel %vm532_vm4, %v526_v19, 0.0 }
 0x2a5   :  { %v548_v25 = vrot.slane %v547_v24, 4  ;;  %v506_v26 = vpop.xlane.xlu1 %505  ;;  %v538_v28 = vrot.slane %v537_v22, 1 }
 0x2a6   :  { %v543_v27 = vrot.slane %v542_v23, 2  ;;  %v528_v29 = vmul.f32 %v520_v21, %v506_v26 }
 0x2a7   :  { %v549_v55 = vadd.f32 %v548_v25, %v547_v24  ;;  %v539_v39 = vadd.f32 %v538_v28, %v537_v22 }
 0x2a8   :  { %v544_v30 = vadd.f32 %v543_v27, %v542_v23  ;;  %v561_v31 = vsel %vm532_vm4, %v528_v29, 0.0 }
 0x2a9   :  { %v550_v32 = vrot.slane %v549_v55, 2  ;;  %v562_v5 = vrot.slane %v561_v31, 4  ;;  %v595_v49 = vmul.f32 %v5969_v40, %v539_v39 }
 0x2aa   :  { %v545_v35 = vrot.slane %v544_v30, 1 }
 0x2ab   :  { %v551_v36 = vadd.f32 %v550_v32, %v549_v55  ;;  %v563_v37 = vadd.f32 %v562_v5, %v561_v31  ;;  %v503_v38 = vpop.xlane.xlu0 %502 }
 0x2ac   :  { %v546_v20 = vadd.f32 %v545_v35, %v544_v30  ;;  %v527_v41 = vmul.f32 %v519_v33, %v503_v38 }
 0x2ad   :  { %v552_v43 = vrot.slane %v551_v36, 1  ;;  %v564_v45 = vrot.slane %v563_v37, 2 }
 0x2ae   :  { %v596_v46 = vmul.f32 %v5969_v40, %v546_v20  ;;  %v554_v47 = vsel %vm532_vm4, %v527_v41, 0.0 }
 0x2af   :  { %v553_v48 = vadd.f32 %v552_v43, %v551_v36  ;;  %v565_v34 = vadd.f32 %v564_v45, %v563_v37  ;;  %v555_v50 = vrot.slane %v554_v47, 4  ;;  %v757_v37 = vsel %vm612_vm5, %v546_v20, %v539_v39 }
 0x2b0   :  { %v611_v51 = vrot.slane %v596_v46, 7  ;;  %v509_v52 = vpop.xlane.xlu0 %508 }
 0x2b1   :  { %v597_v53 = vmul.f32 %v5969_v40, %v553_v48  ;;  %v556_v54 = vadd.f32 %v555_v50, %v554_v47  ;;  %v566_v59 = vrot.slane %v565_v34, 1  ;;  %v529_v61 = vmul.f32 %v521_v42, %v509_v52 }
 0x2b2   :  { %v613_v57 = vsel %vm612_vm5, %v611_v51, %v595_v49  ;;  %v758_v45 = vsel %vm615_vm6, %v553_v48, %v757_v37  ;;  %v4829_v37 = vld [vmem:[%s7599_s1 + $0x24] sm:$0xf] }
 0x2b3   :  { %v614_v62 = vrot.slane %v597_v53, 6  ;;  %v557_v10 = vrot.slane %v556_v54, 2  ;;  %v512_v3 = vpop.xlane.xlu1 %511  ;;  %v568_v4 = vsel %vm532_vm4, %v529_v61, 0.0  ;;  %v567_v12 = vadd.f32 %v566_v59, %v565_v34  ;;  %v5540_v61 = vld [vmem:[%s7602_s4] sm:$0xff] }
 0x2b4   :  { %v530_v6 = vmul.f32 %v522_v56, %v512_v3  ;;  %v569_v7 = vrot.slane %v568_v4, 4 }
 0x2b5   :  { %v558_v0 = vadd.f32 %v557_v10, %v556_v54  ;;  %v616_v11 = vsel %vm615_vm6, %v614_v62, %v613_v57  ;;  %v599_v23 = vmul.f32 %v5969_v40, %v567_v12  ;;  %v5539_v57 = vld [vmem:[%s7602_s4 + $0x8] sm:$0xff] }
 0x2b6   :  { %v575_v2 = vsel %vm532_vm4, %v530_v6, 0.0  ;;  %v570_v16 = vadd.f32 %v569_v7, %v568_v4 }
 0x2b7   :  { %v559_v14 = vrot.slane %v558_v0, 1  ;;  %v576_v44 = vrot.slane %v575_v2, 4  ;;  %v620_v31 = vrot.slane %v599_v23, 4 }
 0x2b8   :  { %v515_v18 = vpop.xlane.xlu0 %514  ;;  %v571_v19 = vrot.slane %v570_v16, 2 }
 0x2b9   :  { %v560_v17 = vadd.f32 %v559_v14, %v558_v0  ;;  %v577_v21 = vadd.f32 %v576_v44, %v575_v2  ;;  %v531_v22 = vmul.f32 %v523_v13, %v515_v18  ;;  %v838_v0 = vpop.permute.xlu1 %837 }
 0x2ba   :  { %v572_v25 = vadd.f32 %v571_v19, %v570_v16 }
 0x2bb   :  { %v598_v24 = vmul.f32 %v5969_v40, %v560_v17  ;;  %v578_v26 = vrot.slane %v577_v21, 2  ;;  %v582_v27 = vsel %vm532_vm4, %v531_v22, 0.0  ;;  %v759_v46 = vsel %vm618_vm7, %v560_v17, %v758_v45 }
 0x2bc   :  { %v573_v55 = vrot.slane %v572_v25, 1  ;;  %v583_v30 = vrot.slane %v582_v27, 4  ;;  %v760_v39 = vsel %vm621_vm8, %v567_v12, %v759_v46  ;;  %v843_v12 = vpop.permute.xlu0 %842 }
 0x2bd   :  { %v617_v29 = vrot.slane %v598_v24, 5  ;;  %v579_v28 = vadd.f32 %v578_v26, %v577_v21  ;;  %v853_v18 = vpop.permute.xlu1 %852 }
 0x2be   :  { %v574_v32 = vadd.f32 %v573_v55, %v572_v25  ;;  %v584_v33 = vadd.f32 %v583_v30, %v582_v27 }
 0x2bf   :  { %v580_v5 = vrot.slane %v579_v28, 1  ;;  %v619_v35 = vsel %vm618_vm7, %v617_v29, %v616_v11 }
 0x2c0   :  { %v622_v36 = vsel %vm621_vm8, %v620_v31, %v619_v35  ;;  %v600_v38 = vmul.f32 %v5969_v40, %v574_v32  ;;  %v585_v43 = vrot.slane %v584_v33, 2  ;;  %v761_v52 = vsel %vm624_vm9, %v574_v32, %v760_v39  ;;  %v4828_v32 = vld [vmem:[%s7599_s1 + $0x20] sm:$0xf] }
 0x2c1   :  { %v581_v41 = vadd.f32 %v580_v5, %v579_v28 }
 0x2c2   :  { %v623_v47 = vrot.slane %v600_v38, 3  ;;  %v586_v34 = vadd.f32 %v585_v43, %v584_v33 }
 0x2c3   :  { %v601_v50 = vmul.f32 %v5969_v40, %v581_v41  ;;  %v762_v53 = vsel %vm627_vm10, %v581_v41, %v761_v52  ;;  %v4832_v52 = vld [vmem:[%s7599_s1 + $0x30] sm:$0xf] }
 0x2c4   :  { %v587_v42 = vrot.slane %v586_v34, 1  ;;  %v625_v49 = vsel %vm624_vm9, %v623_v47, %v622_v36  ;;  %v4830_v47 = vld [vmem:[%s7599_s1 + $0x28] sm:$0xf] }
 0x2c5   :  { %v626_v51 = vrot.slane %v601_v50, 2 }
 0x2c6   :  { %v588_v20 = vadd.f32 %v587_v42, %v586_v34 }
 0x2c7   :  { %v628_v48 = vsel %vm627_vm10, %v626_v51, %v625_v49  ;;  %v4831_v49 = vld [vmem:[%s7599_s1 + $0x2c] sm:$0xf] }
 0x2c8   :  { %v763_v54 = vsel %vm630_vm11, %v588_v20, %v762_v53  ;;  %v602_v56 = vmul.f32 %v5969_v40, %v588_v20 }
 0x2c9   :  { %5094 = vmatmul.mubr.msk.f32.vlgmr.msra.gmra.mxu0 %vm633_vm12, %v763_v54 }
 0x2ca   :  { %5142 = vmatpush3.msra.mxu0 %v5539_v57  ;;  %5145 = vmatprep.mubr.msk.f32.mxu0 %vm5626_vm0, %v5625_v1  ;;  %v629_v59 = vrot.slane %v602_v56, 1  ;;  %v4833_v56 = vld [vmem:[%s7599_s1 + $0x34] sm:$0xf] }
 0x2cb   :  { %5143 = vmatprep.subr.mxu0 %v5625_v1 }
 0x2cc   :  { %5144 = vmatpush3.msra.mxu0 %v5540_v61  ;;  %v6016_v62 = vsel %vm630_vm11, %v629_v59, %v628_v48  ;;  %v4834_v61 = vld [vmem:[%s7599_s1 + $0x38] sm:$0xf] }
 0x2cd   :  { %5159 = vmatprep.subr.mxu0 %v5625_v1 }
 0x303   :  { %v745_v10 = vpop.f32.mrf.mxu1 }
 0x305   :  { %v5068_v3 = vpop.f32.mrf.mxu1 }
 0x389   :  { %v832_v4 = vpop.f32.mrf.mxu0 }
 0x38a   :  { %v833_v6 = vadd.f32 %v832_v4, %v745_v10  ;;  %v4835_v4 = vld [vmem:[%s7599_s1 + $0x3c] sm:$0xf] }
 0x38b   :  { %v5095_v7 = vpop.f32.mrf.mxu0 }
 0x38c   :  { %v840_v11 = vadd.f32 %v838_v0, %v833_v6  ;;  %v5632_v7 = vmov 81  }
 0x38d   :  { %5299 = vset.pattern.permute.xlu0 %v5632_v7  ;;  %5300 = vset.pattern.permute.xlu1 %v5632_v7 }
 0x38e   :  { %v845_v2 = vadd.f32 %v843_v12, %v840_v11 }
 0x390   :  { %v4825_v13 = vmul.f32 -1.442695, %v845_v2 }
 0x392   :  { %5349 = vpow2.f32 %v4825_v13 }
 0x39f   :  { %v5350_v14 = vpop.eup %5349 }
 0x3a0   :  { %v849_v16 = vadd.f32 1.0, %v5350_v14 }
 0x3a2   :  { %5351 = vrcp.f32 %v849_v16 }
 0x3af   :  { %v5352_v44 = vpop.eup %5351 }
 0x3b0   :  { %v855_v17 = vmul.f32 %v5352_v44, %v853_v18  ;;  %v862_v23 = vsub.f32 1.0, %v5352_v44  ;;  %v868_v25 = vmul.f32 0.0, %v5352_v44 }
 0x3b2   :  { %857 = vrot.lane.b32.xlu1 %v855_v17, %s5631_s30 }
 0x424   :  { %v858_v19 = vpop.permute.xlu1 %857 }
 0x425   :  { %v860_v21 = vadd.f32 %v858_v19, %v840_v11 }
 0x427   :  { %5353 = vtanh.f32 %v860_v21 }
 0x434   :  { %v5354_v22 = vpop.eup %5353 }
 0x435   :  { %864 = vrot.lane.b32.xlu0 %v5354_v22, %s5629_s15 }
 0x4a7   :  { %v865_v24 = vpop.permute.xlu0 %864 }
 0x4a8   :  { %v867_v26 = vmul.f32 %v865_v24, %v862_v23 }
 0x4aa   :  { %v6021_v27 = vadd.f32 %v868_v25, %v867_v26 }
 0x4ac   :  { %5101 = vmatmul.mubr.msk.f32.vlgmr.msra.gmra.mxu1 %vm46_vm13, %v6021_v27 }
 0x4ad   :  { %5104 = vmatpush3.msra.mxu1 %v5893_v8  ;;  %5111 = vmatprep.mubr.msk.f32.mxu1 %vm5626_vm0, %v5625_v1  ;;  %v6038_v8 = vld [vmem:[%s7598_s0 + $0x8] sm:$0xff] }
 0x4ae   :  { %5105 = vmatprep.subr.mxu1 %v5625_v1 }
 0x4af   :  { %5106 = vmatpush3.msra.mxu1 %v5904_v58 }
 0x4b0   :  { %5107 = vmatprep.subr.mxu1 %v5625_v1 }
 0x4b1   :  { %5108 = vmatpush3.msra.mxu1 %v5915_v60 }
 0x4b2   :  { %5109 = vmatprep.subr.mxu1 %v5625_v1 }
 0x4b3   :  { %5110 = vmatpush3.msra.mxu1 %v5927_v63 }
 0x4b4   :  { %5114 = vmatprep.subr.mxu1 %v5625_v1 }
 0x56c   :  { %v6040_v29 = vpop.f32.mrf.mxu1 }
 0x56d   :  { %v962_v58 = vadd.f32 %v6038_v8, %v6040_v29 }
 0x56e   :  { %v5102_v55 = vpop.f32.mrf.mxu1 }
 0x56f   :  { %v973_v28 = vcombine.high %v962_v58, %v962_v58  ;;  %v980_v60 = vrot.slane %v962_v58, %v5729_v9 }
 0x571   :  { %v987_v30 = vrot.slane %v973_v28, %v5729_v9  ;;  %v988_v31 = vcombine.high %v980_v60, %v980_v60  ;;  %v996_v63 = vrot.slane %v980_v60, %v5729_v9 }
 0x573   :  { %v989_v5 = vcombine.high %v987_v30, %v987_v30  ;;  %v1025_v33 = vrot.slane %v996_v63, %v5736_v15  ;;  %v1010_v35 = vrot.slane %v988_v31, %v5729_v9  ;;  %v1018_v36 = vcombine.high %v996_v63, %v996_v63 }
 0x574   :  { %v1003_v38 = vrot.slane %v987_v30, %v5729_v9 }
 0x575   :  { %v1062_v41 = vmul.f32 %v4828_v32, %v1025_v33  ;;  %v1029_v43 = vrot.slane %v1010_v35, %v5736_v15  ;;  %v1033_v45 = vrot.slane %v1018_v36, %v5736_v15  ;;  %v1020_v46 = vcombine.high %v1010_v35, %v1010_v35 }
 0x576   :  { %v1017_v42 = vrot.slane %v989_v5, %v5729_v9  ;;  %v1041_v39 = vrot.slane %v1003_v38, %v5736_v15  ;;  %v1019_v20 = vcombine.high %v1003_v38, %v1003_v38  ;;  %v5541_v5 = vld [vmem:[%s7598_s0] sm:$0xff]  ;;  %v5633_v35 = vmov 0  }
 0x577   :  { %1102 = vrot.lane.b32.xlu1 %v1062_v41, %s5628_s29  ;;  %v1063_v34 = vmul.f32 %v4829_v37, %v1029_v43  ;;  %v1037_v50 = vrot.slane %v1020_v46, %v5736_v15  ;;  %v1064_v51 = vmul.f32 %v4830_v47, %v1033_v45  ;;  %v1070_v12 = vsel %vm227_vm1, %v1062_v41, 0.0 }
 0x578   :  { %v1045_v53 = vrot.slane %v1017_v42, %v5736_v15  ;;  %v1021_v54 = vcombine.high %v1017_v42, %v1017_v42  ;;  %v1066_v57 = vmul.f32 %v4832_v52, %v1041_v39  ;;  %v1049_v59 = vrot.slane %v1019_v20, %v5736_v15 }
 0x579   :  { %1104 = vrot.lane.b32.xlu0 %v1063_v34, %s5628_s29  ;;  %v1065_v48 = vmul.f32 %v4831_v49, %v1037_v50  ;;  %v1073_v11 = vsel %vm227_vm1, %v1063_v34, 0.0  ;;  %v1076_v2 = vsel %vm227_vm1, %v1064_v51, 0.0  ;;  %v875_v33 = vsub.f32 1.0, %v5541_v5 }
 0x57a   :  { %v1067_v10 = vmul.f32 %v4833_v56, %v1045_v53  ;;  %v1053_v3 = vrot.slane %v1021_v54, %v5736_v15  ;;  %v1068_v6 = vmul.f32 %v4834_v61, %v1049_v59  ;;  %v1082_v14 = vsel %vm227_vm1, %v1066_v57, 0.0 }
 0x57b   :  { %1106 = vrot.lane.b32.xlu1 %v1064_v51, %s5628_s29  ;;  %v1079_v13 = vsel %vm227_vm1, %v1065_v48, 0.0 }
 0x57c   :  { %v1069_v0 = vmul.f32 %v4835_v4, %v1053_v3  ;;  %v1085_v16 = vsel %vm227_vm1, %v1067_v10, 0.0  ;;  %v1088_v22 = vsel %vm227_vm1, %v1068_v6, 0.0 }
 0x57d   :  { %1108 = vrot.lane.b32.xlu0 %v1065_v48, %s5628_s29 }
 0x57e   :  { %v1091_v25 = vsel %vm227_vm1, %v1069_v0, 0.0 }
 0x57f   :  { %1110 = vrot.lane.b32.xlu1 %v1066_v57, %s5628_s29 }
 0x581   :  { %1112 = vrot.lane.b32.xlu0 %v1067_v10, %s5628_s29 }
 0x583   :  { %1114 = vrot.lane.b32.xlu1 %v1068_v6, %s5628_s29 }
 0x585   :  { %1116 = vrot.lane.b32.xlu0 %v1069_v0, %s5628_s29 }
 0x5a4   :  { %1074 = vadd.xlane.f32.xlu0 %v1073_v11 }
 0x5a7   :  { %1071 = vadd.xlane.f32.xlu1 %v1070_v12 }
 0x5a8   :  { %1077 = vadd.xlane.f32.xlu0 %v1076_v2 }
 0x5ac   :  { %1080 = vadd.xlane.f32.xlu0 %v1079_v13 }
 0x5b0   :  { %1083 = vadd.xlane.f32.xlu0 %v1082_v14 }
 0x5b4   :  { %1086 = vadd.xlane.f32.xlu0 %v1085_v16 }
 0x5e9   :  { %v1103_v44 = vpop.permute.xlu1 %1102 }
 0x5ea   :  { %v1126_v18 = vsel %vm227_vm1, %v1103_v44, 0.0 }
 0x5eb   :  { %v1105_v17 = vpop.permute.xlu0 %1104  ;;  %1127 = vadd.xlane.f32.xlu0 %v1126_v18 }
 0x5ec   :  { %v1129_v19 = vsel %vm227_vm1, %v1105_v17, 0.0 }
 0x5ed   :  { %v1107_v21 = vpop.permute.xlu1 %1106  ;;  %1130 = vadd.xlane.f32.xlu1 %v1129_v19 }
 0x5ee   :  { %v1132_v23 = vsel %vm227_vm1, %v1107_v21, 0.0 }
 0x5ef   :  { %1089 = vadd.xlane.f32.xlu0 %v1088_v22  ;;  %v1109_v26 = vpop.permute.xlu0 %1108 }
 0x5f0   :  { %v1135_v55 = vsel %vm227_vm1, %v1109_v26, 0.0 }
 0x5f1   :  { %v1111_v24 = vpop.permute.xlu1 %1110  ;;  %1133 = vadd.xlane.f32.xlu1 %v1132_v23 }
 0x5f2   :  { %v1138_v58 = vsel %vm227_vm1, %v1111_v24, 0.0 }
 0x5f3   :  { %1092 = vadd.xlane.f32.xlu0 %v1091_v25  ;;  %v1113_v28 = vpop.permute.xlu0 %1112 }
 0x5f4   :  { %v1141_v60 = vsel %vm227_vm1, %v1113_v28, 0.0 }
 0x5f5   :  { %1139 = vadd.xlane.f32.xlu1 %v1138_v58  ;;  %v1115_v30 = vpop.permute.xlu1 %1114 }
 0x5f6   :  { %v1144_v31 = vsel %vm227_vm1, %v1115_v30, 0.0 }
 0x5f7   :  { %v1117_v63 = vpop.permute.xlu0 %1116 }
 0x5f8   :  { %v1147_v32 = vsel %vm227_vm1, %v1117_v63, 0.0 }
 0x5f9   :  { %1136 = vadd.xlane.f32.xlu1 %v1135_v55 }
 0x5fd   :  { %1142 = vadd.xlane.f32.xlu1 %v1141_v60 }
 0x601   :  { %1145 = vadd.xlane.f32.xlu1 %v1144_v31 }
 0x605   :  { %1148 = vadd.xlane.f32.xlu1 %v1147_v32 }
 0x609   :  { %878 = vperm.xlu0 %5299, %v875_v33  }
 0x60d   :  { %5303 = vset.pattern.permute.xlu0 %v5633_v35 }
 0x616   :  { %871 = vperm.xlu1 %5300, %v5541_v5  }
 0x61a   :  { %5301 = vset.pattern.permute.xlu1 %v5633_v35 }
 0x62d   :  { %v1075_v36 = vpop.xlane.xlu0 %1074 }
 0x630   :  { %v1072_v45 = vpop.xlane.xlu1 %1071 }
 0x631   :  { %v1078_v37 = vpop.xlane.xlu0 %1077 }
 0x635   :  { %v1081_v38 = vpop.xlane.xlu0 %1080 }
 0x639   :  { %v1084_v41 = vpop.xlane.xlu0 %1083 }
 0x63d   :  { %v1087_v43 = vpop.xlane.xlu0 %1086 }
 0x674   :  { %v1128_v46 = vpop.xlane.xlu0 %1127 }
 0x675   :  { %v1150_v47 = vsel %vm308_vm2, %v1072_v45, %v1128_v46 }
 0x676   :  { %v1158_v34 = vmul.f32 0.25, %v1150_v47  ;;  %v1131_v50 = vpop.xlane.xlu1 %1130 }
 0x677   :  { %v1151_v42 = vsel %vm308_vm2, %v1075_v36, %v1131_v50 }
 0x678   :  { %v1166_v49 = vsel %vm325_vm3, %v1158_v34, -inf  ;;  %v1159_v51 = vmul.f32 0.25, %v1151_v42  ;;  %v1090_v5 = vpop.xlane.xlu0 %1089 }
 0x679   :  { %v1167_v39 = vrot.slane %v1166_v49, 4 }
 0x67a   :  { %v1173_v20 = vsel %vm325_vm3, %v1159_v51, -inf  ;;  %v1134_v52 = vpop.xlane.xlu1 %1133 }
 0x67b   :  { %v1168_v48 = vmax.f32 %v1166_v49, %v1167_v39  ;;  %v1174_v53 = vrot.slane %v1173_v20, 4  ;;  %v1152_v54 = vsel %vm308_vm2, %v1078_v37, %v1134_v52 }
 0x67c   :  { %v1160_v56 = vmul.f32 0.25, %v1152_v54 }
 0x67d   :  { %v1169_v57 = vrot.slane %v1168_v48, 2  ;;  %v1175_v59 = vmax.f32 %v1173_v20, %v1174_v53 }
 0x67e   :  { %v1180_v61 = vsel %vm325_vm3, %v1160_v56, -inf  ;;  %v1140_v10 = vpop.xlane.xlu1 %1139 }
 0x67f   :  { %v1170_v3 = vmax.f32 %v1168_v48, %v1169_v57  ;;  %v1176_v4 = vrot.slane %v1175_v59, 2  ;;  %v1181_v6 = vrot.slane %v1180_v61, 4  ;;  %v1154_v0 = vsel %vm308_vm2, %v1084_v41, %v1140_v10  ;;  %v1093_v48 = vpop.xlane.xlu0 %1092 }
 0x680   :  { %v1162_v11 = vmul.f32 0.25, %v1154_v0 }
 0x681   :  { %v1171_v12 = vrot.slane %v1170_v3, 1  ;;  %v1177_v2 = vmax.f32 %v1175_v59, %v1176_v4  ;;  %v1182_v13 = vmax.f32 %v1180_v61, %v1181_v6 }
 0x682   :  { %v1194_v14 = vsel %vm325_vm3, %v1162_v11, -inf  ;;  %v1137_v16 = vpop.xlane.xlu1 %1136 }
 0x683   :  { %v1172_v44 = vmax.f32 %v1170_v3, %v1171_v12  ;;  %v1178_v18 = vrot.slane %v1177_v2, 1  ;;  %v1183_v17 = vrot.slane %v1182_v13, 2  ;;  %v1195_v19 = vrot.slane %v1194_v14, 4 }
 0x684   :  { %v1153_v21 = vsel %vm308_vm2, %v1081_v38, %v1137_v16 }
 0x685   :  { %v1222_v22 = vsub.f32 %v1158_v34, %v1172_v44  ;;  %v1179_v23 = vmax.f32 %v1177_v2, %v1178_v18  ;;  %v1184_v24 = vmax.f32 %v1182_v13, %v1183_v17  ;;  %v1196_v25 = vmax.f32 %v1194_v14, %v1195_v19 }
 0x686   :  { %v1161_v26 = vmul.f32 0.25, %v1153_v21  ;;  %v1143_v58 = vpop.xlane.xlu1 %1142 }
 0x687   :  { %v1230_v55 = vmul.f32 1.442695, %v1222_v22  ;;  %v1223_v28 = vsub.f32 %v1159_v51, %v1179_v23  ;;  %v1185_v60 = vrot.slane %v1184_v24, 1  ;;  %v1197_v30 = vrot.slane %v1196_v25, 2 }
 0x688   :  { %v1187_v31 = vsel %vm325_vm3, %v1161_v26, -inf  ;;  %v1155_v63 = vsel %vm308_vm2, %v1087_v43, %v1143_v58 }
 0x689   :  { %5355 = vpow2.f32 %v1230_v55  ;;  %v1232_v32 = vmul.f32 1.442695, %v1223_v28  ;;  %v1186_v33 = vmax.f32 %v1184_v24, %v1185_v60  ;;  %v1198_v36 = vmax.f32 %v1196_v25, %v1197_v30 }
 0x68a   :  { %v1188_v37 = vrot.slane %v1187_v31, 4  ;;  %v1163_v38 = vmul.f32 0.25, %v1155_v63  ;;  %v1146_v41 = vpop.xlane.xlu1 %1145 }
 0x68b   :  { %5357 = vpow2.f32 %v1232_v32  ;;  %v1224_v45 = vsub.f32 %v1160_v56, %v1186_v33  ;;  %v1199_v46 = vrot.slane %v1198_v36, 1  ;;  %v1156_v47 = vsel %vm308_vm2, %v1090_v5, %v1146_v41 }
 0x68c   :  { %v1189_v34 = vmax.f32 %v1187_v31, %v1188_v37  ;;  %v1201_v50 = vsel %vm325_vm3, %v1163_v38, -inf  ;;  %v1164_v42 = vmul.f32 0.25, %v1156_v47 }
 0x68d   :  { %v1234_v49 = vmul.f32 1.442695, %v1224_v45  ;;  %v1200_v51 = vmax.f32 %v1198_v36, %v1199_v46  ;;  %v1202_v43 = vrot.slane %v1201_v50, 4 }
 0x68e   :  { %v1190_v39 = vrot.slane %v1189_v34, 2  ;;  %v1208_v20 = vsel %vm325_vm3, %v1164_v42, -inf  ;;  %v1149_v52 = vpop.xlane.xlu1 %1148 }
 0x68f   :  { %5359 = vpow2.f32 %v1234_v49  ;;  %v1226_v53 = vsub.f32 %v1162_v11, %v1200_v51  ;;  %v1203_v54 = vmax.f32 %v1201_v50, %v1202_v43  ;;  %v1209_v57 = vrot.slane %v1208_v20, 4 }
 0x690   :  { %v1191_v56 = vmax.f32 %v1189_v34, %v1190_v39  ;;  %v1157_v59 = vsel %vm308_vm2, %v1093_v48, %v1149_v52 }
 0x691   :  { %v1238_v61 = vmul.f32 1.442695, %v1226_v53  ;;  %v1204_v10 = vrot.slane %v1203_v54, 2  ;;  %v1210_v3 = vmax.f32 %v1208_v20, %v1209_v57  ;;  %v1165_v4 = vmul.f32 0.25, %v1157_v59 }
 0x692   :  { %v1192_v6 = vrot.slane %v1191_v56, 1 }
 0x693   :  { %5361 = vpow2.f32 %v1238_v61  ;;  %v1205_v0 = vmax.f32 %v1203_v54, %v1204_v10  ;;  %v1211_v12 = vrot.slane %v1210_v3, 2  ;;  %v1215_v2 = vsel %vm325_vm3, %v1165_v4, -inf }
 0x694   :  { %v1193_v13 = vmax.f32 %v1191_v56, %v1192_v6  ;;  %v1216_v14 = vrot.slane %v1215_v2, 4 }
 0x695   :  { %v1206_v16 = vrot.slane %v1205_v0, 1  ;;  %v1212_v44 = vmax.f32 %v1210_v3, %v1211_v12 }
 0x696   :  { %v6129_v11 = vpop.eup %5355  ;;  %v1225_v18 = vsub.f32 %v1161_v26, %v1193_v13  ;;  %v1217_v17 = vmax.f32 %v1215_v2, %v1216_v14 }
 0x697   :  { %v1246_v19 = vsel %vm325_vm3, %v6129_v11, 0.0  ;;  %v1207_v21 = vmax.f32 %v1205_v0, %v1206_v16  ;;  %v1213_v22 = vrot.slane %v1212_v44, 1 }
 0x698   :  { %v6133_v23 = vpop.eup %5357  ;;  %v1247_v24 = vrot.slane %v1246_v19, 4  ;;  %v1236_v25 = vmul.f32 1.442695, %v1225_v18  ;;  %v1218_v58 = vrot.slane %v1217_v17, 2 }
 0x699   :  { %v1253_v55 = vsel %vm325_vm3, %v6133_v23, 0.0  ;;  %v1227_v28 = vsub.f32 %v1163_v38, %v1207_v21  ;;  %v1214_v60 = vmax.f32 %v1212_v44, %v1213_v22 }
 0x69a   :  { %v1248_v30 = vadd.f32 %v1247_v24, %v1246_v19  ;;  %v1254_v31 = vrot.slane %v1253_v55, 4  ;;  %5363 = vpow2.f32 %v1236_v25  ;;  %v1219_v26 = vmax.f32 %v1217_v17, %v1218_v58 }
 0x69b   :  { %v1240_v63 = vmul.f32 1.442695, %v1227_v28  ;;  %v1228_v32 = vsub.f32 %v1164_v42, %v1214_v60 }
 0x69c   :  { %v6137_v5 = vpop.eup %5359  ;;  %v1249_v33 = vrot.slane %v1248_v30, 2  ;;  %v1255_v36 = vadd.f32 %v1254_v31, %v1253_v55  ;;  %v1220_v37 = vrot.slane %v1219_v26, 1 }
 0x69d   :  { %v1260_v41 = vsel %vm325_vm3, %v6137_v5, 0.0  ;;  %5365 = vpow2.f32 %v1240_v63  ;;  %v1242_v45 = vmul.f32 1.442695, %v1228_v32 }
 0x69e   :  { %v1256_v46 = vrot.slane %v1255_v36, 2  ;;  %v1261_v47 = vrot.slane %v1260_v41, 4  ;;  %v1221_v38 = vmax.f32 %v1219_v26, %v1220_v37  ;;  %v1250_v34 = vadd.f32 %v1249_v33, %v1248_v30 }
 0x69f   :  { %5367 = vpow2.f32 %v1242_v45 }
 0x6a0   :  { %v6141_v50 = vpop.eup %5361  ;;  %v1262_v49 = vadd.f32 %v1261_v47, %v1260_v41  ;;  %v1229_v51 = vsub.f32 %v1165_v4, %v1221_v38  ;;  %v1251_v42 = vrot.slane %v1250_v34, 1  ;;  %v1257_v43 = vadd.f32 %v1256_v46, %v1255_v36  ;;  %v5542_v47 = vld [vmem:[%s7603_s5] ss:$0 sm:$0xff] }
 0x6a1   :  { %v1274_v39 = vsel %vm325_vm3, %v6141_v50, 0.0 }
 0x6a2   :  { %v1263_v20 = vrot.slane %v1262_v49, 2  ;;  %v1275_v52 = vrot.slane %v1274_v39, 4  ;;  %v1244_v48 = vmul.f32 1.442695, %v1229_v51  ;;  %v1252_v53 = vadd.f32 %v1251_v42, %v1250_v34 }
 0x6a3   :  { %v1258_v54 = vrot.slane %v1257_v43, 1 }
 0x6a4   :  { %v1276_v57 = vadd.f32 %v1275_v52, %v1274_v39  ;;  %5369 = vpow2.f32 %v1244_v48  ;;  %v1264_v56 = vadd.f32 %v1263_v20, %v1262_v49 }
 0x6a5   :  { %5371 = vrcp.f32 %v1252_v53  ;;  %v1259_v59 = vadd.f32 %v1258_v54, %v1257_v43 }
 0x6a6   :  { %v1277_v61 = vrot.slane %v1276_v57, 2  ;;  %v1265_v10 = vrot.slane %v1264_v56, 1 }
 0x6a7   :  { %v6145_v3 = vpop.eup %5363  ;;  %5373 = vrcp.f32 %v1259_v59 }
 0x6a8   :  { %v1267_v4 = vsel %vm325_vm3, %v6145_v3, 0.0  ;;  %v1266_v6 = vadd.f32 %v1265_v10, %v1264_v56  ;;  %v1278_v0 = vadd.f32 %v1277_v61, %v1276_v57 }
 0x6a9   :  { %v1268_v12 = vrot.slane %v1267_v4, 4 }
 0x6aa   :  { %v5366_v2 = vpop.eup %5365  ;;  %5375 = vrcp.f32 %v1266_v6  ;;  %v1279_v13 = vrot.slane %v1278_v0, 1 }
 0x6ab   :  { %v1269_v14 = vadd.f32 %v1268_v12, %v1267_v4  ;;  %v1281_v16 = vsel %vm325_vm3, %v5366_v2, 0.0 }
 0x6ac   :  { %v5368_v44 = vpop.eup %5367  ;;  %v1282_v18 = vrot.slane %v1281_v16, 4  ;;  %v1280_v17 = vadd.f32 %v1279_v13, %v1278_v0 }
 0x6ad   :  { %v1270_v19 = vrot.slane %v1269_v14, 2  ;;  %v1288_v21 = vsel %vm325_vm3, %v5368_v44, 0.0 }
 0x6ae   :  { %v1283_v22 = vadd.f32 %v1282_v18, %v1281_v16  ;;  %v1289_v24 = vrot.slane %v1288_v21, 4  ;;  %5377 = vrcp.f32 %v1280_v17 }
 0x6af   :  { %v1271_v25 = vadd.f32 %v1270_v19, %v1269_v14 }
 0x6b0   :  { %v1284_v58 = vrot.slane %v1283_v22, 2  ;;  %v1290_v55 = vadd.f32 %v1289_v24, %v1288_v21 }
 0x6b1   :  { %v5370_v28 = vpop.eup %5369  ;;  %v1272_v60 = vrot.slane %v1271_v25, 1 }
 0x6b2   :  { %v5372_v30 = vpop.eup %5371  ;;  %v1291_v31 = vrot.slane %v1290_v55, 2  ;;  %v1295_v26 = vsel %vm325_vm3, %v5370_v28, 0.0  ;;  %v1285_v63 = vadd.f32 %v1284_v58, %v1283_v22 }
 0x6b3   :  { %v1296_v32 = vrot.slane %v1295_v26, 4  ;;  %v1310_v33 = vmul.f32 %v5372_v30, %v6129_v11  ;;  %v1273_v36 = vadd.f32 %v1272_v60, %v1271_v25  ;;  %v4837_v30 = vld [vmem:[%s7600_s2 + $0x24] sm:$0xf] }
 0x6b4   :  { %v5374_v37 = vpop.eup %5373  ;;  %v1286_v41 = vrot.slane %v1285_v63, 1  ;;  %v1292_v45 = vadd.f32 %v1291_v31, %v1290_v55  ;;  %v6180_v55 = vpop.permute.xlu1 %871 }
 0x6b5   :  { %v1297_v46 = vadd.f32 %v1296_v32, %v1295_v26  ;;  %v1318_v38 = vmul.f32 %v5542_v47, %v1310_v33  ;;  %v1311_v34 = vmul.f32 %v5374_v37, %v6133_v23  ;;  %5379 = vrcp.f32 %v1273_v36  ;;  %v4838_v33 = vld [vmem:[%s7600_s2 + $0x28] sm:$0xf] }
 0x6b6   :  { %v1287_v49 = vadd.f32 %v1286_v41, %v1285_v63  ;;  %v1293_v51 = vrot.slane %v1292_v45, 1 }
 0x6b7   :  { %v5376_v42 = vpop.eup %5375  ;;  %v1298_v43 = vrot.slane %v1297_v46, 2  ;;  %v1326_v39 = vsel %vm325_vm3, %v1318_v38, 0.0  ;;  %v1319_v11 = vmul.f32 %v5542_v47, %v1311_v34  ;;  %v4840_v34 = vld [vmem:[%s7600_s2 + $0x30] sm:$0xf] }
 0x6b8   :  { %1327 = vadd.xlane.f32.xlu1 %v1326_v39  ;;  %v1312_v20 = vmul.f32 %v5376_v42, %v6137_v5  ;;  %5381 = vrcp.f32 %v1287_v49  ;;  %v1294_v52 = vadd.f32 %v1293_v51, %v1292_v45 }
 0x6b9   :  { %v1299_v48 = vadd.f32 %v1298_v43, %v1297_v46  ;;  %v1329_v54 = vsel %vm325_vm3, %v1319_v11, 0.0 }
 0x6ba   :  { %5383 = vrcp.f32 %v1294_v52  ;;  %v1320_v57 = vmul.f32 %v5542_v47, %v1312_v20 }
 0x6bb   :  { %v5378_v53 = vpop.eup %5377  ;;  %v1300_v23 = vrot.slane %v1299_v48, 1 }
 0x6bc   :  { %1330 = vadd.xlane.f32.xlu1 %v1329_v54  ;;  %v1314_v56 = vmul.f32 %v5378_v53, %v6141_v50  ;;  %v1332_v61 = vsel %vm325_vm3, %v1320_v57, 0.0 }
 0x6bd   :  { %v1301_v59 = vadd.f32 %v1300_v23, %v1299_v48  ;;  %v4839_v48 = vld [vmem:[%s7600_s2 + $0x2c] sm:$0xf] }
 0x6be   :  { %v1322_v10 = vmul.f32 %v5542_v47, %v1314_v56 }
 0x6bf   :  { %5385 = vrcp.f32 %v1301_v59 }
 0x6c0   :  { %1333 = vadd.xlane.f32.xlu1 %v1332_v61  ;;  %v1338_v5 = vsel %vm325_vm3, %v1322_v10, 0.0 }
 0x6c2   :  { %v5380_v4 = vpop.eup %5379 }
 0x6c3   :  { %v1313_v6 = vmul.f32 %v5380_v4, %v6145_v3 }
 0x6c4   :  { %1339 = vadd.xlane.f32.xlu1 %v1338_v5 }
 0x6c5   :  { %v5382_v0 = vpop.eup %5381  ;;  %v1321_v12 = vmul.f32 %v5542_v47, %v1313_v6  ;;  %v4841_v6 = vld [vmem:[%s7600_s2 + $0x34] sm:$0xf] }
 0x6c6   :  { %v1315_v13 = vmul.f32 %v5382_v0, %v5366_v2  ;;  %v4844_v2 = vld [vmem:[%s7601_s3 + $0x40] sm:$0xff] }
 0x6c7   :  { %v5384_v14 = vpop.eup %5383  ;;  %v1335_v16 = vsel %vm325_vm3, %v1321_v12, 0.0 }
 0x6c8   :  { %1336 = vadd.xlane.f32.xlu0 %v1335_v16  ;;  %v1323_v50 = vmul.f32 %v5542_v47, %v1315_v13  ;;  %v1316_v18 = vmul.f32 %v5384_v14, %v5368_v44  ;;  %v879_v44 = vpop.permute.xlu0 %878  ;;  %v4842_v13 = vld [vmem:[%s7600_s2 + $0x38] sm:$0xf] }
 0x6c9   :  { %v881_v58 = vmul.f32 %v879_v44, %v6021_v27 }
 0x6ca   :  { %v1341_v17 = vsel %vm325_vm3, %v1323_v50, 0.0  ;;  %v1324_v19 = vmul.f32 %v5542_v47, %v1316_v18 }
 0x6cb   :  { %1342 = vadd.xlane.f32.xlu1 %v1341_v17 }
 0x6cc   :  { %v5386_v21 = vpop.eup %5385  ;;  %v1344_v22 = vsel %vm325_vm3, %v1324_v19, 0.0 }
 0x6cd   :  { %1345 = vadd.xlane.f32.xlu0 %v1344_v22  ;;  %v1317_v24 = vmul.f32 %v5386_v21, %v5370_v28  ;;  %v4836_v28 = vld [vmem:[%s7600_s2 + $0x20] sm:$0xf] }
 0x6cf   :  { %v1325_v3 = vmul.f32 %v5542_v47, %v1317_v24 }
 0x6d1   :  { %v1347_v25 = vsel %vm325_vm3, %v1325_v3, 0.0 }
 0x6d2   :  { %1348 = vadd.xlane.f32.xlu0 %v1347_v25 }
 0x6dc   :  { %1427 = vperm.xlu1 %5301, %v4844_v2  }
 0x6e0   :  { %1638 = vrot.lane.b32.xlu1 %v6038_v8, %s5629_s15 }
 0x6e1   :  { %5302 = vset.pattern.permute.xlu1 %v5632_v7 }
 0x6e4   :  { %1643 = vrot.lane.b32.xlu1 %v6040_v29, %s5629_s15 }
 0x6e8   :  { %1653 = vrot.lane.b32.xlu1 %v6040_v29, %s5630_s20  ;;  %883 = vrot.lane.b32.xlu0 %v881_v58, %s5631_s30 }
 0x741   :  { %v1328_v8 = vpop.xlane.xlu1 %1327 }
 0x742   :  { %v1359_v60 = vmul.f32 %v4836_v28, %v1328_v8  ;;  %v6223_v28 = vld [vmem:[%s7605_s7] ss:$0 sm:$0xff] }
 0x744   :  { %v1367_v31 = vsel %vm532_vm4, %v1359_v60, 0.0  ;;  %v4843_v60 = vld [vmem:[%s7600_s2 + $0x3c] sm:$0xf] }
 0x745   :  { %v1368_v26 = vrot.slane %v1367_v31, 4  ;;  %v1331_v63 = vpop.xlane.xlu1 %1330 }
 0x746   :  { %v1360_v32 = vmul.f32 %v4837_v30, %v1331_v63 }
 0x747   :  { %v1369_v29 = vadd.f32 %v1368_v26, %v1367_v31 }
 0x748   :  { %v1374_v36 = vsel %vm532_vm4, %v1360_v32, 0.0 }
 0x749   :  { %v1370_v37 = vrot.slane %v1369_v29, 2  ;;  %v1375_v41 = vrot.slane %v1374_v36, 4  ;;  %v1334_v45 = vpop.xlane.xlu1 %1333 }
 0x74a   :  { %v1361_v46 = vmul.f32 %v4838_v33, %v1334_v45 }
 0x74b   :  { %v1371_v47 = vadd.f32 %v1370_v37, %v1369_v29  ;;  %v1376_v38 = vadd.f32 %v1375_v41, %v1374_v36 }
 0x74c   :  { %v1381_v49 = vsel %vm532_vm4, %v1361_v46, 0.0 }
 0x74d   :  { %v1377_v51 = vrot.slane %v1376_v38, 2  ;;  %v1382_v42 = vrot.slane %v1381_v49, 4  ;;  %v1340_v43 = vpop.xlane.xlu1 %1339  ;;  %v1372_v39 = vrot.slane %v1371_v47, 1 }
 0x74e   :  { %v1363_v11 = vmul.f32 %v4840_v34, %v1340_v43 }
 0x74f   :  { %v1378_v20 = vadd.f32 %v1377_v51, %v1376_v38  ;;  %v1383_v52 = vadd.f32 %v1382_v42, %v1381_v49  ;;  %v6201_v59 = vadd.f32 %v1372_v39, %v1371_v47  ;;  %v874_v47 = vmul.f32 %v6180_v55, %v6021_v27 }
 0x750   :  { %v1395_v53 = vsel %vm532_vm4, %v1363_v11, 0.0 }
 0x751   :  { %v1379_v54 = vrot.slane %v1378_v20, 1  ;;  %v1384_v57 = vrot.slane %v1383_v52, 2  ;;  %v1396_v23 = vrot.slane %v1395_v53, 4  ;;  %v1337_v56 = vpop.xlane.xlu0 %1336  ;;  %v1432_v18 = vmul.f32 %v5969_v40, %v6201_v59 }
 0x752   :  { %v1362_v61 = vmul.f32 %v4839_v48, %v1337_v56 }
 0x753   :  { %v6203_v10 = vadd.f32 %v1379_v54, %v1378_v20  ;;  %v1385_v4 = vadd.f32 %v1384_v57, %v1383_v52  ;;  %v1397_v5 = vadd.f32 %v1396_v23, %v1395_v53 }
 0x754   :  { %v1388_v0 = vsel %vm532_vm4, %v1362_v61, 0.0  ;;  %v1343_v12 = vpop.xlane.xlu1 %1342 }
 0x755   :  { %v1433_v14 = vmul.f32 %v5969_v40, %v6203_v10  ;;  %v1386_v16 = vrot.slane %v1385_v4, 1  ;;  %v1398_v50 = vrot.slane %v1397_v5, 2  ;;  %v1389_v17 = vrot.slane %v1388_v0, 4 }
 0x756   :  { %v1364_v19 = vmul.f32 %v4841_v6, %v1343_v12  ;;  %v1346_v21 = vpop.xlane.xlu0 %1345  ;;  %v6251_v6 = vld [vmem:[%s7608_s10 + $0x58] sm:$0xff] }
 0x757   :  { %v1448_v22 = vrot.slane %v1433_v14, 7  ;;  %v6216_v24 = vadd.f32 %v1386_v16, %v1385_v4  ;;  %v1399_v3 = vadd.f32 %v1398_v50, %v1397_v5  ;;  %v1365_v25 = vmul.f32 %v4842_v13, %v1346_v21  ;;  %v6261_v16 = vld [vmem:[%s7608_s10 + $0x50] sm:$0xff] }
 0x758   :  { %v1390_v2 = vadd.f32 %v1389_v17, %v1388_v0  ;;  %v1402_v44 = vsel %vm532_vm4, %v1364_v19, 0.0  ;;  %v1428_v20 = vpop.permute.xlu1 %1427 }
 0x759   :  { %v1449_v58 = vsel %vm612_vm5, %v1448_v22, %v1432_v18  ;;  %v1434_v40 = vmul.f32 %v6223_v28, %v6216_v24  ;;  %v1400_v8 = vrot.slane %v1399_v3, 1  ;;  %v1403_v31 = vrot.slane %v1402_v44, 4  ;;  %v6271_v22 = vld [vmem:[%s7608_s10 + $0x48] sm:$0xff] }
 0x75a   :  { %v1391_v30 = vrot.slane %v1390_v2, 2  ;;  %v1409_v26 = vsel %vm532_vm4, %v1365_v25, 0.0 }
 0x75b   :  { %v1450_v63 = vrot.slane %v1434_v40, 6  ;;  %v1410_v32 = vrot.slane %v1409_v26, 4  ;;  %v1349_v29 = vpop.xlane.xlu0 %1348  ;;  %v1404_v36 = vadd.f32 %v1403_v31, %v1402_v44  ;;  %v6231_v41 = vadd.f32 %v1400_v8, %v1399_v3  ;;  %v6288_v8 = vld [vmem:[%s7608_s10 + $0x38] sm:$0xff]  ;;  %v6305_v31 = vld [vmem:[%s7608_s10 + $0x28] sm:$0xff] }
 0x75c   :  { %v1392_v33 = vadd.f32 %v1391_v30, %v1390_v2  ;;  %v1366_v37 = vmul.f32 %v4843_v60, %v1349_v29  ;;  %v6278_v2 = vld [vmem:[%s7608_s10 + $0x40] sm:$0xff]  ;;  %v6295_v30 = vld [vmem:[%s7608_s10 + $0x30] sm:$0xff] }
 0x75d   :  { %v1411_v45 = vadd.f32 %v1410_v32, %v1409_v26  ;;  %v1451_v46 = vsel %vm615_vm6, %v1450_v63, %v1449_v58  ;;  %v1405_v34 = vrot.slane %v1404_v36, 2  ;;  %v1436_v48 = vmul.f32 %v6223_v28, %v6231_v41  ;;  %v6315_v63 = vld [vmem:[%s7608_s10 + $0x20] sm:$0xff] }
 0x75e   :  { %v1393_v38 = vrot.slane %v1392_v33, 1  ;;  %v1416_v49 = vsel %vm532_vm4, %v1366_v37, 0.0  ;;  %v1558_v26 = vsel %vm612_vm5, %v6203_v10, %v6201_v59  ;;  %v6332_v59 = vld [vmem:[%s7608_s10 + $0x10] sm:$0xff] }
 0x75f   :  { %v1412_v51 = vrot.slane %v1411_v45, 2  ;;  %v1417_v42 = vrot.slane %v1416_v49, 4  ;;  %v884_v43 = vpop.permute.xlu0 %883  ;;  %v1406_v11 = vadd.f32 %v1405_v34, %v1404_v36  ;;  %v1454_v0 = vrot.slane %v1436_v48, 4  ;;  %v5559_v34 = vld [vmem:[%s7604_s6] sm:$0xff] }
 0x760   :  { %v1394_v39 = vadd.f32 %v1393_v38, %v1392_v33  ;;  %v6238_v52 = vsel %vm46_vm13, %v874_v47, %v884_v43  ;;  %v1559_v32 = vsel %vm615_vm6, %v6216_v24, %v1558_v26  ;;  %v6325_v33 = vld [vmem:[%s7608_s10 + $0x18] sm:$0xff]  ;;  %v6341_v24 = vld [vmem:[%s7608_s10 + $0x8] sm:$0xff]  ;;  %v5557_v47 = vld [vmem:[%s7604_s6 + $0x10] sm:$0xff] }
 0x761   :  { %v1413_v53 = vadd.f32 %v1412_v51, %v1411_v45  ;;  %v1418_v54 = vadd.f32 %v1417_v42, %v1416_v49  ;;  %v6243_v55 = vmul.f32 %v1428_v20, %v6238_v52  ;;  %v1407_v23 = vrot.slane %v1406_v11, 1  ;;  %v6350_v45 = vld [vmem:[%s7608_s10] sm:$0xff]  ;;  %v5558_v38 = vld [vmem:[%s7604_s6 + $0x8] sm:$0xff]  ;;  %v1639_v42 = vpop.permute.xlu1 %1638 }
 0x762   :  { %v1435_v57 = vmul.f32 %v6223_v28, %v1394_v39  ;;  %v1560_v29 = vsel %vm618_vm7, %v1394_v39, %v1559_v32 }
 0x763   :  { %v1414_v56 = vrot.slane %v1413_v53, 1  ;;  %v1419_v61 = vrot.slane %v1418_v54, 2  ;;  %5112 = vmatmul.mubr.msk.f32.vlgmr.msra.gmra.mxu1 %vm644_vm14, %v6243_v55  ;;  %v1408_v5 = vadd.f32 %v1407_v23, %v1406_v11  ;;  %v1561_v10 = vsel %vm621_vm8, %v6231_v41, %v1560_v29 }
 0x764   :  { %v1452_v4 = vrot.slane %v1435_v57, 5  ;;  %5115 = vmatpush3.msra.mxu1 %v6251_v6  ;;  %5138 = vmatprep.mubr.msk.f32.mxu1 %vm5626_vm0, %v5625_v1 }
 0x765   :  { %v1415_v12 = vadd.f32 %v1414_v56, %v1413_v53  ;;  %v1420_v13 = vadd.f32 %v1419_v61, %v1418_v54  ;;  %5116 = vmatprep.subr.mxu1 %v5625_v1  ;;  %v1437_v14 = vmul.f32 %v6223_v28, %v1408_v5  ;;  %v1562_v36 = vsel %vm624_vm9, %v1408_v5, %v1561_v10  ;;  %v1644_v48 = vpop.permute.xlu1 %1643 }
 0x766   :  { %5117 = vmatpush3.msra.mxu1 %v6261_v16  ;;  %v1453_v50 = vsel %vm618_vm7, %v1452_v4, %v1451_v46  ;;  %v5556_v46 = vld [vmem:[%s7604_s6 + $0x18] sm:$0xff] }
 0x767   :  { %v1421_v18 = vrot.slane %v1420_v13, 1  ;;  %5118 = vmatprep.subr.mxu1 %v5625_v1  ;;  %v1438_v17 = vmul.f32 %v6223_v28, %v1415_v12  ;;  %v1455_v19 = vsel %vm621_vm8, %v1454_v0, %v1453_v50  ;;  %v1456_v21 = vrot.slane %v1437_v14, 3 }
 0x768   :  { %5119 = vmatpush3.msra.mxu1 %v6271_v22  ;;  %v1563_v37 = vsel %vm627_vm10, %v1415_v12, %v1562_v36 }
 0x769   :  { %v1422_v3 = vadd.f32 %v1421_v18, %v1420_v13  ;;  %5120 = vmatprep.subr.mxu1 %v5625_v1  ;;  %v1458_v25 = vrot.slane %v1438_v17, 2  ;;  %v1457_v44 = vsel %vm624_vm9, %v1456_v21, %v1455_v19  ;;  %v1654_v61 = vpop.permute.xlu1 %1653 }
 0x76a   :  { %5121 = vmatpush3.msra.mxu1 %v6278_v2 }
 0x76b   :  { %5122 = vmatprep.subr.mxu1 %v5625_v1  ;;  %v1439_v58 = vmul.f32 %v6223_v28, %v1422_v3  ;;  %v1459_v40 = vsel %vm627_vm10, %v1458_v25, %v1457_v44  ;;  %v1564_v41 = vsel %vm630_vm11, %v1422_v3, %v1563_v37  ;;  %v4853_v37 = vld [vmem:[%s7599_s1 + $0x4c] sm:$0xf] }
 0x76c   :  { %5123 = vmatpush3.msra.mxu1 %v6288_v8 }
 0x76d   :  { %5124 = vmatprep.subr.mxu1 %v5625_v1  ;;  %v1460_v60 = vrot.slane %v1439_v58, 1  ;;  %v4850_v58 = vld [vmem:[%s7599_s1 + $0x40] sm:$0xf] }
 0x76e   :  { %5125 = vmatpush3.msra.mxu1 %v6295_v30 }
 0x76f   :  { %5126 = vmatprep.subr.mxu1 %v5625_v1  ;;  %v6300_v28 = vsel %vm630_vm11, %v1460_v60, %v1459_v40 }
 0x770   :  { %5127 = vmatpush3.msra.mxu1 %v6305_v31 }
 0x771   :  { %5128 = vmatprep.subr.mxu1 %v5625_v1 }
 0x772   :  { %5129 = vmatpush3.msra.mxu1 %v6315_v63 }
 0x773   :  { %5130 = vmatprep.subr.mxu1 %v5625_v1 }
 0x774   :  { %5131 = vmatpush3.msra.mxu1 %v6325_v33 }
 0x775   :  { %5132 = vmatprep.subr.mxu1 %v5625_v1 }
 0x776   :  { %5133 = vmatpush3.msra.mxu1 %v6332_v59 }
 0x777   :  { %5134 = vmatprep.subr.mxu1 %v5625_v1 }
 0x778   :  { %5135 = vmatpush3.msra.mxu1 %v6341_v24 }
 0x779   :  { %5136 = vmatprep.subr.mxu1 %v5625_v1 }
 0x77a   :  { %5137 = vmatpush3.msra.mxu1 %v6350_v45 }
 0x77b   :  { %5139 = vmatmul.mubr.msk.f32.vlgmr.msra.gmra.mxu1 %vm633_vm12, %v1564_v41  ;;  %5148 = vmatprep.subr.mxu1 %v5625_v1 }
 0x77c   :  { %5149 = vmatpush3.msra.mxu1 %v5556_v46  ;;  %5156 = vmatprep.mubr.msk.f32.mxu1 %vm5626_vm0, %v5625_v1 }
 0x77d   :  { %5150 = vmatprep.subr.mxu1 %v5625_v1 }
 0x77e   :  { %5151 = vmatpush3.msra.mxu1 %v5557_v47  ;;  %v4854_v47 = vld [vmem:[%s7599_s1 + $0x50] sm:$0xf] }
 0x77f   :  { %5152 = vmatprep.subr.mxu1 %v5625_v1 }
 0x780   :  { %5153 = vmatpush3.msra.mxu1 %v5558_v38 }
 0x781   :  { %5154 = vmatprep.subr.mxu1 %v5625_v1 }
 0x782   :  { %5155 = vmatpush3.msra.mxu1 %v5559_v34 }
 0x783   :  { %5186 = vmatprep.subr.mxu1 %v5625_v1 }
 0x823   :  { %v1546_v49 = vpop.f32.mrf.mxu1 }
 0x825   :  { %v5113_v51 = vpop.f32.mrf.mxu1 }
 0x826   :  { %v4855_v51 = vld [vmem:[%s7599_s1 + $0x54] sm:$0xf] }
 0x83b   :  { %v1633_v43 = vpop.f32.mrf.mxu1 }
 0x83c   :  { %v1634_v39 = vadd.f32 %v1633_v43, %v1546_v49 }
 0x83d   :  { %v5140_v11 = vpop.f32.mrf.mxu1 }
 0x83e   :  { %v1641_v20 = vadd.f32 %v1639_v42, %v1634_v39  ;;  %v4856_v39 = vld [vmem:[%s7599_s1 + $0x58] sm:$0xf] }
 0x840   :  { %v1646_v53 = vadd.f32 %v1644_v48, %v1641_v20  ;;  %v4857_v48 = vld [vmem:[%s7599_s1 + $0x5c] sm:$0xf] }
 0x842   :  { %v4847_v54 = vmul.f32 -1.442695, %v1646_v53 }
 0x844   :  { %5387 = vpow2.f32 %v4847_v54 }
 0x851   :  { %v5388_v57 = vpop.eup %5387 }
 0x852   :  { %v1650_v23 = vadd.f32 1.0, %v5388_v57 }
 0x854   :  { %5389 = vrcp.f32 %v1650_v23 }
 0x861   :  { %v5390_v56 = vpop.eup %5389 }
 0x862   :  { %v1656_v4 = vmul.f32 %v5390_v56, %v1654_v61  ;;  %v1663_v13 = vsub.f32 1.0, %v5390_v56  ;;  %v1669_v50 = vmul.f32 %v5390_v56, %v6021_v27 }
 0x864   :  { %1658 = vrot.lane.b32.xlu1 %v1656_v4, %s5631_s30 }
 0x8d6   :  { %v1659_v5 = vpop.permute.xlu1 %1658 }
 0x8d7   :  { %v1661_v0 = vadd.f32 %v1659_v5, %v1641_v20 }
 0x8d9   :  { %5391 = vtanh.f32 %v1661_v0 }
 0x8e6   :  { %v5392_v12 = vpop.eup %5391 }
 0x8e7   :  { %1665 = vrot.lane.b32.xlu1 %v5392_v12, %s5629_s15 }
 0x959   :  { %v1666_v14 = vpop.permute.xlu1 %1665 }
 0x95a   :  { %v1668_v18 = vmul.f32 %v1666_v14, %v1663_v13  ;;  %v5560_v13 = vld [vmem:[%s7598_s0 + $0x8] sm:$0xff] }
 0x95b   :  { %v1676_v14 = vsub.f32 1.0, %v5560_v13 }
 0x95c   :  { %v6377_v17 = vadd.f32 %v1669_v50, %v1668_v18 }
 0x95e   :  { %5146 = vmatmul.mubr.msk.f32.vlgmr.msra.gmra.mxu0 %vm46_vm13, %v6377_v17 }
 0x95f   :  { %5160 = vmatpush3.msra.mxu0 %v6251_v6  ;;  %5183 = vmatprep.mubr.msk.f32.mxu0 %vm5626_vm0, %v5625_v1  ;;  %v6410_v6 = vld [vmem:[%s7598_s0 + $0x10] sm:$0xff] }
 0x960   :  { %5161 = vmatprep.subr.mxu0 %v5625_v1 }
 0x961   :  { %5162 = vmatpush3.msra.mxu0 %v6261_v16 }
 0x962   :  { %5163 = vmatprep.subr.mxu0 %v5625_v1 }
 0x963   :  { %5164 = vmatpush3.msra.mxu0 %v6271_v22 }
 0x964   :  { %5165 = vmatprep.subr.mxu0 %v5625_v1 }
 0x965   :  { %5166 = vmatpush3.msra.mxu0 %v6278_v2 }
 0x966   :  { %5167 = vmatprep.subr.mxu0 %v5625_v1 }
 0x967   :  { %5168 = vmatpush3.msra.mxu0 %v6288_v8 }
 0x968   :  { %5169 = vmatprep.subr.mxu0 %v5625_v1 }
 0x969   :  { %5170 = vmatpush3.msra.mxu0 %v6295_v30 }
 0x96a   :  { %5171 = vmatprep.subr.mxu0 %v5625_v1 }
 0x96b   :  { %5172 = vmatpush3.msra.mxu0 %v6305_v31  ;;  %v4851_v31 = vld [vmem:[%s7599_s1 + $0x44] sm:$0xf] }
 0x96c   :  { %5173 = vmatprep.subr.mxu0 %v5625_v1 }
 0x96d   :  { %5174 = vmatpush3.msra.mxu0 %v6315_v63 }
 0x96e   :  { %5175 = vmatprep.subr.mxu0 %v5625_v1 }
 0x96f   :  { %5176 = vmatpush3.msra.mxu0 %v6325_v33 }
 0x970   :  { %5177 = vmatprep.subr.mxu0 %v5625_v1 }
 0x971   :  { %5178 = vmatpush3.msra.mxu0 %v6332_v59  ;;  %v4852_v59 = vld [vmem:[%s7599_s1 + $0x48] sm:$0xf] }
 0x972   :  { %5179 = vmatprep.subr.mxu0 %v5625_v1 }
 0x973   :  { %5180 = vmatpush3.msra.mxu0 %v6341_v24 }
 0x974   :  { %5181 = vmatprep.subr.mxu0 %v5625_v1 }
 0x975   :  { %5182 = vmatpush3.msra.mxu0 %v6350_v45 }
 0x976   :  { %5231 = vmatprep.subr.mxu0 %v5625_v1 }
 0xa1e   :  { %v6412_v16 = vpop.f32.mrf.mxu0 }
 0xa1f   :  { %v1763_v19 = vadd.f32 %v6410_v6, %v6412_v16 }
 0xa20   :  { %v5147_v21 = vpop.f32.mrf.mxu0 }
 0xa21   :  { %v1774_v22 = vcombine.high %v1763_v19, %v1763_v19  ;;  %v1781_v3 = vrot.slane %v1763_v19, %v5729_v9 }
 0xa23   :  { %v1788_v25 = vrot.slane %v1774_v22, %v5729_v9  ;;  %v1789_v2 = vcombine.high %v1781_v3, %v1781_v3  ;;  %v1797_v44 = vrot.slane %v1781_v3, %v5729_v9 }
 0xa25   :  { %v1790_v40 = vcombine.high %v1788_v25, %v1788_v25  ;;  %v1826_v8 = vrot.slane %v1797_v44, %v5736_v15  ;;  %v1811_v60 = vrot.slane %v1789_v2, %v5729_v9  ;;  %v1819_v30 = vcombine.high %v1797_v44, %v1797_v44 }
 0xa26   :  { %v1804_v26 = vrot.slane %v1788_v25, %v5729_v9 }
 0xa27   :  { %v1863_v63 = vmul.f32 %v4850_v58, %v1826_v8  ;;  %v1830_v32 = vrot.slane %v1811_v60, %v5736_v15  ;;  %v1834_v29 = vrot.slane %v1819_v30, %v5736_v15  ;;  %v1821_v33 = vcombine.high %v1811_v60, %v1811_v60 }
 0xa28   :  { %v1818_v36 = vrot.slane %v1790_v40, %v5729_v9  ;;  %v1842_v41 = vrot.slane %v1804_v26, %v5736_v15  ;;  %v1820_v46 = vcombine.high %v1804_v26, %v1804_v26 }
 0xa29   :  { %1903 = vrot.lane.b32.xlu0 %v1863_v63, %s5628_s29  ;;  %v1864_v10 = vmul.f32 %v4851_v31, %v1830_v32  ;;  %v1838_v24 = vrot.slane %v1821_v33, %v5736_v15  ;;  %v1865_v45 = vmul.f32 %v4852_v59, %v1834_v29  ;;  %v1871_v57 = vsel %vm227_vm1, %v1863_v63, 0.0  ;;  %v4866_v63 = vld [vmem:[%s7601_s3 + $0x78] sm:$0xff] }
 0xa2a   :  { %v1846_v34 = vrot.slane %v1818_v36, %v5736_v15  ;;  %v1822_v49 = vcombine.high %v1818_v36, %v1818_v36  ;;  %v1867_v42 = vmul.f32 %v4854_v47, %v1842_v41  ;;  %v1850_v43 = vrot.slane %v1820_v46, %v5736_v15 }
 0xa2b   :  { %1905 = vrot.lane.b32.xlu1 %v1864_v10, %s5628_s29  ;;  %v1866_v38 = vmul.f32 %v4853_v37, %v1838_v24  ;;  %v1874_v23 = vsel %vm227_vm1, %v1864_v10, 0.0  ;;  %v1877_v56 = vsel %vm227_vm1, %v1865_v45, 0.0 }
 0xa2c   :  { %v1868_v11 = vmul.f32 %v4855_v51, %v1846_v34  ;;  %v1854_v20 = vrot.slane %v1822_v49, %v5736_v15  ;;  %v1869_v53 = vmul.f32 %v4856_v39, %v1850_v43  ;;  %v1883_v4 = vsel %vm227_vm1, %v1867_v42, 0.0 }
 0xa2d   :  { %1907 = vrot.lane.b32.xlu0 %v1865_v45, %s5628_s29  ;;  %v1880_v61 = vsel %vm227_vm1, %v1866_v38, 0.0 }
 0xa2e   :  { %v1870_v54 = vmul.f32 %v4857_v48, %v1854_v20  ;;  %v1886_v5 = vsel %vm227_vm1, %v1868_v11, 0.0  ;;  %v1889_v0 = vsel %vm227_vm1, %v1869_v53, 0.0 }
 0xa2f   :  { %1909 = vrot.lane.b32.xlu1 %v1866_v38, %s5628_s29 }
 0xa30   :  { %v1892_v12 = vsel %vm227_vm1, %v1870_v54, 0.0 }
 0xa31   :  { %1911 = vrot.lane.b32.xlu0 %v1867_v42, %s5628_s29 }
 0xa33   :  { %1913 = vrot.lane.b32.xlu1 %v1868_v11, %s5628_s29 }
 0xa35   :  { %1915 = vrot.lane.b32.xlu0 %v1869_v53, %s5628_s29 }
 0xa37   :  { %1917 = vrot.lane.b32.xlu1 %v1870_v54, %s5628_s29 }
 0xa54   :  { %1872 = vadd.xlane.f32.xlu0 %v1871_v57 }
 0xa5b   :  { %1875 = vadd.xlane.f32.xlu1 %v1874_v23 }
 0xa5f   :  { %1878 = vadd.xlane.f32.xlu1 %v1877_v56 }
 0xa63   :  { %1881 = vadd.xlane.f32.xlu1 %v1880_v61 }
 0xa67   :  { %1884 = vadd.xlane.f32.xlu1 %v1883_v4 }
 0xa6b   :  { %1887 = vadd.xlane.f32.xlu1 %v1886_v5 }
 0xa6f   :  { %1890 = vadd.xlane.f32.xlu1 %v1889_v0 }
 0xa73   :  { %1893 = vadd.xlane.f32.xlu1 %v1892_v12 }
 0xa84   :  { %1679 = vperm.xlu1 %5302, %v1676_v14  }
 0xa88   :  { %5305 = vset.pattern.permute.xlu1 %v5633_v35 }
 0xa9b   :  { %v1904_v50 = vpop.permute.xlu0 %1903 }
 0xa9c   :  { %v1927_v18 = vsel %vm227_vm1, %v1904_v50, 0.0 }
 0xa9d   :  { %v1906_v19 = vpop.permute.xlu1 %1905  ;;  %1928 = vadd.xlane.f32.xlu0 %v1927_v18 }
 0xa9e   :  { %v1930_v22 = vsel %vm227_vm1, %v1906_v19, 0.0 }
 0xa9f   :  { %v1908_v21 = vpop.permute.xlu0 %1907 }
 0xaa0   :  { %v1933_v3 = vsel %vm227_vm1, %v1908_v21, 0.0 }
 0xaa1   :  { %1931 = vadd.xlane.f32.xlu0 %v1930_v22  ;;  %v1910_v2 = vpop.permute.xlu1 %1909 }
 0xaa2   :  { %v1936_v58 = vsel %vm227_vm1, %v1910_v2, 0.0 }
 0xaa3   :  { %v1912_v25 = vpop.permute.xlu0 %1911 }
 0xaa4   :  { %v1939_v44 = vsel %vm227_vm1, %v1912_v25, 0.0 }
 0xaa5   :  { %1934 = vadd.xlane.f32.xlu0 %v1933_v3  ;;  %v1914_v40 = vpop.permute.xlu1 %1913 }
 0xaa6   :  { %v1942_v8 = vsel %vm227_vm1, %v1914_v40, 0.0 }
 0xaa7   :  { %v1916_v60 = vpop.permute.xlu0 %1915 }
 0xaa8   :  { %v1945_v30 = vsel %vm227_vm1, %v1916_v60, 0.0 }
 0xaa9   :  { %1940 = vadd.xlane.f32.xlu0 %v1939_v44  ;;  %v1918_v31 = vpop.permute.xlu1 %1917 }
 0xaaa   :  { %v1948_v26 = vsel %vm227_vm1, %v1918_v31, 0.0 }
 0xaad   :  { %1937 = vadd.xlane.f32.xlu0 %v1936_v58 }
 0xab1   :  { %1943 = vadd.xlane.f32.xlu0 %v1942_v8 }
 0xab5   :  { %1946 = vadd.xlane.f32.xlu0 %v1945_v30 }
 0xab9   :  { %1949 = vadd.xlane.f32.xlu0 %v1948_v26 }
 0xacf   :  { %2228 = vperm.xlu0 %5303, %v4866_v63  }
 0xad3   :  { %5304 = vset.pattern.permute.xlu0 %v5632_v7 }
 0xad4   :  { %1672 = vperm.xlu0 %5304, %v5560_v13  }
 0xadd   :  { %v1873_v29 = vpop.xlane.xlu0 %1872 }
 0xae4   :  { %v1876_v32 = vpop.xlane.xlu1 %1875 }
 0xae8   :  { %v1879_v33 = vpop.xlane.xlu1 %1878 }
 0xaec   :  { %v1882_v45 = vpop.xlane.xlu1 %1881 }
 0xaf0   :  { %v1885_v11 = vpop.xlane.xlu1 %1884 }
 0xaf4   :  { %v1888_v50 = vpop.xlane.xlu1 %1887 }
 0xb26   :  { %v1929_v59 = vpop.xlane.xlu0 %1928 }
 0xb27   :  { %v1951_v10 = vsel %vm308_vm2, %v1873_v29, %v1929_v59 }
 0xb28   :  { %v1959_v24 = vmul.f32 0.25, %v1951_v10 }
 0xb2a   :  { %v1967_v36 = vsel %vm325_vm3, %v1959_v24, -inf  ;;  %v1932_v37 = vpop.xlane.xlu0 %1931 }
 0xb2b   :  { %v1968_v41 = vrot.slane %v1967_v36, 4  ;;  %v1952_v46 = vsel %vm308_vm2, %v1876_v32, %v1932_v37  ;;  %v1891_v32 = vpop.xlane.xlu1 %1890 }
 0xb2c   :  { %v1960_v47 = vmul.f32 0.25, %v1952_v46 }
 0xb2d   :  { %v1969_v38 = vmax.f32 %v1967_v36, %v1968_v41 }
 0xb2e   :  { %v1974_v34 = vsel %vm325_vm3, %v1960_v47, -inf  ;;  %v1935_v49 = vpop.xlane.xlu0 %1934 }
 0xb2f   :  { %v1970_v51 = vrot.slane %v1969_v38, 2  ;;  %v1975_v42 = vrot.slane %v1974_v34, 4  ;;  %v1953_v43 = vsel %vm308_vm2, %v1879_v33, %v1935_v49 }
 0xb30   :  { %v1961_v39 = vmul.f32 0.25, %v1953_v43 }
 0xb31   :  { %v1971_v20 = vmax.f32 %v1969_v38, %v1970_v51  ;;  %v1976_v48 = vmax.f32 %v1974_v34, %v1975_v42 }
 0xb32   :  { %v1981_v53 = vsel %vm325_vm3, %v1961_v39, -inf  ;;  %v1941_v54 = vpop.xlane.xlu0 %1940 }
 0xb33   :  { %v1972_v57 = vrot.slane %v1971_v20, 1  ;;  %v1977_v23 = vrot.slane %v1976_v48, 2  ;;  %v1982_v56 = vrot.slane %v1981_v53, 4  ;;  %v1955_v61 = vsel %vm308_vm2, %v1885_v11, %v1941_v54  ;;  %v1894_v11 = vpop.xlane.xlu1 %1893 }
 0xb34   :  { %v1963_v4 = vmul.f32 0.25, %v1955_v61 }
 0xb35   :  { %v1973_v5 = vmax.f32 %v1971_v20, %v1972_v57  ;;  %v1978_v0 = vmax.f32 %v1976_v48, %v1977_v23  ;;  %v1983_v12 = vmax.f32 %v1981_v53, %v1982_v56 }
 0xb36   :  { %v1995_v13 = vsel %vm325_vm3, %v1963_v4, -inf  ;;  %v1938_v14 = vpop.xlane.xlu0 %1937 }
 0xb37   :  { %v2023_v18 = vsub.f32 %v1959_v24, %v1973_v5  ;;  %v1979_v19 = vrot.slane %v1978_v0, 1  ;;  %v1984_v21 = vrot.slane %v1983_v12, 2  ;;  %v1996_v22 = vrot.slane %v1995_v13, 4 }
 0xb38   :  { %v1954_v3 = vsel %vm308_vm2, %v1882_v45, %v1938_v14 }
 0xb39   :  { %v2031_v25 = vmul.f32 1.442695, %v2023_v18  ;;  %v1980_v2 = vmax.f32 %v1978_v0, %v1979_v19  ;;  %v1985_v44 = vmax.f32 %v1983_v12, %v1984_v21  ;;  %v1997_v58 = vmax.f32 %v1995_v13, %v1996_v22 }
 0xb3a   :  { %v1962_v40 = vmul.f32 0.25, %v1954_v3  ;;  %v1944_v8 = vpop.xlane.xlu0 %1943 }
 0xb3b   :  { %5393 = vpow2.f32 %v2031_v25  ;;  %v2024_v60 = vsub.f32 %v1960_v47, %v1980_v2  ;;  %v1986_v30 = vrot.slane %v1985_v44, 1  ;;  %v1998_v31 = vrot.slane %v1997_v58, 2 }
 0xb3c   :  { %v1988_v26 = vsel %vm325_vm3, %v1962_v40, -inf  ;;  %v1956_v63 = vsel %vm308_vm2, %v1888_v50, %v1944_v8 }
 0xb3d   :  { %v2033_v29 = vmul.f32 1.442695, %v2024_v60  ;;  %v1987_v33 = vmax.f32 %v1985_v44, %v1986_v30  ;;  %v1999_v59 = vmax.f32 %v1997_v58, %v1998_v31  ;;  %v1989_v10 = vrot.slane %v1988_v26, 4 }
 0xb3e   :  { %v1964_v24 = vmul.f32 0.25, %v1956_v63  ;;  %v1947_v36 = vpop.xlane.xlu0 %1946 }
 0xb3f   :  { %5395 = vpow2.f32 %v2033_v29  ;;  %v2025_v37 = vsub.f32 %v1961_v39, %v1987_v33  ;;  %v2000_v45 = vrot.slane %v1999_v59, 1  ;;  %v1990_v41 = vmax.f32 %v1988_v26, %v1989_v10 }
 0xb40   :  { %v2002_v46 = vsel %vm325_vm3, %v1964_v24, -inf  ;;  %v1957_v47 = vsel %vm308_vm2, %v1891_v32, %v1947_v36 }
 0xb41   :  { %v2035_v38 = vmul.f32 1.442695, %v2025_v37  ;;  %v2001_v34 = vmax.f32 %v1999_v59, %v2000_v45  ;;  %v1991_v49 = vrot.slane %v1990_v41, 2  ;;  %v2003_v51 = vrot.slane %v2002_v46, 4 }
 0xb42   :  { %v1965_v42 = vmul.f32 0.25, %v1957_v47  ;;  %v1950_v43 = vpop.xlane.xlu0 %1949 }
 0xb43   :  { %5397 = vpow2.f32 %v2035_v38  ;;  %v2027_v20 = vsub.f32 %v1963_v4, %v2001_v34  ;;  %v1992_v48 = vmax.f32 %v1990_v41, %v1991_v49  ;;  %v2004_v53 = vmax.f32 %v2002_v46, %v2003_v51 }
 0xb44   :  { %v2009_v54 = vsel %vm325_vm3, %v1965_v42, -inf  ;;  %v1958_v39 = vsel %vm308_vm2, %v1894_v11, %v1950_v43 }
 0xb45   :  { %v2039_v57 = vmul.f32 1.442695, %v2027_v20  ;;  %v1993_v23 = vrot.slane %v1992_v48, 1  ;;  %v2005_v56 = vrot.slane %v2004_v53, 2  ;;  %v2010_v61 = vrot.slane %v2009_v54, 4 }
 0xb46   :  { %v1966_v5 = vmul.f32 0.25, %v1958_v39 }
 0xb47   :  { %5399 = vpow2.f32 %v2039_v57  ;;  %v1994_v0 = vmax.f32 %v1992_v48, %v1993_v23  ;;  %v2006_v12 = vmax.f32 %v2004_v53, %v2005_v56  ;;  %v2011_v13 = vmax.f32 %v2009_v54, %v2010_v61 }
 0xb48   :  { %v6501_v14 = vpop.eup %5393  ;;  %v2016_v50 = vsel %vm325_vm3, %v1966_v5, -inf }
 0xb49   :  { %v2047_v4 = vsel %vm325_vm3, %v6501_v14, 0.0  ;;  %v2026_v18 = vsub.f32 %v1962_v40, %v1994_v0  ;;  %v2007_v19 = vrot.slane %v2006_v12, 1  ;;  %v2012_v21 = vrot.slane %v2011_v13, 2 }
 0xb4a   :  { %v2048_v22 = vrot.slane %v2047_v4, 4  ;;  %v2017_v3 = vrot.slane %v2016_v50, 4 }
 0xb4b   :  { %v2037_v25 = vmul.f32 1.442695, %v2026_v18  ;;  %v2008_v2 = vmax.f32 %v2006_v12, %v2007_v19  ;;  %v2013_v44 = vmax.f32 %v2011_v13, %v2012_v21 }
 0xb4c   :  { %v6506_v58 = vpop.eup %5395  ;;  %v2049_v8 = vadd.f32 %v2048_v22, %v2047_v4  ;;  %v2018_v60 = vmax.f32 %v2016_v50, %v2017_v3 }
 0xb4d   :  { %v2054_v30 = vsel %vm325_vm3, %v6506_v58, 0.0  ;;  %5401 = vpow2.f32 %v2037_v25  ;;  %v2028_v31 = vsub.f32 %v1964_v24, %v2008_v2  ;;  %v2014_v26 = vrot.slane %v2013_v44, 1 }
 0xb4e   :  { %v2050_v63 = vrot.slane %v2049_v8, 2  ;;  %v2055_v32 = vrot.slane %v2054_v30, 4  ;;  %v2019_v40 = vrot.slane %v2018_v60, 2 }
 0xb4f   :  { %v2041_v29 = vmul.f32 1.442695, %v2028_v31  ;;  %v2015_v33 = vmax.f32 %v2013_v44, %v2014_v26 }
 0xb50   :  { %v6510_v59 = vpop.eup %5397  ;;  %v2051_v10 = vadd.f32 %v2050_v63, %v2049_v8  ;;  %v2056_v36 = vadd.f32 %v2055_v32, %v2054_v30  ;;  %v2020_v37 = vmax.f32 %v2018_v60, %v2019_v40 }
 0xb51   :  { %v2061_v45 = vsel %vm325_vm3, %v6510_v59, 0.0  ;;  %5403 = vpow2.f32 %v2041_v29  ;;  %v2029_v41 = vsub.f32 %v1965_v42, %v2015_v33 }
 0xb52   :  { %v2057_v46 = vrot.slane %v2056_v36, 2  ;;  %v2062_v47 = vrot.slane %v2061_v45, 4  ;;  %v2021_v38 = vrot.slane %v2020_v37, 1  ;;  %v2052_v24 = vrot.slane %v2051_v10, 1 }
 0xb53   :  { %v2043_v34 = vmul.f32 1.442695, %v2029_v41 }
 0xb54   :  { %v6514_v49 = vpop.eup %5399  ;;  %v2058_v51 = vadd.f32 %v2057_v46, %v2056_v36  ;;  %v2063_v43 = vadd.f32 %v2062_v47, %v2061_v45  ;;  %v2022_v11 = vmax.f32 %v2020_v37, %v2021_v38  ;;  %v2053_v20 = vadd.f32 %v2052_v24, %v2051_v10  ;;  %v5561_v36 = vld [vmem:[%s7603_s5] ss:$0 sm:$0xff] }
 0xb55   :  { %v2075_v48 = vsel %vm325_vm3, %v6514_v49, 0.0  ;;  %5405 = vpow2.f32 %v2043_v34 }
 0xb56   :  { %v2064_v53 = vrot.slane %v2063_v43, 2  ;;  %v2076_v54 = vrot.slane %v2075_v48, 4  ;;  %v2030_v39 = vsub.f32 %v1966_v5, %v2022_v11  ;;  %5407 = vrcp.f32 %v2053_v20 }
 0xb57   :  { %v2059_v42 = vrot.slane %v2058_v51, 1 }
 0xb58   :  { %v2065_v57 = vadd.f32 %v2064_v53, %v2063_v43  ;;  %v2077_v23 = vadd.f32 %v2076_v54, %v2075_v48  ;;  %v2045_v56 = vmul.f32 1.442695, %v2030_v39 }
 0xb59   :  { %v2060_v61 = vadd.f32 %v2059_v42, %v2058_v51 }
 0xb5a   :  { %v6518_v0 = vpop.eup %5401  ;;  %v2078_v12 = vrot.slane %v2077_v23, 2  ;;  %5409 = vpow2.f32 %v2045_v56  ;;  %v2066_v13 = vrot.slane %v2065_v57, 1 }
 0xb5b   :  { %v2068_v50 = vsel %vm325_vm3, %v6518_v0, 0.0  ;;  %5411 = vrcp.f32 %v2060_v61 }
 0xb5c   :  { %v2079_v4 = vadd.f32 %v2078_v12, %v2077_v23  ;;  %v2069_v18 = vrot.slane %v2068_v50, 4  ;;  %v2067_v19 = vadd.f32 %v2066_v13, %v2065_v57 }
 0xb5e   :  { %v6522_v21 = vpop.eup %5403  ;;  %v2070_v5 = vadd.f32 %v2069_v18, %v2068_v50  ;;  %5413 = vrcp.f32 %v2067_v19  ;;  %v2080_v22 = vrot.slane %v2079_v4, 1 }
 0xb5f   :  { %v2082_v3 = vsel %vm325_vm3, %v6522_v21, 0.0 }
 0xb60   :  { %v2071_v25 = vrot.slane %v2070_v5, 2  ;;  %v2083_v2 = vrot.slane %v2082_v3, 4  ;;  %v2081_v44 = vadd.f32 %v2080_v22, %v2079_v4 }
 0xb62   :  { %v5406_v8 = vpop.eup %5405  ;;  %v2072_v60 = vadd.f32 %v2071_v25, %v2070_v5  ;;  %v2084_v30 = vadd.f32 %v2083_v2, %v2082_v3  ;;  %5415 = vrcp.f32 %v2081_v44 }
 0xb63   :  { %v5408_v31 = vpop.eup %5407  ;;  %v2089_v26 = vsel %vm325_vm3, %v5406_v8, 0.0 }
 0xb64   :  { %v2085_v63 = vrot.slane %v2084_v30, 2  ;;  %v2090_v32 = vrot.slane %v2089_v26, 4  ;;  %v2111_v40 = vmul.f32 %v5408_v31, %v6501_v14  ;;  %v2073_v29 = vrot.slane %v2072_v60, 1 }
 0xb66   :  { %v2086_v33 = vadd.f32 %v2085_v63, %v2084_v30  ;;  %v2091_v10 = vadd.f32 %v2090_v32, %v2089_v26  ;;  %v2119_v37 = vmul.f32 %v5561_v36, %v2111_v40  ;;  %v2074_v45 = vadd.f32 %v2073_v29, %v2072_v60 }
 0xb67   :  { %v5410_v41 = vpop.eup %5409 }
 0xb68   :  { %v5412_v46 = vpop.eup %5411  ;;  %v2092_v47 = vrot.slane %v2091_v10, 2  ;;  %v2096_v38 = vsel %vm325_vm3, %v5410_v41, 0.0  ;;  %v2127_v24 = vsel %vm325_vm3, %v2119_v37, 0.0  ;;  %5417 = vrcp.f32 %v2074_v45 }
 0xb69   :  { %v2097_v34 = vrot.slane %v2096_v38, 4  ;;  %2128 = vadd.xlane.f32.xlu0 %v2127_v24  ;;  %v2112_v14 = vmul.f32 %v5412_v46, %v6506_v58  ;;  %v2087_v51 = vrot.slane %v2086_v33, 1  ;;  %v4859_v46 = vld [vmem:[%s7600_s2 + $0x44] sm:$0xf]  ;;  %v4860_v24 = vld [vmem:[%s7600_s2 + $0x48] sm:$0xf] }
 0xb6a   :  { %v2093_v43 = vadd.f32 %v2092_v47, %v2091_v10 }
 0xb6b   :  { %v5414_v11 = vpop.eup %5413  ;;  %v2098_v20 = vadd.f32 %v2097_v34, %v2096_v38  ;;  %v2120_v48 = vmul.f32 %v5561_v36, %v2112_v14  ;;  %v2088_v53 = vadd.f32 %v2087_v51, %v2086_v33  ;;  %v6557_v33 = vpop.permute.xlu0 %2228 }
 0xb6c   :  { %v2113_v54 = vmul.f32 %v5414_v11, %v6510_v59  ;;  %v2094_v39 = vrot.slane %v2093_v43, 1 }
 0xb6d   :  { %v2099_v42 = vrot.slane %v2098_v20, 2  ;;  %v2130_v57 = vsel %vm325_vm3, %v2120_v48, 0.0  ;;  %5419 = vrcp.f32 %v2088_v53  ;;  %v4862_v53 = vld [vmem:[%s7600_s2 + $0x50] sm:$0xf] }
 0xb6e   :  { %2131 = vadd.xlane.f32.xlu0 %v2130_v57  ;;  %v2121_v23 = vmul.f32 %v5561_v36, %v2113_v54  ;;  %v2095_v56 = vadd.f32 %v2094_v39, %v2093_v43 }
 0xb6f   :  { %v5416_v61 = vpop.eup %5415  ;;  %v2100_v12 = vadd.f32 %v2099_v42, %v2098_v20  ;;  %v6559_v10 = vpop.permute.xlu0 %1672 }
 0xb70   :  { %v2133_v58 = vsel %vm325_vm3, %v2121_v23, 0.0  ;;  %v2115_v13 = vmul.f32 %v5416_v61, %v6514_v49  ;;  %5421 = vrcp.f32 %v2095_v56 }
 0xb71   :  { %v2101_v50 = vrot.slane %v2100_v12, 1 }
 0xb72   :  { %2134 = vadd.xlane.f32.xlu0 %v2133_v58  ;;  %v2123_v4 = vmul.f32 %v5561_v36, %v2115_v13  ;;  %v4861_v13 = vld [vmem:[%s7600_s2 + $0x4c] sm:$0xf] }
 0xb73   :  { %v2102_v18 = vadd.f32 %v2101_v50, %v2100_v12 }
 0xb74   :  { %v2139_v59 = vsel %vm325_vm3, %v2123_v4, 0.0 }
 0xb75   :  { %v5418_v19 = vpop.eup %5417  ;;  %5423 = vrcp.f32 %v2102_v18 }
 0xb76   :  { %2140 = vadd.xlane.f32.xlu0 %v2139_v59  ;;  %v2114_v5 = vmul.f32 %v5418_v19, %v6518_v0 }
 0xb78   :  { %v2122_v22 = vmul.f32 %v5561_v36, %v2114_v5 }
 0xb7a   :  { %v5420_v3 = vpop.eup %5419  ;;  %v2136_v25 = vsel %vm325_vm3, %v2122_v22, 0.0 }
 0xb7b   :  { %2137 = vadd.xlane.f32.xlu0 %v2136_v25  ;;  %v2116_v2 = vmul.f32 %v5420_v3, %v6522_v21  ;;  %v4867_v21 = vld [vmem:[%s7601_s3 + $0x80] sm:$0xff] }
 0xb7d   :  { %v5422_v49 = vpop.eup %5421  ;;  %v2124_v44 = vmul.f32 %v5561_v36, %v2116_v2  ;;  %v6583_v2 = vld [vmem:[%s7605_s7] ss:$0 sm:$0xff] }
 0xb7e   :  { %v2117_v60 = vmul.f32 %v5422_v49, %v5406_v8  ;;  %v1680_v8 = vpop.permute.xlu1 %1679 }
 0xb7f   :  { %v2142_v30 = vsel %vm325_vm3, %v2124_v44, 0.0  ;;  %v1682_v29 = vmul.f32 %v1680_v8, %v6377_v17 }
 0xb80   :  { %2143 = vadd.xlane.f32.xlu1 %v2142_v30  ;;  %v2125_v31 = vmul.f32 %v5561_v36, %v2117_v60  ;;  %v4863_v30 = vld [vmem:[%s7600_s2 + $0x54] sm:$0xf] }
 0xb82   :  { %v5424_v26 = vpop.eup %5423  ;;  %v2145_v63 = vsel %vm325_vm3, %v2125_v31, 0.0 }
 0xb83   :  { %2146 = vadd.xlane.f32.xlu0 %v2145_v63  ;;  %v2118_v32 = vmul.f32 %v5424_v26, %v5410_v41 }
 0xb85   :  { %v2126_v0 = vmul.f32 %v5561_v36, %v2118_v32  ;;  %v4858_v36 = vld [vmem:[%s7600_s2 + $0x40] sm:$0xf] }
 0xb87   :  { %v2148_v40 = vsel %vm325_vm3, %v2126_v0, 0.0 }
 0xb88   :  { %2149 = vadd.xlane.f32.xlu0 %v2148_v40 }
 0xb91   :  { %2237 = vperm.xlu1 %5305, %v4867_v21  }
 0xb95   :  { %2463 = vrot.lane.b32.xlu1 %v6412_v16, %s5630_s20 }
 0xb96   :  { %5306 = vset.pattern.permute.xlu1 %v5632_v7 }
 0xb9e   :  { %1684 = vrot.lane.b32.xlu0 %v1682_v29, %s5631_s30  ;;  %v4864_v29 = vld [vmem:[%s7600_s2 + $0x58] sm:$0xf] }
 0xba2   :  { %2448 = vrot.lane.b32.xlu0 %v6410_v6, %s5629_s15 }
 0xba6   :  { %2453 = vrot.lane.b32.xlu0 %v6412_v16, %s5629_s15 }
 0xbf2   :  { %v2129_v37 = vpop.xlane.xlu0 %2128 }
 0xbf3   :  { %v2160_v45 = vmul.f32 %v4858_v36, %v2129_v37 }
 0xbf5   :  { %v2168_v41 = vsel %vm532_vm4, %v2160_v45, 0.0 }
 0xbf6   :  { %v2169_v6 = vrot.slane %v2168_v41, 4 }
 0xbf7   :  { %v2132_v47 = vpop.xlane.xlu0 %2131 }
 0xbf8   :  { %v2170_v38 = vadd.f32 %v2169_v6, %v2168_v41  ;;  %v2161_v16 = vmul.f32 %v4859_v46, %v2132_v47 }
 0xbfa   :  { %v2171_v34 = vrot.slane %v2170_v38, 2  ;;  %v2175_v14 = vsel %vm532_vm4, %v2161_v16, 0.0 }
 0xbfb   :  { %v2176_v51 = vrot.slane %v2175_v14, 4  ;;  %v2135_v43 = vpop.xlane.xlu0 %2134 }
 0xbfc   :  { %v2172_v11 = vadd.f32 %v2171_v34, %v2170_v38  ;;  %v2162_v20 = vmul.f32 %v4860_v24, %v2135_v43 }
 0xbfd   :  { %v2177_v48 = vadd.f32 %v2176_v51, %v2175_v14  ;;  %v4865_v51 = vld [vmem:[%s7600_s2 + $0x5c] sm:$0xf] }
 0xbfe   :  { %v2182_v54 = vsel %vm532_vm4, %v2162_v20, 0.0  ;;  %v2173_v23 = vrot.slane %v2172_v11, 1 }
 0xbff   :  { %v2178_v39 = vrot.slane %v2177_v48, 2  ;;  %v2183_v42 = vrot.slane %v2182_v54, 4  ;;  %v2141_v57 = vpop.xlane.xlu0 %2140 }
 0xc00   :  { %v2164_v56 = vmul.f32 %v4862_v53, %v2141_v57  ;;  %v2174_v59 = vadd.f32 %v2173_v23, %v2172_v11 }
 0xc01   :  { %v2179_v61 = vadd.f32 %v2178_v39, %v2177_v48  ;;  %v2184_v12 = vadd.f32 %v2183_v42, %v2182_v54 }
 0xc02   :  { %v2196_v58 = vsel %vm532_vm4, %v2164_v56, 0.0  ;;  %v2242_v31 = vmul.f32 %v6583_v2, %v2174_v59  ;;  %v1675_v56 = vmul.f32 %v6559_v10, %v6377_v17 }
 0xc03   :  { %v2180_v50 = vrot.slane %v2179_v61, 1  ;;  %v2185_v4 = vrot.slane %v2184_v12, 2  ;;  %v2197_v18 = vrot.slane %v2196_v58, 4 }
 0xc04   :  { %v2138_v19 = vpop.xlane.xlu0 %2137 }
 0xc05   :  { %v2181_v5 = vadd.f32 %v2180_v50, %v2179_v61  ;;  %v2186_v22 = vadd.f32 %v2185_v4, %v2184_v12  ;;  %v2198_v3 = vadd.f32 %v2197_v18, %v2196_v58  ;;  %v2163_v25 = vmul.f32 %v4861_v13, %v2138_v19 }
 0xc07   :  { %v2243_v49 = vmul.f32 %v6583_v2, %v2181_v5  ;;  %v2187_v44 = vrot.slane %v2186_v22, 1  ;;  %v2199_v60 = vrot.slane %v2198_v3, 2  ;;  %v2189_v26 = vsel %vm532_vm4, %v2163_v25, 0.0 }
 0xc08   :  { %v2190_v40 = vrot.slane %v2189_v26, 4 }
 0xc09   :  { %v2258_v63 = vrot.slane %v2243_v49, 7  ;;  %v2188_v32 = vadd.f32 %v2187_v44, %v2186_v22  ;;  %v2200_v0 = vadd.f32 %v2199_v60, %v2198_v3  ;;  %v2144_v21 = vpop.xlane.xlu1 %2143  ;;  %v2231_v49 = vmul.f32 %v6557_v33, %v6238_v52 }
 0xc0a   :  { %v2165_v8 = vmul.f32 %v4863_v30, %v2144_v21  ;;  %v2191_v45 = vadd.f32 %v2190_v40, %v2189_v26  ;;  %v2368_v30 = vsel %vm612_vm5, %v2181_v5, %v2174_v59  ;;  %v5563_v5 = vld [vmem:[%s7602_s4 + $0x8] sm:$0xff] }
 0xc0b   :  { %v2259_v36 = vsel %vm612_vm5, %v2258_v63, %v2242_v31  ;;  %v2244_v37 = vmul.f32 %v6583_v2, %v2188_v32  ;;  %v2201_v47 = vrot.slane %v2200_v0, 1 }
 0xc0c   :  { %v2203_v41 = vsel %vm532_vm4, %v2165_v8, 0.0  ;;  %v2147_v46 = vpop.xlane.xlu0 %2146  ;;  %v2192_v24 = vrot.slane %v2191_v45, 2  ;;  %v2369_v8 = vsel %vm615_vm6, %v2188_v32, %v2368_v30 }
 0xc0d   :  { %v2260_v6 = vrot.slane %v2244_v37, 6  ;;  %v2204_v38 = vrot.slane %v2203_v41, 4  ;;  %v2166_v16 = vmul.f32 %v4864_v29, %v2147_v46  ;;  %v2202_v48 = vadd.f32 %v2201_v47, %v2200_v0  ;;  %v2238_v3 = vpop.permute.xlu1 %2237  ;;  %v5564_v47 = vld [vmem:[%s7602_s4] sm:$0xff] }
 0xc0e   :  { %v2193_v11 = vadd.f32 %v2192_v24, %v2191_v45 }
 0xc0f   :  { %v2205_v34 = vadd.f32 %v2204_v38, %v2203_v41  ;;  %v2210_v14 = vsel %vm532_vm4, %v2166_v16, 0.0  ;;  %v2261_v43 = vsel %vm615_vm6, %v2260_v6, %v2259_v36  ;;  %v2246_v13 = vmul.f32 %v6583_v2, %v2202_v48 }
 0xc10   :  { %v2211_v20 = vrot.slane %v2210_v14, 4  ;;  %v2194_v39 = vrot.slane %v2193_v11, 1 }
 0xc11   :  { %v2206_v53 = vrot.slane %v2205_v34, 2  ;;  %v2150_v54 = vpop.xlane.xlu0 %2149  ;;  %v2264_v63 = vrot.slane %v2246_v13, 4 }
 0xc12   :  { %v2212_v42 = vadd.f32 %v2211_v20, %v2210_v14  ;;  %v2167_v57 = vmul.f32 %v4865_v51, %v2150_v54  ;;  %v2195_v61 = vadd.f32 %v2194_v39, %v2193_v11 }
 0xc13   :  { %v2207_v23 = vadd.f32 %v2206_v53, %v2205_v34 }
 0xc14   :  { %v2213_v12 = vrot.slane %v2212_v42, 2  ;;  %v2217_v58 = vsel %vm532_vm4, %v2167_v57, 0.0  ;;  %v2245_v19 = vmul.f32 %v6583_v2, %v2195_v61  ;;  %v2370_v33 = vsel %vm618_vm7, %v2195_v61, %v2369_v8 }
 0xc15   :  { %v2208_v50 = vrot.slane %v2207_v23, 1  ;;  %v2218_v4 = vrot.slane %v2217_v58, 4  ;;  %v1685_v18 = vpop.permute.xlu0 %1684  ;;  %v2371_v6 = vsel %vm621_vm8, %v2202_v48, %v2370_v33 }
 0xc16   :  { %v2214_v22 = vadd.f32 %v2213_v12, %v2212_v42  ;;  %v6608_v25 = vsel %vm46_vm13, %v1675_v56, %v1685_v18  ;;  %v2262_v31 = vrot.slane %v2245_v19, 5 }
 0xc17   :  { %v2209_v10 = vadd.f32 %v2208_v50, %v2207_v23  ;;  %v2219_v44 = vadd.f32 %v2218_v4, %v2217_v58  ;;  %v2240_v60 = vmul.f32 %v2238_v3, %v6608_v25  ;;  %v2464_v4 = vpop.permute.xlu1 %2463 }
 0xc18   :  { %v2215_v26 = vrot.slane %v2214_v22, 1  ;;  %v2263_v36 = vsel %vm618_vm7, %v2262_v31, %v2261_v43  ;;  %v5565_v31 = vld [vmem:[%s7604_s6 + $0x18] sm:$0xff] }
 0xc19   :  { %v2247_v0 = vmul.f32 %v6583_v2, %v2209_v10  ;;  %v2220_v40 = vrot.slane %v2219_v44, 2  ;;  %v6615_v21 = vadd.f32 %v2240_v60, %v2231_v49  ;;  %v2265_v59 = vsel %vm621_vm8, %v2264_v63, %v2263_v36  ;;  %v2449_v54 = vpop.permute.xlu0 %2448  ;;  %v5567_v63 = vld [vmem:[%s7604_s6 + $0x8] sm:$0xff] }
 0xc1a   :  { %v2216_v29 = vadd.f32 %v2215_v26, %v2214_v22  ;;  %v2372_v24 = vsel %vm624_vm9, %v2209_v10, %v2371_v6  ;;  %v5566_v26 = vld [vmem:[%s7604_s6 + $0x10] sm:$0xff]  ;;  %v4873_v6 = vld [vmem:[%s7599_s1 + $0x60] sm:$0xf] }
 0xc1b   :  { %v2266_v37 = vrot.slane %v2247_v0, 3  ;;  %v2221_v45 = vadd.f32 %v2220_v40, %v2219_v44  ;;  %5157 = vmatmul.mubr.msk.f32.vlgmr.msra.gmra.mxu1 %vm644_vm14, %v6615_v21  ;;  %v5568_v0 = vld [vmem:[%s7604_s6] sm:$0xff]  ;;  %v6677_v40 = vld [vmem:[%s7598_s0 + $0x18] sm:$0xff] }
 0xc1c   :  { %5187 = vmatpush3.msra.mxu1 %v5563_v5  ;;  %5190 = vmatprep.mubr.msk.f32.mxu1 %vm5626_vm0, %v5625_v1  ;;  %v2248_v32 = vmul.f32 %v6583_v2, %v2216_v29  ;;  %v2373_v34 = vsel %vm627_vm10, %v2216_v29, %v2372_v24 }
 0xc1d   :  { %v2222_v41 = vrot.slane %v2221_v45, 1  ;;  %5188 = vmatprep.subr.mxu1 %v5625_v1  ;;  %v2267_v46 = vsel %vm624_vm9, %v2266_v37, %v2265_v59  ;;  %v2454_v56 = vpop.permute.xlu0 %2453 }
 0xc1e   :  { %5189 = vmatpush3.msra.mxu1 %v5564_v47  ;;  %v2268_v38 = vrot.slane %v2248_v32, 2 }
 0xc1f   :  { %v2223_v16 = vadd.f32 %v2222_v41, %v2221_v45  ;;  %5193 = vmatprep.subr.mxu1 %v5625_v1 }
 0xc20   :  { %v2269_v14 = vsel %vm627_vm10, %v2268_v38, %v2267_v46  ;;  %v4874_v38 = vld [vmem:[%s7599_s1 + $0x64] sm:$0xf] }
 0xc21   :  { %v2374_v51 = vsel %vm630_vm11, %v2223_v16, %v2373_v34  ;;  %v2249_v43 = vmul.f32 %v6583_v2, %v2223_v16 }
 0xc22   :  { %5184 = vmatmul.mubr.msk.f32.vlgmr.msra.gmra.mxu0 %vm633_vm12, %v2374_v51 }
 0xc23   :  { %5232 = vmatpush3.msra.mxu0 %v5563_v5  ;;  %5235 = vmatprep.mubr.msk.f32.mxu0 %vm5626_vm0, %v5625_v1  ;;  %v2270_v11 = vrot.slane %v2249_v43, 1 }
 0xc24   :  { %5233 = vmatprep.subr.mxu0 %v5625_v1 }
 0xc25   :  { %5234 = vmatpush3.msra.mxu0 %v5564_v47  ;;  %v6646_v20 = vsel %vm630_vm11, %v2270_v11, %v2269_v14  ;;  %v4875_v11 = vld [vmem:[%s7599_s1 + $0x68] sm:$0xf] }
 0xc26   :  { %5238 = vmatprep.subr.mxu0 %v5625_v1 }
 0xcdb   :  { %v2356_v48 = vpop.f32.mrf.mxu1 }
 0xcdd   :  { %v5158_v53 = vpop.f32.mrf.mxu1 }
 0xce2   :  { %v2443_v39 = vpop.f32.mrf.mxu0 }
 0xce3   :  { %v2444_v42 = vadd.f32 %v2443_v39, %v2356_v48 }
 0xce4   :  { %v5185_v57 = vpop.f32.mrf.mxu0 }
 0xce5   :  { %v2451_v23 = vadd.f32 %v2449_v54, %v2444_v42  ;;  %v4876_v54 = vld [vmem:[%s7599_s1 + $0x6c] sm:$0xf] }
 0xce7   :  { %v2456_v61 = vadd.f32 %v2454_v56, %v2451_v23  ;;  %v4877_v56 = vld [vmem:[%s7599_s1 + $0x70] sm:$0xf] }
 0xce9   :  { %v4870_v12 = vmul.f32 -1.442695, %v2456_v61 }
 0xceb   :  { %5425 = vpow2.f32 %v4870_v12 }
 0xcf8   :  { %v5426_v58 = vpop.eup %5425 }
 0xcf9   :  { %v2460_v13 = vadd.f32 1.0, %v5426_v58  ;;  %v4878_v58 = vld [vmem:[%s7599_s1 + $0x74] sm:$0xf] }
 0xcfb   :  { %5427 = vrcp.f32 %v2460_v13 }
 0xd08   :  { %v5428_v50 = vpop.eup %5427 }
 0xd09   :  { %v2466_v18 = vmul.f32 %v5428_v50, %v2464_v4  ;;  %v2473_v49 = vsub.f32 1.0, %v5428_v50  ;;  %v2479_v44 = vmul.f32 %v5428_v50, %v6377_v17 }
 0xd0b   :  { %2468 = vrot.lane.b32.xlu0 %v2466_v18, %s5631_s30  ;;  %v4879_v18 = vld [vmem:[%s7599_s1 + $0x78] sm:$0xf] }
 0xd7d   :  { %v2469_v19 = vpop.permute.xlu0 %2468 }
 0xd7e   :  { %v2471_v22 = vadd.f32 %v2469_v19, %v2451_v23 }
 0xd80   :  { %5429 = vtanh.f32 %v2471_v22  ;;  %v4880_v22 = vld [vmem:[%s7599_s1 + $0x7c] sm:$0xf] }
 0xd8d   :  { %v5430_v3 = vpop.eup %5429 }
 0xd8e   :  { %2475 = vrot.lane.b32.xlu1 %v5430_v3, %s5629_s15 }
 0xe00   :  { %v2476_v10 = vpop.permute.xlu1 %2475 }
 0xe01   :  { %v2478_v60 = vmul.f32 %v2476_v10, %v2473_v49 }
 0xe03   :  { %v6652_v30 = vadd.f32 %v2479_v44, %v2478_v60 }
 0xe05   :  { %5191 = vmatmul.mubr.msk.f32.vlgmr.msra.gmra.mxu1 %vm46_vm13, %v6652_v30 }
 0xe06   :  { %5194 = vmatpush3.msra.mxu1 %v5565_v31  ;;  %5201 = vmatprep.mubr.msk.f32.mxu1 %vm5626_vm0, %v5625_v1 }
 0xe07   :  { %5195 = vmatprep.subr.mxu1 %v5625_v1 }
 0xe08   :  { %5196 = vmatpush3.msra.mxu1 %v5566_v26 }
 0xe09   :  { %5197 = vmatprep.subr.mxu1 %v5625_v1 }
 0xe0a   :  { %5198 = vmatpush3.msra.mxu1 %v5567_v63 }
 0xe0b   :  { %5199 = vmatprep.subr.mxu1 %v5625_v1 }
 0xe0c   :  { %5200 = vmatpush3.msra.mxu1 %v5568_v0 }
 0xe0d   :  { %5204 = vmatprep.subr.mxu1 %v5625_v1 }
 0xec5   :  { %v6679_v8 = vpop.f32.mrf.mxu1 }
 0xec6   :  { %v2573_v29 = vadd.f32 %v6677_v40, %v6679_v8 }
 0xec7   :  { %v5192_v36 = vpop.f32.mrf.mxu1 }
 0xec8   :  { %v2584_v33 = vcombine.high %v2573_v29, %v2573_v29  ;;  %v2591_v37 = vrot.slane %v2573_v29, %v5729_v9 }
 0xeca   :  { %v2598_v45 = vrot.slane %v2584_v33, %v5729_v9  ;;  %v2599_v59 = vcombine.high %v2591_v37, %v2591_v37  ;;  %v2607_v5 = vrot.slane %v2591_v37, %v5729_v9 }
 0xecc   :  { %v2600_v32 = vcombine.high %v2598_v45, %v2598_v45  ;;  %v2621_v41 = vrot.slane %v2599_v59, %v5729_v9  ;;  %v2629_v46 = vcombine.high %v2607_v5, %v2607_v5  ;;  %v2636_v47 = vrot.slane %v2607_v5, %v5736_v15 }
 0xecd   :  { %v2614_v34 = vrot.slane %v2598_v45, %v5729_v9 }
 0xece   :  { %v2640_v16 = vrot.slane %v2621_v41, %v5736_v15  ;;  %v2631_v24 = vcombine.high %v2621_v41, %v2621_v41  ;;  %v2673_v14 = vmul.f32 %v4873_v6, %v2636_v47  ;;  %v2644_v51 = vrot.slane %v2629_v46, %v5736_v15 }
 0xecf   :  { %v2628_v53 = vrot.slane %v2600_v32, %v5729_v9  ;;  %v2652_v42 = vrot.slane %v2614_v34, %v5736_v15  ;;  %v2630_v57 = vcombine.high %v2614_v34, %v2614_v34 }
 0xed0   :  { %v2674_v43 = vmul.f32 %v4874_v38, %v2640_v16  ;;  %v2648_v48 = vrot.slane %v2631_v24, %v5736_v15  ;;  %2713 = vrot.lane.b32.xlu0 %v2673_v14, %s5628_s29  ;;  %v2675_v39 = vmul.f32 %v4875_v11, %v2644_v51  ;;  %v2681_v10 = vsel %vm227_vm1, %v2673_v14, 0.0  ;;  %v5569_v51 = vld [vmem:[%s7598_s0 + $0x10] sm:$0xff] }
 0xed1   :  { %v2656_v61 = vrot.slane %v2628_v53, %v5736_v15  ;;  %v2632_v12 = vcombine.high %v2628_v53, %v2628_v53  ;;  %v2677_v13 = vmul.f32 %v4877_v56, %v2652_v42  ;;  %v2660_v50 = vrot.slane %v2630_v57, %v5736_v15  ;;  %v4889_v11 = vld [vmem:[%s7601_s3 + $0xb0] sm:$0xff]  ;;  %v4891_v53 = vld [vmem:[%s7601_s3 + $0xc0] sm:$0xff] }
 0xed2   :  { %2715 = vrot.lane.b32.xlu1 %v2674_v43, %s5628_s29  ;;  %v2676_v23 = vmul.f32 %v4876_v54, %v2648_v48  ;;  %v2687_v44 = vsel %vm227_vm1, %v2675_v39, 0.0  ;;  %v2684_v60 = vsel %vm227_vm1, %v2674_v43, 0.0  ;;  %v2486_v43 = vsub.f32 1.0, %v5569_v51  ;;  %v4890_v48 = vld [vmem:[%s7601_s3 + $0xb8] sm:$0xff] }
 0xed3   :  { %v2678_v4 = vmul.f32 %v4878_v58, %v2656_v61  ;;  %v2664_v19 = vrot.slane %v2632_v12, %v5736_v15  ;;  %v2679_v3 = vmul.f32 %v4879_v18, %v2660_v50  ;;  %v2693_v26 = vsel %vm227_vm1, %v2677_v13, 0.0 }
 0xed4   :  { %2717 = vrot.lane.b32.xlu0 %v2675_v39, %s5628_s29  ;;  %v2690_v31 = vsel %vm227_vm1, %v2676_v23, 0.0 }
 0xed5   :  { %v2680_v49 = vmul.f32 %v4880_v22, %v2664_v19  ;;  %v2696_v63 = vsel %vm227_vm1, %v2678_v4, 0.0  ;;  %v2699_v32 = vsel %vm227_vm1, %v2679_v3, 0.0 }
 0xed6   :  { %2719 = vrot.lane.b32.xlu1 %v2676_v23, %s5628_s29 }
 0xed7   :  { %v2702_v6 = vsel %vm227_vm1, %v2680_v49, 0.0 }
 0xed8   :  { %2721 = vrot.lane.b32.xlu0 %v2677_v13, %s5628_s29 }
 0xeda   :  { %2723 = vrot.lane.b32.xlu1 %v2678_v4, %s5628_s29 }
 0xedc   :  { %2725 = vrot.lane.b32.xlu0 %v2679_v3, %s5628_s29 }
 0xede   :  { %2727 = vrot.lane.b32.xlu1 %v2680_v49, %s5628_s29 }
 0xefb   :  { %2682 = vadd.xlane.f32.xlu0 %v2681_v10 }
 0xeff   :  { %2688 = vadd.xlane.f32.xlu0 %v2687_v44 }
 0xf02   :  { %2685 = vadd.xlane.f32.xlu1 %v2684_v60 }
 0xf03   :  { %2691 = vadd.xlane.f32.xlu0 %v2690_v31 }
 0xf07   :  { %2694 = vadd.xlane.f32.xlu0 %v2693_v26 }
 0xf0b   :  { %2697 = vadd.xlane.f32.xlu0 %v2696_v63 }
 0xf42   :  { %v2714_v0 = vpop.permute.xlu0 %2713 }
 0xf43   :  { %v2737_v29 = vsel %vm227_vm1, %v2714_v0, 0.0 }
 0xf44   :  { %v2716_v36 = vpop.permute.xlu1 %2715  ;;  %2738 = vadd.xlane.f32.xlu0 %v2737_v29 }
 0xf45   :  { %v2740_v37 = vsel %vm227_vm1, %v2716_v36, 0.0 }
 0xf46   :  { %v2718_v33 = vpop.permute.xlu0 %2717 }
 0xf47   :  { %v2743_v45 = vsel %vm227_vm1, %v2718_v33, 0.0 }
 0xf48   :  { %2741 = vadd.xlane.f32.xlu0 %v2740_v37  ;;  %2744 = vadd.xlane.f32.xlu1 %v2743_v45  ;;  %v2720_v59 = vpop.permute.xlu1 %2719 }
 0xf49   :  { %v2746_v46 = vsel %vm227_vm1, %v2720_v59, 0.0 }
 0xf4a   :  { %v2722_v5 = vpop.permute.xlu0 %2721 }
 0xf4b   :  { %v2749_v41 = vsel %vm227_vm1, %v2722_v5, 0.0 }
 0xf4c   :  { %2700 = vadd.xlane.f32.xlu0 %v2699_v32  ;;  %2750 = vadd.xlane.f32.xlu1 %v2749_v41  ;;  %v2724_v47 = vpop.permute.xlu1 %2723 }
 0xf4d   :  { %v2752_v38 = vsel %vm227_vm1, %v2724_v47, 0.0 }
 0xf4e   :  { %v2726_v16 = vpop.permute.xlu0 %2725 }
 0xf4f   :  { %v2755_v24 = vsel %vm227_vm1, %v2726_v16, 0.0 }
 0xf50   :  { %2747 = vadd.xlane.f32.xlu1 %v2746_v46  ;;  %2703 = vadd.xlane.f32.xlu0 %v2702_v6  ;;  %v2728_v34 = vpop.permute.xlu1 %2727 }
 0xf51   :  { %v2758_v14 = vsel %vm227_vm1, %v2728_v34, 0.0 }
 0xf54   :  { %2753 = vadd.xlane.f32.xlu1 %v2752_v38 }
 0xf58   :  { %2756 = vadd.xlane.f32.xlu1 %v2755_v24 }
 0xf5c   :  { %2759 = vadd.xlane.f32.xlu1 %v2758_v14 }
 0xf66   :  { %2489 = vperm.xlu0 %5304, %v2486_v43  }
 0xf6a   :  { %5308 = vset.pattern.permute.xlu0 %v5633_v35 }
 0xf6b   :  { %3056 = vperm.xlu0 %5308, %v4891_v53  }
 0xf6d   :  { %2482 = vperm.xlu1 %5306, %v5569_v51  }
 0xf6f   :  { %5309 = vset.pattern.permute.xlu0 %v5632_v7 }
 0xf71   :  { %5307 = vset.pattern.permute.xlu1 %v5633_v35 }
 0xf72   :  { %3038 = vperm.xlu1 %5307, %v4889_v11  }
 0xf76   :  { %3047 = vperm.xlu1 %5307, %v4890_v48  }
 0xf84   :  { %v2683_v54 = vpop.xlane.xlu0 %2682 }
 0xf88   :  { %v2689_v39 = vpop.xlane.xlu0 %2688 }
 0xf8b   :  { %v2686_v56 = vpop.xlane.xlu1 %2685 }
 0xf8c   :  { %v2692_v42 = vpop.xlane.xlu0 %2691 }
 0xf90   :  { %v2695_v57 = vpop.xlane.xlu0 %2694 }
 0xf94   :  { %v2698_v23 = vpop.xlane.xlu0 %2697 }
 0xfcd   :  { %v2739_v61 = vpop.xlane.xlu0 %2738 }
 0xfce   :  { %v2761_v12 = vsel %vm308_vm2, %v2683_v54, %v2739_v61 }
 0xfcf   :  { %v2769_v58 = vmul.f32 0.25, %v2761_v12 }
 0xfd1   :  { %v2777_v13 = vsel %vm325_vm3, %v2769_v58, -inf  ;;  %v2742_v50 = vpop.xlane.xlu0 %2741  ;;  %v2745_v4 = vpop.xlane.xlu1 %2744 }
 0xfd2   :  { %v2778_v18 = vrot.slane %v2777_v13, 4  ;;  %v2762_v19 = vsel %vm308_vm2, %v2686_v56, %v2742_v50  ;;  %v2763_v22 = vsel %vm308_vm2, %v2689_v39, %v2745_v4 }
 0xfd3   :  { %v2770_v3 = vmul.f32 0.25, %v2762_v19  ;;  %v2771_v49 = vmul.f32 0.25, %v2763_v22 }
 0xfd4   :  { %v2779_v10 = vmax.f32 %v2777_v13, %v2778_v18 }
 0xfd5   :  { %v2784_v44 = vsel %vm325_vm3, %v2770_v3, -inf  ;;  %v2791_v60 = vsel %vm325_vm3, %v2771_v49, -inf  ;;  %v2751_v31 = vpop.xlane.xlu1 %2750  ;;  %v2701_v54 = vpop.xlane.xlu0 %2700 }
 0xfd6   :  { %v2780_v26 = vrot.slane %v2779_v10, 2  ;;  %v2785_v63 = vrot.slane %v2784_v44, 4  ;;  %v2792_v0 = vrot.slane %v2791_v60, 4  ;;  %v2765_v29 = vsel %vm308_vm2, %v2695_v57, %v2751_v31 }
 0xfd7   :  { %v2773_v36 = vmul.f32 0.25, %v2765_v29 }
 0xfd8   :  { %v2781_v33 = vmax.f32 %v2779_v10, %v2780_v26  ;;  %v2786_v37 = vmax.f32 %v2784_v44, %v2785_v63  ;;  %v2793_v45 = vmax.f32 %v2791_v60, %v2792_v0 }
 0xfd9   :  { %v2805_v59 = vsel %vm325_vm3, %v2773_v36, -inf  ;;  %v2748_v5 = vpop.xlane.xlu1 %2747  ;;  %v2704_v0 = vpop.xlane.xlu0 %2703 }
 0xfda   :  { %v2782_v32 = vrot.slane %v2781_v33, 1  ;;  %v2787_v41 = vrot.slane %v2786_v37, 2  ;;  %v2794_v46 = vrot.slane %v2793_v45, 2  ;;  %v2806_v6 = vrot.slane %v2805_v59, 4 }
 0xfdb   :  { %v2764_v47 = vsel %vm308_vm2, %v2692_v42, %v2748_v5 }
 0xfdc   :  { %v2783_v38 = vmax.f32 %v2781_v33, %v2782_v32  ;;  %v2788_v16 = vmax.f32 %v2786_v37, %v2787_v41  ;;  %v2795_v24 = vmax.f32 %v2793_v45, %v2794_v46  ;;  %v2807_v34 = vmax.f32 %v2805_v59, %v2806_v6 }
 0xfdd   :  { %v2772_v14 = vmul.f32 0.25, %v2764_v47  ;;  %v2754_v51 = vpop.xlane.xlu1 %2753 }
 0xfde   :  { %v2833_v43 = vsub.f32 %v2769_v58, %v2783_v38  ;;  %v2789_v11 = vrot.slane %v2788_v16, 1  ;;  %v2796_v48 = vrot.slane %v2795_v24, 1  ;;  %v2808_v53 = vrot.slane %v2807_v34, 2 }
 0xfdf   :  { %v2798_v39 = vsel %vm325_vm3, %v2772_v14, -inf  ;;  %v2766_v57 = vsel %vm308_vm2, %v2698_v23, %v2754_v51 }
 0xfe0   :  { %v2841_v56 = vmul.f32 1.442695, %v2833_v43  ;;  %v2790_v61 = vmax.f32 %v2788_v16, %v2789_v11  ;;  %v2797_v12 = vmax.f32 %v2795_v24, %v2796_v48  ;;  %v2809_v13 = vmax.f32 %v2807_v34, %v2808_v53 }
 0xfe1   :  { %v2799_v42 = vrot.slane %v2798_v39, 4  ;;  %v2774_v50 = vmul.f32 0.25, %v2766_v57  ;;  %v2757_v4 = vpop.xlane.xlu1 %2756 }
 0xfe2   :  { %5431 = vpow2.f32 %v2841_v56  ;;  %v2834_v18 = vsub.f32 %v2770_v3, %v2790_v61  ;;  %v2835_v19 = vsub.f32 %v2771_v49, %v2797_v12  ;;  %v2810_v22 = vrot.slane %v2809_v13, 1 }
 0xfe3   :  { %v2800_v58 = vmax.f32 %v2798_v39, %v2799_v42  ;;  %v2812_v10 = vsel %vm325_vm3, %v2774_v50, -inf  ;;  %v2767_v44 = vsel %vm308_vm2, %v2701_v54, %v2757_v4 }
 0xfe4   :  { %v2843_v60 = vmul.f32 1.442695, %v2834_v18  ;;  %v2845_v31 = vmul.f32 1.442695, %v2835_v19  ;;  %v2811_v26 = vmax.f32 %v2809_v13, %v2810_v22  ;;  %v2813_v23 = vrot.slane %v2812_v10, 4 }
 0xfe5   :  { %v2801_v63 = vrot.slane %v2800_v58, 2  ;;  %v2775_v29 = vmul.f32 0.25, %v2767_v44  ;;  %v2760_v33 = vpop.xlane.xlu1 %2759 }
 0xfe6   :  { %5433 = vpow2.f32 %v2843_v60  ;;  %v2837_v37 = vsub.f32 %v2773_v36, %v2811_v26  ;;  %v2814_v45 = vmax.f32 %v2812_v10, %v2813_v23  ;;  %v2768_v3 = vsel %vm308_vm2, %v2704_v0, %v2760_v33 }
 0xfe7   :  { %5435 = vpow2.f32 %v2845_v31  ;;  %v2802_v49 = vmax.f32 %v2800_v58, %v2801_v63  ;;  %v2819_v59 = vsel %vm325_vm3, %v2775_v29, -inf  ;;  %v2776_v5 = vmul.f32 0.25, %v2768_v3 }
 0xfe8   :  { %v2849_v32 = vmul.f32 1.442695, %v2837_v37  ;;  %v2815_v41 = vrot.slane %v2814_v45, 2  ;;  %v2820_v46 = vrot.slane %v2819_v59, 4 }
 0xfe9   :  { %v2803_v6 = vrot.slane %v2802_v49, 1  ;;  %v2826_v47 = vsel %vm325_vm3, %v2776_v5, -inf }
 0xfea   :  { %5437 = vpow2.f32 %v2849_v32  ;;  %v2816_v38 = vmax.f32 %v2814_v45, %v2815_v41  ;;  %v2821_v16 = vmax.f32 %v2819_v59, %v2820_v46  ;;  %v2827_v24 = vrot.slane %v2826_v47, 4 }
 0xfeb   :  { %v2804_v34 = vmax.f32 %v2802_v49, %v2803_v6 }
 0xfec   :  { %v2817_v36 = vrot.slane %v2816_v38, 1  ;;  %v2822_v51 = vrot.slane %v2821_v16, 2  ;;  %v2828_v43 = vmax.f32 %v2826_v47, %v2827_v24 }
 0xfed   :  { %v2836_v11 = vsub.f32 %v2772_v14, %v2804_v34 }
 0xfee   :  { %v2818_v48 = vmax.f32 %v2816_v38, %v2817_v36  ;;  %v2823_v53 = vmax.f32 %v2821_v16, %v2822_v51  ;;  %v2829_v54 = vrot.slane %v2828_v43, 2 }
 0xfef   :  { %v6776_v39 = vpop.eup %5431  ;;  %v2847_v57 = vmul.f32 1.442695, %v2836_v11 }
 0xff0   :  { %v2857_v56 = vsel %vm325_vm3, %v6776_v39, 0.0  ;;  %v2838_v61 = vsub.f32 %v2774_v50, %v2818_v48  ;;  %v2824_v12 = vrot.slane %v2823_v53, 1  ;;  %v2830_v13 = vmax.f32 %v2828_v43, %v2829_v54 }
 0xff1   :  { %v2858_v42 = vrot.slane %v2857_v56, 4  ;;  %5439 = vpow2.f32 %v2847_v57 }
 0xff2   :  { %v2851_v4 = vmul.f32 1.442695, %v2838_v61  ;;  %v2825_v18 = vmax.f32 %v2823_v53, %v2824_v12  ;;  %v2831_v19 = vrot.slane %v2830_v13, 1 }
 0xff3   :  { %v6780_v22 = vpop.eup %5433  ;;  %v2859_v14 = vadd.f32 %v2858_v42, %v2857_v56 }
 0xff4   :  { %v6782_v58 = vpop.eup %5435  ;;  %v2864_v10 = vsel %vm325_vm3, %v6780_v22, 0.0  ;;  %5441 = vpow2.f32 %v2851_v4  ;;  %v2839_v44 = vsub.f32 %v2775_v29, %v2825_v18  ;;  %v2832_v60 = vmax.f32 %v2830_v13, %v2831_v19 }
 0xff5   :  { %v2860_v31 = vrot.slane %v2859_v14, 2  ;;  %v2865_v50 = vrot.slane %v2864_v10, 4  ;;  %v2871_v26 = vsel %vm325_vm3, %v6782_v58, 0.0 }
 0xff6   :  { %v2872_v23 = vrot.slane %v2871_v26, 4  ;;  %v2853_v63 = vmul.f32 1.442695, %v2839_v44  ;;  %v2840_v0 = vsub.f32 %v2776_v5, %v2832_v60 }
 0xff7   :  { %v6788_v33 = vpop.eup %5437  ;;  %v2861_v37 = vadd.f32 %v2860_v31, %v2859_v14  ;;  %v2866_v45 = vadd.f32 %v2865_v50, %v2864_v10 }
 0xff8   :  { %v2873_v3 = vadd.f32 %v2872_v23, %v2871_v26  ;;  %v2885_v49 = vsel %vm325_vm3, %v6788_v33, 0.0  ;;  %5443 = vpow2.f32 %v2853_v63  ;;  %v2855_v59 = vmul.f32 1.442695, %v2840_v0 }
 0xff9   :  { %v2867_v29 = vrot.slane %v2866_v45, 2  ;;  %v2886_v32 = vrot.slane %v2885_v49, 4  ;;  %v2862_v41 = vrot.slane %v2861_v37, 1 }
 0xffa   :  { %v2874_v46 = vrot.slane %v2873_v3, 2  ;;  %5445 = vpow2.f32 %v2855_v59 }
 0xffb   :  { %v2868_v6 = vadd.f32 %v2867_v29, %v2866_v45  ;;  %v2887_v47 = vadd.f32 %v2886_v32, %v2885_v49  ;;  %v2863_v38 = vadd.f32 %v2862_v41, %v2861_v37  ;;  %v5570_v41 = vld [vmem:[%s7603_s5] ss:$0 sm:$0xff] }
 0xffc   :  { %v2875_v16 = vadd.f32 %v2874_v46, %v2873_v3 }
 0xffd   :  { %v2888_v5 = vrot.slane %v2887_v47, 2  ;;  %5447 = vrcp.f32 %v2863_v38  ;;  %v2869_v24 = vrot.slane %v2868_v6, 1 }
 0xffe   :  { %v6792_v34 = vpop.eup %5439  ;;  %v2876_v36 = vrot.slane %v2875_v16, 1 }
 0xfff   :  { %v2889_v51 = vadd.f32 %v2888_v5, %v2887_v47  ;;  %v2878_v43 = vsel %vm325_vm3, %v6792_v34, 0.0  ;;  %v2870_v11 = vadd.f32 %v2869_v24, %v2868_v6 }
0x1000   :  { %v2879_v48 = vrot.slane %v2878_v43, 4  ;;  %v2877_v53 = vadd.f32 %v2876_v36, %v2875_v16 }
0x1001   :  { %v6796_v54 = vpop.eup %5441  ;;  %5449 = vrcp.f32 %v2870_v11  ;;  %v2890_v57 = vrot.slane %v2889_v51, 1 }
0x1002   :  { %v2880_v56 = vadd.f32 %v2879_v48, %v2878_v43  ;;  %v2892_v61 = vsel %vm325_vm3, %v6796_v54, 0.0  ;;  %5451 = vrcp.f32 %v2877_v53 }
0x1003   :  { %v2893_v12 = vrot.slane %v2892_v61, 4  ;;  %v2891_v13 = vadd.f32 %v2890_v57, %v2889_v51 }
0x1004   :  { %v2881_v42 = vrot.slane %v2880_v56, 2 }
0x1005   :  { %v5444_v4 = vpop.eup %5443  ;;  %v2894_v18 = vadd.f32 %v2893_v12, %v2892_v61  ;;  %5453 = vrcp.f32 %v2891_v13 }
0x1006   :  { %v2882_v19 = vadd.f32 %v2881_v42, %v2880_v56  ;;  %v2899_v14 = vsel %vm325_vm3, %v5444_v4, 0.0 }
0x1007   :  { %v5446_v10 = vpop.eup %5445  ;;  %v2895_v44 = vrot.slane %v2894_v18, 2  ;;  %v2900_v60 = vrot.slane %v2899_v14, 4 }
0x1008   :  { %v2906_v31 = vsel %vm325_vm3, %v5446_v10, 0.0  ;;  %v2883_v50 = vrot.slane %v2882_v19, 1 }
0x1009   :  { %v2896_v26 = vadd.f32 %v2895_v44, %v2894_v18  ;;  %v2901_v23 = vadd.f32 %v2900_v60, %v2899_v14  ;;  %v2907_v63 = vrot.slane %v2906_v31, 4 }
0x100a   :  { %v5448_v0 = vpop.eup %5447  ;;  %v2884_v37 = vadd.f32 %v2883_v50, %v2882_v19 }
0x100b   :  { %v2902_v45 = vrot.slane %v2901_v23, 2  ;;  %v2908_v3 = vadd.f32 %v2907_v63, %v2906_v31  ;;  %v2921_v49 = vmul.f32 %v5448_v0, %v6776_v39  ;;  %v2897_v59 = vrot.slane %v2896_v26, 1 }
0x100c   :  { %5455 = vrcp.f32 %v2884_v37 }
0x100d   :  { %v2903_v29 = vadd.f32 %v2902_v45, %v2901_v23  ;;  %v2909_v32 = vrot.slane %v2908_v3, 2  ;;  %v2929_v46 = vmul.f32 %v5570_v41, %v2921_v49  ;;  %v2898_v6 = vadd.f32 %v2897_v59, %v2896_v26  ;;  %v4881_v49 = vld [vmem:[%s7600_s2 + $0x60] sm:$0xf] }
0x100e   :  { %v5450_v47 = vpop.eup %5449 }
0x100f   :  { %v5452_v38 = vpop.eup %5451  ;;  %v2910_v16 = vadd.f32 %v2909_v32, %v2908_v3  ;;  %v2937_v5 = vsel %vm325_vm3, %v2929_v46, 0.0  ;;  %v2922_v24 = vmul.f32 %v5450_v47, %v6780_v22  ;;  %5457 = vrcp.f32 %v2898_v6  ;;  %v4882_v32 = vld [vmem:[%s7600_s2 + $0x64] sm:$0xf] }
0x1010   :  { %2938 = vadd.xlane.f32.xlu1 %v2937_v5  ;;  %v2923_v39 = vmul.f32 %v5452_v38, %v6782_v58  ;;  %v2904_v36 = vrot.slane %v2903_v29, 1 }
0x1011   :  { %v2930_v51 = vmul.f32 %v5570_v41, %v2922_v24  ;;  %v2911_v43 = vrot.slane %v2910_v16, 1 }
0x1012   :  { %v5454_v11 = vpop.eup %5453  ;;  %v2931_v48 = vmul.f32 %v5570_v41, %v2923_v39  ;;  %v2905_v53 = vadd.f32 %v2904_v36, %v2903_v29  ;;  %v4885_v39 = vld [vmem:[%s7600_s2 + $0x70] sm:$0xf] }
0x1013   :  { %v2940_v57 = vsel %vm325_vm3, %v2930_v51, 0.0  ;;  %v2925_v56 = vmul.f32 %v5454_v11, %v6788_v33  ;;  %v2912_v61 = vadd.f32 %v2911_v43, %v2910_v16 }
0x1014   :  { %v2943_v12 = vsel %vm325_vm3, %v2931_v48, 0.0  ;;  %2941 = vadd.xlane.f32.xlu0 %v2940_v57  ;;  %5459 = vrcp.f32 %v2905_v53 }
0x1015   :  { %2944 = vadd.xlane.f32.xlu1 %v2943_v12  ;;  %v2933_v22 = vmul.f32 %v5570_v41, %v2925_v56  ;;  %5461 = vrcp.f32 %v2912_v61 }
0x1017   :  { %v2949_v58 = vsel %vm325_vm3, %v2933_v22, 0.0 }
0x1019   :  { %v5456_v13 = vpop.eup %5455  ;;  %2950 = vadd.xlane.f32.xlu1 %v2949_v58 }
0x101a   :  { %v2924_v42 = vmul.f32 %v5456_v13, %v6792_v34 }
0x101c   :  { %v5458_v18 = vpop.eup %5457  ;;  %v2932_v19 = vmul.f32 %v5570_v41, %v2924_v42  ;;  %v4884_v42 = vld [vmem:[%s7600_s2 + $0x6c] sm:$0xf] }
0x101d   :  { %v2926_v14 = vmul.f32 %v5458_v18, %v6796_v54  ;;  %v2490_v54 = vpop.permute.xlu0 %2489 }
0x101e   :  { %v2946_v33 = vsel %vm325_vm3, %v2932_v19, 0.0  ;;  %v2492_v45 = vmul.f32 %v2490_v54, %v6652_v30 }
0x101f   :  { %2947 = vadd.xlane.f32.xlu0 %v2946_v33  ;;  %v2934_v44 = vmul.f32 %v5570_v41, %v2926_v14 }
0x1021   :  { %v5460_v60 = vpop.eup %5459  ;;  %v2952_v31 = vsel %vm325_vm3, %v2934_v44, 0.0  ;;  %v6836_v59 = vpop.permute.xlu0 %3056 }
0x1022   :  { %v5462_v50 = vpop.eup %5461  ;;  %2953 = vadd.xlane.f32.xlu1 %v2952_v31  ;;  %v2927_v26 = vmul.f32 %v5460_v60, %v5444_v4  ;;  %v6827_v4 = vpop.permute.xlu1 %2482 }
0x1023   :  { %v2928_v23 = vmul.f32 %v5462_v50, %v5446_v10  ;;  %v4886_v50 = vld [vmem:[%s7600_s2 + $0x74] sm:$0xf] }
0x1024   :  { %v2935_v63 = vmul.f32 %v5570_v41, %v2927_v26 }
0x1025   :  { %v2936_v0 = vmul.f32 %v5570_v41, %v2928_v23  ;;  %v4883_v41 = vld [vmem:[%s7600_s2 + $0x68] sm:$0xf] }
0x1026   :  { %v2955_v37 = vsel %vm325_vm3, %v2935_v63, 0.0  ;;  %v6829_v10 = vpop.permute.xlu1 %3038 }
0x1027   :  { %2956 = vadd.xlane.f32.xlu1 %v2955_v37  ;;  %v2958_v34 = vsel %vm325_vm3, %v2936_v0, 0.0 }
0x1028   :  { %2959 = vadd.xlane.f32.xlu0 %v2958_v34 }
0x102a   :  { %v6831_v3 = vpop.permute.xlu1 %3047 }
0x1038   :  { %2494 = vrot.lane.b32.xlu1 %v2492_v45, %s5631_s30 }
0x103c   :  { %3267 = vrot.lane.b32.xlu1 %v6677_v40, %s5629_s15 }
0x1040   :  { %3272 = vrot.lane.b32.xlu1 %v6679_v8, %s5629_s15 }
0x1044   :  { %3282 = vrot.lane.b32.xlu1 %v6679_v8, %s5630_s20 }
0x1099   :  { %v2939_v29 = vpop.xlane.xlu1 %2938 }
0x109a   :  { %v2970_v40 = vmul.f32 %v4881_v49, %v2939_v29 }
0x109c   :  { %v2978_v8 = vsel %vm532_vm4, %v2970_v40, 0.0 }
0x109d   :  { %v2979_v46 = vrot.slane %v2978_v8, 4  ;;  %v2942_v6 = vpop.xlane.xlu0 %2941 }
0x109e   :  { %v2945_v47 = vpop.xlane.xlu1 %2944  ;;  %v2971_v38 = vmul.f32 %v4882_v32, %v2942_v6 }
0x109f   :  { %v2980_v16 = vadd.f32 %v2979_v46, %v2978_v8  ;;  %v2972_v5 = vmul.f32 %v4883_v41, %v2945_v47  ;;  %v4887_v41 = vld [vmem:[%s7600_s2 + $0x78] sm:$0xf]  ;;  %v6874_v46 = vld [vmem:[%s7605_s7] ss:$0 sm:$0xff] }
0x10a0   :  { %v2985_v24 = vsel %vm532_vm4, %v2971_v38, 0.0 }
0x10a1   :  { %v2981_v36 = vrot.slane %v2980_v16, 2  ;;  %v2992_v51 = vsel %vm532_vm4, %v2972_v5, 0.0  ;;  %v2986_v43 = vrot.slane %v2985_v24, 4 }
0x10a2   :  { %v2993_v11 = vrot.slane %v2992_v51, 4  ;;  %v2951_v48 = vpop.xlane.xlu1 %2950 }
0x10a3   :  { %v2982_v53 = vadd.f32 %v2981_v36, %v2980_v16  ;;  %v2987_v57 = vadd.f32 %v2986_v43, %v2985_v24  ;;  %v2974_v56 = vmul.f32 %v4885_v39, %v2951_v48  ;;  %v2485_v48 = vmul.f32 %v6827_v4, %v6652_v30 }
0x10a4   :  { %v2994_v61 = vadd.f32 %v2993_v11, %v2992_v51 }
0x10a5   :  { %v2988_v12 = vrot.slane %v2987_v57, 2  ;;  %v3006_v22 = vsel %vm532_vm4, %v2974_v56, 0.0  ;;  %v2983_v18 = vrot.slane %v2982_v53, 1 }
0x10a6   :  { %v2995_v58 = vrot.slane %v2994_v61, 2  ;;  %v3007_v13 = vrot.slane %v3006_v22, 4 }
0x10a7   :  { %v2989_v19 = vadd.f32 %v2988_v12, %v2987_v57  ;;  %v6857_v63 = vadd.f32 %v2983_v18, %v2982_v53 }
0x10a8   :  { %v2996_v14 = vadd.f32 %v2995_v58, %v2994_v61  ;;  %v3008_v33 = vadd.f32 %v3007_v13, %v3006_v22  ;;  %v2948_v44 = vpop.xlane.xlu0 %2947  ;;  %v3050_v61 = vmul.f32 %v6831_v3, %v6608_v25 }
0x10a9   :  { %v2990_v60 = vrot.slane %v2989_v19, 1  ;;  %v2973_v31 = vmul.f32 %v4884_v42, %v2948_v44  ;;  %v3061_v6 = vmul.f32 %v6874_v46, %v6857_v63 }
0x10aa   :  { %v2997_v26 = vrot.slane %v2996_v14, 1  ;;  %v3009_v23 = vrot.slane %v3008_v33, 2 }
0x10ab   :  { %v6859_v0 = vadd.f32 %v2990_v60, %v2989_v19  ;;  %v2999_v37 = vsel %vm532_vm4, %v2973_v31, 0.0  ;;  %v2954_v34 = vpop.xlane.xlu1 %2953 }
0x10ac   :  { %v6862_v54 = vadd.f32 %v2997_v26, %v2996_v14  ;;  %v3010_v45 = vadd.f32 %v3009_v23, %v3008_v33  ;;  %v3000_v49 = vrot.slane %v2999_v37, 4  ;;  %v2975_v29 = vmul.f32 %v4886_v50, %v2954_v34 }
0x10ad   :  { %v3062_v40 = vmul.f32 %v6583_v2, %v6859_v0  ;;  %v3041_v14 = vmul.f32 %v6829_v10, %v6238_v52 }
0x10ae   :  { %v3063_v32 = vmul.f32 %v6583_v2, %v6862_v54  ;;  %v3001_v8 = vadd.f32 %v3000_v49, %v2999_v37  ;;  %v3011_v38 = vrot.slane %v3010_v45, 1  ;;  %v3013_v16 = vsel %vm532_vm4, %v2975_v29, 0.0  ;;  %v4888_v2 = vld [vmem:[%s7600_s2 + $0x7c] sm:$0xf] }
0x10af   :  { %v3077_v47 = vrot.slane %v3062_v40, 7  ;;  %v3014_v39 = vrot.slane %v3013_v16, 4  ;;  %v3051_v50 = vadd.f32 %v3050_v61, %v3041_v14  ;;  %v6945_v61 = vld [vmem:[%s7608_s10 + $0x38] sm:$0xff] }
0x10b0   :  { %v3079_v5 = vrot.slane %v3063_v32, 6  ;;  %v3002_v24 = vrot.slane %v3001_v8, 2  ;;  %v2957_v36 = vpop.xlane.xlu1 %2956  ;;  %v6887_v12 = vadd.f32 %v3011_v38, %v3010_v45 }
0x10b1   :  { %v3078_v51 = vsel %vm612_vm5, %v3077_v47, %v3061_v6  ;;  %v2976_v43 = vmul.f32 %v4887_v41, %v2957_v36  ;;  %v2960_v11 = vpop.xlane.xlu0 %2959  ;;  %v3015_v57 = vadd.f32 %v3014_v39, %v3013_v16  ;;  %v6910_v47 = vld [vmem:[%s7608_s10 + $0x58] sm:$0xff]  ;;  %v6921_v39 = vld [vmem:[%s7608_s10 + $0x50] sm:$0xff] }
0x10b2   :  { %v3003_v53 = vadd.f32 %v3002_v24, %v3001_v8  ;;  %v2977_v56 = vmul.f32 %v4888_v2, %v2960_v11  ;;  %v3080_v58 = vsel %vm615_vm6, %v3079_v5, %v3078_v51  ;;  %v3065_v26 = vmul.f32 %v6874_v46, %v6887_v12  ;;  %v6928_v51 = vld [vmem:[%s7608_s10 + $0x48] sm:$0xff] }
0x10b3   :  { %v3020_v22 = vsel %vm532_vm4, %v2976_v43, 0.0  ;;  %v3016_v42 = vrot.slane %v3015_v57, 2 }
0x10b4   :  { %v3004_v13 = vrot.slane %v3003_v53, 1  ;;  %v3021_v18 = vrot.slane %v3020_v22, 4  ;;  %v2495_v19 = vpop.permute.xlu1 %2494  ;;  %v3027_v33 = vsel %vm532_vm4, %v2977_v56, 0.0  ;;  %v3083_v8 = vrot.slane %v3065_v26, 4  ;;  %v5585_v26 = vld [vmem:[%s7602_s4] sm:$0xff] }
0x10b5   :  { %v6894_v4 = vsel %vm46_vm13, %v2485_v48, %v2495_v19  ;;  %v3017_v3 = vadd.f32 %v3016_v42, %v3015_v57  ;;  %v3028_v23 = vrot.slane %v3027_v33, 4  ;;  %v3187_v42 = vsel %vm612_vm5, %v6859_v0, %v6857_v63  ;;  %v6973_v19 = vld [vmem:[%s7608_s10 + $0x20] sm:$0xff]  ;;  %v6983_v0 = vld [vmem:[%s7608_s10 + $0x18] sm:$0xff] }
0x10b6   :  { %v3005_v44 = vadd.f32 %v3004_v13, %v3003_v53  ;;  %v3022_v60 = vadd.f32 %v3021_v18, %v3020_v22  ;;  %v3059_v31 = vmul.f32 %v6836_v59, %v6894_v4  ;;  %v6937_v53 = vld [vmem:[%s7608_s10 + $0x40] sm:$0xff]  ;;  %v6953_v13 = vld [vmem:[%s7608_s10 + $0x30] sm:$0xff]  ;;  %v6966_v18 = vld [vmem:[%s7608_s10 + $0x28] sm:$0xff]  ;;  %v3188_v14 = vsel %vm615_vm6, %v6862_v54, %v3187_v42 }
0x10b7   :  { %v3018_v34 = vrot.slane %v3017_v3, 1  ;;  %v3029_v49 = vadd.f32 %v3028_v23, %v3027_v33  ;;  %v6990_v33 = vld [vmem:[%s7608_s10 + $0x10] sm:$0xff]  ;;  %v5588_v42 = vld [vmem:[%s7604_s6 + $0x8] sm:$0xff] }
0x10b8   :  { %v3064_v37 = vmul.f32 %v6874_v46, %v3005_v44  ;;  %v3023_v10 = vrot.slane %v3022_v60, 2  ;;  %v6902_v45 = vadd.f32 %v3059_v31, %v3051_v50  ;;  %v3189_v63 = vsel %vm618_vm7, %v3005_v44, %v3188_v14  ;;  %v5582_v44 = vld [vmem:[%s7608_s10 + $0x8] sm:$0xff]  ;;  %v5583_v31 = vld [vmem:[%s7608_s10] sm:$0xff] }
0x10b9   :  { %v3019_v40 = vadd.f32 %v3018_v34, %v3017_v3  ;;  %v3030_v41 = vrot.slane %v3029_v49, 2  ;;  %v3190_v54 = vsel %vm621_vm8, %v6887_v12, %v3189_v63  ;;  %v5584_v12 = vld [vmem:[%s7602_s4 + $0x8] sm:$0xff]  ;;  %v3268_v34 = vpop.permute.xlu1 %3267  ;;  %v5589_v14 = vld [vmem:[%s7604_s6] sm:$0xff]  ;;  %s5638_s4 = smov 53  }
0x10ba   :  { %v3081_v29 = vrot.slane %v3064_v37, 5  ;;  %v3024_v32 = vadd.f32 %v3023_v10, %v3022_v60  ;;  %5202 = vmatmul.mubr.msk.f32.vlgmr.msra.gmra.mxu1 %vm644_vm14, %v6902_v45  ;;  %v7045_v63 = vld [vmem:[%s7598_s0 + $0x20] sm:$0xff] }
0x10bb   :  { %v3066_v59 = vmul.f32 %v6874_v46, %v3019_v40  ;;  %5205 = vmatpush3.msra.mxu1 %v6910_v47  ;;  %5228 = vmatprep.mubr.msk.f32.mxu1 %vm5626_vm0, %v5625_v1  ;;  %v3031_v16 = vadd.f32 %v3030_v41, %v3029_v49  ;;  %v3191_v3 = vsel %vm624_vm9, %v3019_v40, %v3190_v54 }
0x10bc   :  { %v3025_v6 = vrot.slane %v3024_v32, 1  ;;  %v3082_v38 = vsel %vm618_vm7, %v3081_v29, %v3080_v58  ;;  %5206 = vmatprep.subr.mxu1 %v5625_v1 }
0x10bd   :  { %v3084_v2 = vsel %vm621_vm8, %v3083_v8, %v3082_v38  ;;  %v3085_v5 = vrot.slane %v3066_v59, 3  ;;  %5207 = vmatpush3.msra.mxu1 %v6921_v39  ;;  %v3032_v36 = vrot.slane %v3031_v16, 1 }
0x10be   :  { %v3026_v24 = vadd.f32 %v3025_v6, %v3024_v32  ;;  %5208 = vmatprep.subr.mxu1 %v5625_v1  ;;  %v3273_v32 = vpop.permute.xlu1 %3272 }
0x10bf   :  { %5209 = vmatpush3.msra.mxu1 %v6928_v51  ;;  %v3086_v11 = vsel %vm624_vm9, %v3085_v5, %v3084_v2  ;;  %v3033_v48 = vadd.f32 %v3032_v36, %v3031_v16 }
0x10c0   :  { %v3067_v43 = vmul.f32 %v6874_v46, %v3026_v24  ;;  %5210 = vmatprep.subr.mxu1 %v5625_v1  ;;  %v3192_v60 = vsel %vm627_vm10, %v3026_v24, %v3191_v3 }
0x10c1   :  { %5211 = vmatpush3.msra.mxu1 %v6937_v53  ;;  %v3068_v56 = vmul.f32 %v6874_v46, %v3033_v48  ;;  %v3193_v50 = vsel %vm630_vm11, %v3033_v48, %v3192_v60 }
0x10c2   :  { %v3087_v57 = vrot.slane %v3067_v43, 2  ;;  %5212 = vmatprep.subr.mxu1 %v5625_v1  ;;  %v3283_v16 = vpop.permute.xlu1 %3282 }
0x10c3   :  { %5213 = vmatpush3.msra.mxu1 %v6945_v61  ;;  %v3089_v58 = vrot.slane %v3068_v56, 1 }
0x10c4   :  { %v3088_v22 = vsel %vm627_vm10, %v3087_v57, %v3086_v11  ;;  %5214 = vmatprep.subr.mxu1 %v5625_v1 }
0x10c5   :  { %5215 = vmatpush3.msra.mxu1 %v6953_v13  ;;  %v6958_v46 = vsel %vm630_vm11, %v3089_v58, %v3088_v22  ;;  %v5586_v22 = vld [vmem:[%s7604_s6 + $0x18] sm:$0xff]  ;;  %v5587_v58 = vld [vmem:[%s7604_s6 + $0x10] sm:$0xff]  ;;  %s5634_s6 = smov 48  }
0x10c6   :  { %5216 = vmatprep.subr.mxu1 %v5625_v1 }
0x10c7   :  { %5217 = vmatpush3.msra.mxu1 %v6966_v18 }
0x10c8   :  { %5218 = vmatprep.subr.mxu1 %v5625_v1 }
0x10c9   :  { %5219 = vmatpush3.msra.mxu1 %v6973_v19 }
0x10ca   :  { %5220 = vmatprep.subr.mxu1 %v5625_v1 }
0x10cb   :  { %5221 = vmatpush3.msra.mxu1 %v6983_v0 }
0x10cc   :  { %5222 = vmatprep.subr.mxu1 %v5625_v1 }
0x10cd   :  { %5223 = vmatpush3.msra.mxu1 %v6990_v33 }
0x10ce   :  { %5224 = vmatprep.subr.mxu1 %v5625_v1 }
0x10cf   :  { %5225 = vmatpush3.msra.mxu1 %v5582_v44 }
0x10d0   :  { %5226 = vmatprep.subr.mxu1 %v5625_v1 }
0x10d1   :  { %5227 = vmatpush3.msra.mxu1 %v5583_v31 }
0x10d2   :  { %5229 = vmatmul.mubr.msk.f32.vlgmr.msra.gmra.mxu1 %vm633_vm12, %v3193_v50  ;;  %5276 = vmatprep.subr.mxu1 %v5625_v1 }
0x10d3   :  { %5277 = vmatpush3.msra.mxu1 %v5584_v12  ;;  %5280 = vmatprep.mubr.msk.f32.mxu1 %vm5626_vm0, %v5625_v1 }
0x10d4   :  { %5278 = vmatprep.subr.mxu1 %v5625_v1 }
0x10d5   :  { %5279 = vmatpush3.msra.mxu1 %v5585_v26 }
0x117a   :  { %v3175_v23 = vpop.f32.mrf.mxu1 }
0x117c   :  { %v5203_v37 = vpop.f32.mrf.mxu1 }
0x1192   :  { %v3262_v10 = vpop.f32.mrf.mxu1 }
0x1193   :  { %v3263_v49 = vadd.f32 %v3262_v10, %v3175_v23 }
0x1194   :  { %v5230_v29 = vpop.f32.mrf.mxu1 }
0x1195   :  { %v3270_v40 = vadd.f32 %v3268_v34, %v3263_v49  ;;  %v4897_v34 = vld [vmem:[%s7599_s1 + $0x80] sm:$0xf] }
0x1197   :  { %v3275_v8 = vadd.f32 %v3273_v32, %v3270_v40 }
0x1199   :  { %v4894_v41 = vmul.f32 -1.442695, %v3275_v8  ;;  %v4903_v8 = vld [vmem:[%s7599_s1 + $0x98] sm:$0xf] }
0x119b   :  { %5463 = vpow2.f32 %v4894_v41  ;;  %v4898_v41 = vld [vmem:[%s7599_s1 + $0x84] sm:$0xf] }
0x11a8   :  { %v5464_v59 = vpop.eup %5463 }
0x11a9   :  { %v3279_v6 = vadd.f32 1.0, %v5464_v59 }
0x11ab   :  { %5465 = vrcp.f32 %v3279_v6 }
0x11b8   :  { %v5466_v38 = vpop.eup %5465 }
0x11b9   :  { %v3285_v2 = vmul.f32 %v5466_v38, %v3283_v16  ;;  %v3292_v43 = vsub.f32 1.0, %v5466_v38  ;;  %v3298_v48 = vmul.f32 %v5466_v38, %v6652_v30 }
0x11bb   :  { %3287 = vrot.lane.b32.xlu1 %v3285_v2, %s5631_s30  ;;  %v4899_v2 = vld [vmem:[%s7599_s1 + $0x88] sm:$0xf] }
0x122d   :  { %v3288_v5 = vpop.permute.xlu1 %3287 }
0x122e   :  { %v3290_v24 = vadd.f32 %v3288_v5, %v3270_v40 }
0x1230   :  { %5467 = vtanh.f32 %v3290_v24 }
0x123d   :  { %v5468_v36 = vpop.eup %5467 }
0x123e   :  { %3294 = vrot.lane.b32.xlu0 %v5468_v36, %s5629_s15 }
0x12b0   :  { %v3295_v11 = vpop.permute.xlu0 %3294 }
0x12b1   :  { %v3297_v57 = vmul.f32 %v3295_v11, %v3292_v43  ;;  %v4901_v11 = vld [vmem:[%s7599_s1 + $0x90] sm:$0xf] }
0x12b3   :  { %v7020_v56 = vadd.f32 %v3298_v48, %v3297_v57 }
0x12b5   :  { %5236 = vmatmul.mubr.msk.f32.vlgmr.msra.gmra.mxu0 %vm46_vm13, %v7020_v56 }
0x12b6   :  { %5239 = vmatpush3.msra.mxu0 %v5586_v22  ;;  %5246 = vmatprep.mubr.msk.f32.mxu0 %vm5626_vm0, %v5625_v1 }
0x12b7   :  { %5240 = vmatprep.subr.mxu0 %v5625_v1 }
0x12b8   :  { %5241 = vmatpush3.msra.mxu0 %v5587_v58  ;;  %v4900_v58 = vld [vmem:[%s7599_s1 + $0x8c] sm:$0xf] }
0x12b9   :  { %5242 = vmatprep.subr.mxu0 %v5625_v1 }
0x12ba   :  { %5243 = vmatpush3.msra.mxu0 %v5588_v42 }
0x12bb   :  { %5244 = vmatprep.subr.mxu0 %v5625_v1 }
0x12bc   :  { %5245 = vmatpush3.msra.mxu0 %v5589_v14 }
0x12bd   :  { %5249 = vmatprep.subr.mxu0 %v5625_v1 }
0x1375   :  { %v7047_v54 = vpop.f32.mrf.mxu0 }
0x1376   :  { %v3392_v44 = vadd.f32 %v7045_v63, %v7047_v54 }
0x1377   :  { %v5237_v3 = vpop.f32.mrf.mxu0 }
0x1378   :  { %v3403_v60 = vcombine.high %v3392_v44, %v3392_v44  ;;  %v3410_v31 = vrot.slane %v3392_v44, %v5729_v9  ;;  %v4902_v3 = vld [vmem:[%s7599_s1 + $0x94] sm:$0xf] }
0x137a   :  { %v3417_v50 = vrot.slane %v3403_v60, %v5729_v9  ;;  %v3418_v12 = vcombine.high %v3410_v31, %v3410_v31  ;;  %v3426_v26 = vrot.slane %v3410_v31, %v5729_v9 }
0x137c   :  { %v3433_v23 = vrot.slane %v3417_v50, %v5729_v9  ;;  %v3440_v37 = vrot.slane %v3418_v12, %v5729_v9  ;;  %v3455_v10 = vrot.slane %v3426_v26, %v5736_v15  ;;  %v3448_v29 = vcombine.high %v3426_v26, %v3426_v26 }
0x137d   :  { %v3419_v5 = vcombine.high %v3417_v50, %v3417_v50  ;;  %v4904_v50 = vld [vmem:[%s7599_s1 + $0x9c] sm:$0xf] }
0x137e   :  { %v3449_v49 = vcombine.high %v3433_v23, %v3433_v23  ;;  %v3492_v40 = vmul.f32 %v4897_v34, %v3455_v10  ;;  %v3459_v32 = vrot.slane %v3440_v37, %v5736_v15  ;;  %v3463_v16 = vrot.slane %v3448_v29, %v5736_v15 }
0x137f   :  { %v3471_v36 = vrot.slane %v3433_v23, %v5736_v15  ;;  %v3450_v43 = vcombine.high %v3440_v37, %v3440_v37  ;;  %v3447_v22 = vrot.slane %v3419_v5, %v5729_v9 }
0x1380   :  { %v3479_v59 = vrot.slane %v3449_v49, %v5736_v15  ;;  %3532 = vrot.lane.b32.xlu1 %v3492_v40, %s5628_s29  ;;  %v3493_v38 = vmul.f32 %v4898_v41, %v3459_v32  ;;  %v3494_v24 = vmul.f32 %v4899_v2, %v3463_v16  ;;  %v3500_v26 = vsel %vm227_vm1, %v3492_v40, 0.0 }
0x1381   :  { %v3496_v48 = vmul.f32 %v4901_v11, %v3471_v36  ;;  %v3467_v57 = vrot.slane %v3450_v43, %v5736_v15  ;;  %v3475_v14 = vrot.slane %v3447_v22, %v5736_v15  ;;  %v3451_v44 = vcombine.high %v3447_v22, %v3447_v22 }
0x1382   :  { %v3498_v6 = vmul.f32 %v4903_v8, %v3479_v59  ;;  %v3506_v23 = vsel %vm227_vm1, %v3494_v24, 0.0  ;;  %v3503_v49 = vsel %vm227_vm1, %v3493_v38, 0.0 }
0x1383   :  { %v3495_v42 = vmul.f32 %v4900_v58, %v3467_v57  ;;  %v3497_v60 = vmul.f32 %v4902_v3, %v3475_v14  ;;  %v3483_v31 = vrot.slane %v3451_v44, %v5736_v15  ;;  %v3512_v34 = vsel %vm227_vm1, %v3496_v48, 0.0  ;;  %v5590_v58 = vld [vmem:[%s7598_s0 + $0x18] sm:$0xff]  ;;  %v4913_v14 = vld [vmem:[%s7601_s3 + $0xe8] sm:$0xff]  ;;  %v4914_v44 = vld [vmem:[%s7601_s3 + $0xf0] sm:$0xff] }
0x1384   :  { %3544 = vrot.lane.b32.xlu0 %v3498_v6, %s5628_s29  ;;  %3534 = vrot.lane.b32.xlu1 %v3493_v38, %s5628_s29  ;;  %v3518_v59 = vsel %vm227_vm1, %v3498_v6, 0.0  ;;  %v4916_v3 = vld [vmem:[%s7601_s3 + $0x100] sm:$0xff] }
0x1385   :  { %v3499_v12 = vmul.f32 %v4904_v50, %v3483_v31  ;;  %v3509_v37 = vsel %vm227_vm1, %v3495_v42, 0.0  ;;  %v3515_v10 = vsel %vm227_vm1, %v3497_v60, 0.0 }
0x1387   :  { %v3521_v38 = vsel %vm227_vm1, %v3499_v12, 0.0 }
0x1388   :  { %3536 = vrot.lane.b32.xlu1 %v3494_v24, %s5628_s29 }
0x138c   :  { %3540 = vrot.lane.b32.xlu1 %v3496_v48, %s5628_s29 }
0x1390   :  { %3538 = vrot.lane.b32.xlu1 %v3495_v42, %s5628_s29  ;;  %v3305_v42 = vsub.f32 1.0, %v5590_v58 }
0x1394   :  { %3542 = vrot.lane.b32.xlu1 %v3497_v60, %s5628_s29  ;;  %v4915_v60 = vld [vmem:[%s7601_s3 + $0xf8] sm:$0xff] }
0x1398   :  { %3546 = vrot.lane.b32.xlu1 %v3499_v12, %s5628_s29 }
0x13a3   :  { %3501 = vadd.xlane.f32.xlu0 %v3500_v26 }
0x13a7   :  { %3507 = vadd.xlane.f32.xlu0 %v3506_v23 }
0x13ab   :  { %3510 = vadd.xlane.f32.xlu0 %v3509_v37 }
0x13af   :  { %3513 = vadd.xlane.f32.xlu0 %v3512_v34 }
0x13b3   :  { %3516 = vadd.xlane.f32.xlu0 %v3515_v10 }
0x13bc   :  { %3504 = vadd.xlane.f32.xlu1 %v3503_v49 }
0x13f2   :  { %v3533_v29 = vpop.permute.xlu1 %3532 }
0x13f3   :  { %v3556_v32 = vsel %vm227_vm1, %v3533_v29, 0.0 }
0x13f4   :  { %3557 = vadd.xlane.f32.xlu0 %v3556_v32 }
0x13f6   :  { %v3535_v40 = vpop.permute.xlu1 %3534  ;;  %v3545_v48 = vpop.permute.xlu0 %3544 }
0x13f7   :  { %v3559_v8 = vsel %vm227_vm1, %v3535_v40, 0.0  ;;  %v3574_v6 = vsel %vm227_vm1, %v3545_v48, 0.0 }
0x13f8   :  { %3560 = vadd.xlane.f32.xlu0 %v3559_v8 }
0x13fa   :  { %v3537_v41 = vpop.permute.xlu1 %3536 }
0x13fb   :  { %v3562_v16 = vsel %vm227_vm1, %v3537_v41, 0.0 }
0x13fc   :  { %3519 = vadd.xlane.f32.xlu0 %v3518_v59  ;;  %3563 = vadd.xlane.f32.xlu1 %v3562_v16 }
0x13fe   :  { %v3541_v2 = vpop.permute.xlu1 %3540 }
0x13ff   :  { %v3568_v5 = vsel %vm227_vm1, %v3541_v2, 0.0 }
0x1400   :  { %3569 = vadd.xlane.f32.xlu1 %v3568_v5  ;;  %3522 = vadd.xlane.f32.xlu0 %v3521_v38 }
0x1402   :  { %v3539_v24 = vpop.permute.xlu1 %3538 }
0x1403   :  { %v3565_v36 = vsel %vm227_vm1, %v3539_v24, 0.0 }
0x1404   :  { %3566 = vadd.xlane.f32.xlu1 %v3565_v36 }
0x1406   :  { %v3543_v43 = vpop.permute.xlu1 %3542 }
0x1407   :  { %v3571_v11 = vsel %vm227_vm1, %v3543_v43, 0.0 }
0x1408   :  { %3572 = vadd.xlane.f32.xlu1 %v3571_v11 }
0x140a   :  { %v3547_v57 = vpop.permute.xlu1 %3546 }
0x140b   :  { %v3577_v22 = vsel %vm227_vm1, %v3547_v57, 0.0 }
0x140c   :  { %3575 = vadd.xlane.f32.xlu1 %v3574_v6 }
0x1410   :  { %3578 = vadd.xlane.f32.xlu1 %v3577_v22 }
0x1416   :  { %3308 = vperm.xlu0 %5309, %v3305_v42  }
0x141a   :  { %5312 = vset.pattern.permute.xlu0 %v5633_v35 }
0x141b   :  { %3884 = vperm.xlu0 %5312, %v4916_v3  }
0x141f   :  { %5313 = vset.pattern.permute.xlu0 %v5632_v7 }
0x1421   :  { %3857 = vperm.xlu1 %5307, %v4913_v14  }
0x1425   :  { %3866 = vperm.xlu1 %5307, %v4914_v44  }
0x1429   :  { %5310 = vset.pattern.permute.xlu1 %v5632_v7 }
0x142a   :  { %3301 = vperm.xlu1 %5310, %v5590_v58  }
0x142c   :  { %v3502_v31 = vpop.xlane.xlu0 %3501 }
0x142e   :  { %5311 = vset.pattern.permute.xlu1 %v5633_v35 }
0x142f   :  { %3875 = vperm.xlu1 %5311, %v4915_v60  }
0x1430   :  { %v3508_v50 = vpop.xlane.xlu0 %3507 }
0x1434   :  { %v3511_v12 = vpop.xlane.xlu0 %3510 }
0x1438   :  { %v3514_v26 = vpop.xlane.xlu0 %3513 }
0x143c   :  { %v3517_v23 = vpop.xlane.xlu0 %3516 }
0x1445   :  { %v3505_v49 = vpop.xlane.xlu1 %3504 }
0x147d   :  { %v3558_v37 = vpop.xlane.xlu0 %3557 }
0x147e   :  { %v3580_v34 = vsel %vm308_vm2, %v3502_v31, %v3558_v37 }
0x147f   :  { %v3588_v10 = vmul.f32 0.25, %v3580_v34 }
0x1481   :  { %v3596_v29 = vsel %vm325_vm3, %v3588_v10, -inf  ;;  %v3561_v32 = vpop.xlane.xlu0 %3560 }
0x1482   :  { %v3597_v40 = vrot.slane %v3596_v29, 4  ;;  %v3581_v8 = vsel %vm308_vm2, %v3505_v49, %v3561_v32 }
0x1483   :  { %v3589_v41 = vmul.f32 0.25, %v3581_v8 }
0x1484   :  { %v3598_v59 = vmax.f32 %v3596_v29, %v3597_v40 }
0x1485   :  { %v3603_v16 = vsel %vm325_vm3, %v3589_v41, -inf  ;;  %v3564_v2 = vpop.xlane.xlu1 %3563 }
0x1486   :  { %v3599_v5 = vrot.slane %v3598_v59, 2  ;;  %v3604_v38 = vrot.slane %v3603_v16, 4  ;;  %v3582_v24 = vsel %vm308_vm2, %v3508_v50, %v3564_v2 }
0x1487   :  { %v3590_v36 = vmul.f32 0.25, %v3582_v24 }
0x1488   :  { %v3600_v43 = vmax.f32 %v3598_v59, %v3599_v5  ;;  %v3605_v11 = vmax.f32 %v3603_v16, %v3604_v38 }
0x1489   :  { %v3610_v48 = vsel %vm325_vm3, %v3590_v36, -inf  ;;  %v3570_v6 = vpop.xlane.xlu1 %3569 }
0x148a   :  { %v3601_v57 = vrot.slane %v3600_v43, 1  ;;  %v3606_v22 = vrot.slane %v3605_v11, 2  ;;  %v3611_v58 = vrot.slane %v3610_v48, 4  ;;  %v3584_v42 = vsel %vm308_vm2, %v3514_v26, %v3570_v6 }
0x148b   :  { %v3592_v14 = vmul.f32 0.25, %v3584_v42 }
0x148c   :  { %v3602_v44 = vmax.f32 %v3600_v43, %v3601_v57  ;;  %v3607_v3 = vmax.f32 %v3605_v11, %v3606_v22  ;;  %v3612_v60 = vmax.f32 %v3610_v48, %v3611_v58  ;;  %v3520_v48 = vpop.xlane.xlu0 %3519 }
0x148d   :  { %v3624_v31 = vsel %vm325_vm3, %v3592_v14, -inf  ;;  %v3567_v37 = vpop.xlane.xlu1 %3566 }
0x148e   :  { %v3652_v34 = vsub.f32 %v3588_v10, %v3602_v44  ;;  %v3608_v50 = vrot.slane %v3607_v3, 1  ;;  %v3613_v49 = vrot.slane %v3612_v60, 2  ;;  %v3625_v29 = vrot.slane %v3624_v31, 4 }
0x148f   :  { %v3583_v32 = vsel %vm308_vm2, %v3511_v12, %v3567_v37 }
0x1490   :  { %v3660_v40 = vmul.f32 1.442695, %v3652_v34  ;;  %v3609_v8 = vmax.f32 %v3607_v3, %v3608_v50  ;;  %v3614_v59 = vmax.f32 %v3612_v60, %v3613_v49  ;;  %v3626_v16 = vmax.f32 %v3624_v31, %v3625_v29 }
0x1491   :  { %v3591_v2 = vmul.f32 0.25, %v3583_v32  ;;  %v3573_v5 = vpop.xlane.xlu1 %3572  ;;  %v3523_v32 = vpop.xlane.xlu0 %3522 }
0x1492   :  { %5469 = vpow2.f32 %v3660_v40  ;;  %v3653_v26 = vsub.f32 %v3589_v41, %v3609_v8  ;;  %v3615_v38 = vrot.slane %v3614_v59, 1  ;;  %v3627_v24 = vrot.slane %v3626_v16, 2 }
0x1493   :  { %v3617_v43 = vsel %vm325_vm3, %v3591_v2, -inf  ;;  %v3585_v11 = vsel %vm308_vm2, %v3517_v23, %v3573_v5 }
0x1494   :  { %v3662_v10 = vmul.f32 1.442695, %v3653_v26  ;;  %v3616_v6 = vmax.f32 %v3614_v59, %v3615_v38  ;;  %v3628_v57 = vmax.f32 %v3626_v16, %v3627_v24  ;;  %v3618_v22 = vrot.slane %v3617_v43, 4 }
0x1495   :  { %v3593_v12 = vmul.f32 0.25, %v3585_v11  ;;  %v3576_v58 = vpop.xlane.xlu1 %3575 }
0x1496   :  { %5471 = vpow2.f32 %v3662_v10  ;;  %v3654_v42 = vsub.f32 %v3590_v36, %v3616_v6  ;;  %v3629_v44 = vrot.slane %v3628_v57, 1  ;;  %v3619_v3 = vmax.f32 %v3617_v43, %v3618_v22 }
0x1497   :  { %v3631_v60 = vsel %vm325_vm3, %v3593_v12, -inf  ;;  %v3586_v41 = vsel %vm308_vm2, %v3520_v48, %v3576_v58 }
0x1498   :  { %v3664_v31 = vmul.f32 1.442695, %v3654_v42  ;;  %v3630_v37 = vmax.f32 %v3628_v57, %v3629_v44  ;;  %v3620_v34 = vrot.slane %v3619_v3, 2  ;;  %v3632_v50 = vrot.slane %v3631_v60, 4 }
0x1499   :  { %v3594_v23 = vmul.f32 0.25, %v3586_v41  ;;  %v3579_v49 = vpop.xlane.xlu1 %3578 }
0x149a   :  { %5473 = vpow2.f32 %v3664_v31  ;;  %v3656_v29 = vsub.f32 %v3592_v14, %v3630_v37  ;;  %v3621_v40 = vmax.f32 %v3619_v3, %v3620_v34  ;;  %v3633_v8 = vmax.f32 %v3631_v60, %v3632_v50 }
0x149b   :  { %v3638_v59 = vsel %vm325_vm3, %v3594_v23, -inf  ;;  %v3587_v36 = vsel %vm308_vm2, %v3523_v32, %v3579_v49 }
0x149c   :  { %v3668_v16 = vmul.f32 1.442695, %v3656_v29  ;;  %v3622_v5 = vrot.slane %v3621_v40, 1  ;;  %v3634_v26 = vrot.slane %v3633_v8, 2  ;;  %v3639_v38 = vrot.slane %v3638_v59, 4 }
0x149d   :  { %v3595_v24 = vmul.f32 0.25, %v3587_v36 }
0x149e   :  { %5475 = vpow2.f32 %v3668_v16  ;;  %v3623_v43 = vmax.f32 %v3621_v40, %v3622_v5  ;;  %v3635_v11 = vmax.f32 %v3633_v8, %v3634_v26  ;;  %v3640_v10 = vmax.f32 %v3638_v59, %v3639_v38 }
0x149f   :  { %v7147_v48 = vpop.eup %5469  ;;  %v3645_v14 = vsel %vm325_vm3, %v3595_v24, -inf }
0x14a0   :  { %v3676_v6 = vsel %vm325_vm3, %v7147_v48, 0.0  ;;  %v3655_v57 = vsub.f32 %v3591_v2, %v3623_v43  ;;  %v3636_v22 = vrot.slane %v3635_v11, 1  ;;  %v3641_v58 = vrot.slane %v3640_v10, 2 }
0x14a1   :  { %v3677_v42 = vrot.slane %v3676_v6, 4  ;;  %v3646_v44 = vrot.slane %v3645_v14, 4 }
0x14a2   :  { %v3666_v3 = vmul.f32 1.442695, %v3655_v57  ;;  %v3637_v60 = vmax.f32 %v3635_v11, %v3636_v22  ;;  %v3642_v41 = vmax.f32 %v3640_v10, %v3641_v58 }
0x14a3   :  { %v7152_v31 = vpop.eup %5471  ;;  %v3678_v37 = vadd.f32 %v3677_v42, %v3676_v6  ;;  %v3647_v34 = vmax.f32 %v3645_v14, %v3646_v44 }
0x14a4   :  { %v3683_v50 = vsel %vm325_vm3, %v7152_v31, 0.0  ;;  %5477 = vpow2.f32 %v3666_v3  ;;  %v3657_v49 = vsub.f32 %v3593_v12, %v3637_v60  ;;  %v3643_v29 = vrot.slane %v3642_v41, 1 }
0x14a5   :  { %v3679_v32 = vrot.slane %v3678_v37, 2  ;;  %v3684_v40 = vrot.slane %v3683_v50, 4  ;;  %v3648_v2 = vrot.slane %v3647_v34, 2 }
0x14a6   :  { %v3670_v8 = vmul.f32 1.442695, %v3657_v49  ;;  %v3644_v59 = vmax.f32 %v3642_v41, %v3643_v29 }
0x14a7   :  { %v7156_v36 = vpop.eup %5473  ;;  %v3680_v16 = vadd.f32 %v3679_v32, %v3678_v37  ;;  %v3685_v5 = vadd.f32 %v3684_v40, %v3683_v50  ;;  %v3649_v26 = vmax.f32 %v3647_v34, %v3648_v2 }
0x14a8   :  { %v3690_v38 = vsel %vm325_vm3, %v7156_v36, 0.0  ;;  %5479 = vpow2.f32 %v3670_v8  ;;  %v3658_v43 = vsub.f32 %v3594_v23, %v3644_v59 }
0x14a9   :  { %v3686_v11 = vrot.slane %v3685_v5, 2  ;;  %v3691_v10 = vrot.slane %v3690_v38, 4  ;;  %v3650_v14 = vrot.slane %v3649_v26, 1  ;;  %v3681_v12 = vrot.slane %v3680_v16, 1 }
0x14aa   :  { %v3672_v6 = vmul.f32 1.442695, %v3658_v43 }
0x14ab   :  { %v7160_v57 = vpop.eup %5475  ;;  %v3687_v22 = vadd.f32 %v3686_v11, %v3685_v5  ;;  %v3692_v58 = vadd.f32 %v3691_v10, %v3690_v38  ;;  %v3651_v42 = vmax.f32 %v3649_v26, %v3650_v14  ;;  %v3682_v3 = vadd.f32 %v3681_v12, %v3680_v16 }
0x14ac   :  { %v3704_v44 = vsel %vm325_vm3, %v7160_v57, 0.0  ;;  %5481 = vpow2.f32 %v3672_v6 }
0x14ad   :  { %v3693_v60 = vrot.slane %v3692_v58, 2  ;;  %v3705_v41 = vrot.slane %v3704_v44, 4  ;;  %v3659_v37 = vsub.f32 %v3595_v24, %v3651_v42  ;;  %5483 = vrcp.f32 %v3682_v3 }
0x14ae   :  { %v3688_v23 = vrot.slane %v3687_v22, 1 }
0x14af   :  { %v3694_v34 = vadd.f32 %v3693_v60, %v3692_v58  ;;  %v3706_v50 = vadd.f32 %v3705_v41, %v3704_v44  ;;  %v3674_v49 = vmul.f32 1.442695, %v3659_v37 }
0x14b0   :  { %v3689_v29 = vadd.f32 %v3688_v23, %v3687_v22 }
0x14b1   :  { %v7164_v32 = vpop.eup %5477  ;;  %v3707_v40 = vrot.slane %v3706_v50, 2  ;;  %5485 = vpow2.f32 %v3674_v49  ;;  %v3695_v2 = vrot.slane %v3694_v34, 1  ;;  %v5591_v49 = vld [vmem:[%s7603_s5] ss:$0 sm:$0xff] }
0x14b2   :  { %v3697_v8 = vsel %vm325_vm3, %v7164_v32, 0.0  ;;  %5487 = vrcp.f32 %v3689_v29 }
0x14b3   :  { %v3708_v59 = vadd.f32 %v3707_v40, %v3706_v50  ;;  %v3698_v16 = vrot.slane %v3697_v8, 4  ;;  %v3696_v5 = vadd.f32 %v3695_v2, %v3694_v34 }
0x14b5   :  { %v7168_v26 = vpop.eup %5479  ;;  %v3699_v24 = vadd.f32 %v3698_v16, %v3697_v8  ;;  %5489 = vrcp.f32 %v3696_v5  ;;  %v3709_v38 = vrot.slane %v3708_v59, 1 }
0x14b6   :  { %v3711_v43 = vsel %vm325_vm3, %v7168_v26, 0.0 }
0x14b7   :  { %v3700_v11 = vrot.slane %v3699_v24, 2  ;;  %v3712_v10 = vrot.slane %v3711_v43, 4  ;;  %v3710_v14 = vadd.f32 %v3709_v38, %v3708_v59 }
0x14b9   :  { %v5482_v12 = vpop.eup %5481  ;;  %v3701_v6 = vadd.f32 %v3700_v11, %v3699_v24  ;;  %v3713_v22 = vadd.f32 %v3712_v10, %v3711_v43  ;;  %5491 = vrcp.f32 %v3710_v14 }
0x14ba   :  { %v3718_v58 = vsel %vm325_vm3, %v5482_v12, 0.0  ;;  %v5484_v42 = vpop.eup %5483 }
0x14bb   :  { %v3714_v44 = vrot.slane %v3713_v22, 2  ;;  %v3719_v3 = vrot.slane %v3718_v58, 4  ;;  %v3702_v60 = vrot.slane %v3701_v6, 1  ;;  %v3740_v41 = vmul.f32 %v5484_v42, %v7147_v48 }
0x14bd   :  { %v3715_v37 = vadd.f32 %v3714_v44, %v3713_v22  ;;  %v3720_v23 = vadd.f32 %v3719_v3, %v3718_v58  ;;  %v3703_v34 = vadd.f32 %v3702_v60, %v3701_v6  ;;  %v3748_v29 = vmul.f32 %v5591_v49, %v3740_v41 }
0x14be   :  { %v5486_v50 = vpop.eup %5485 }
0x14bf   :  { %v5488_v40 = vpop.eup %5487  ;;  %v3721_v2 = vrot.slane %v3720_v23, 2  ;;  %v3725_v8 = vsel %vm325_vm3, %v5486_v50, 0.0  ;;  %5493 = vrcp.f32 %v3703_v34  ;;  %v3716_v59 = vrot.slane %v3715_v37, 1 }
0x14c0   :  { %v3726_v16 = vrot.slane %v3725_v8, 4  ;;  %v3756_v5 = vsel %vm325_vm3, %v3748_v29, 0.0  ;;  %v3741_v48 = vmul.f32 %v5488_v40, %v7152_v31 }
0x14c1   :  { %v3722_v24 = vadd.f32 %v3721_v2, %v3720_v23  ;;  %3757 = vadd.xlane.f32.xlu1 %v3756_v5  ;;  %v3717_v38 = vadd.f32 %v3716_v59, %v3715_v37 }
0x14c2   :  { %v5490_v43 = vpop.eup %5489  ;;  %v3727_v11 = vadd.f32 %v3726_v16, %v3725_v8  ;;  %v3749_v10 = vmul.f32 %v5591_v49, %v3741_v48 }
0x14c3   :  { %v3742_v14 = vmul.f32 %v5490_v43, %v7156_v36  ;;  %5495 = vrcp.f32 %v3717_v38  ;;  %v3723_v6 = vrot.slane %v3722_v24, 1 }
0x14c4   :  { %v3728_v22 = vrot.slane %v3727_v11, 2  ;;  %v3759_v58 = vsel %vm325_vm3, %v3749_v10, 0.0  ;;  %v3309_v10 = vpop.permute.xlu0 %3308 }
0x14c5   :  { %3760 = vadd.xlane.f32.xlu0 %v3759_v58  ;;  %v3750_v42 = vmul.f32 %v5591_v49, %v3742_v14  ;;  %v3724_v44 = vadd.f32 %v3723_v6, %v3722_v24  ;;  %v3311_v6 = vmul.f32 %v3309_v10, %v7020_v56  ;;  %v4905_v58 = vld [vmem:[%s7600_s2 + $0x80] sm:$0xf] }
0x14c6   :  { %v5492_v3 = vpop.eup %5491  ;;  %v3729_v60 = vadd.f32 %v3728_v22, %v3727_v11 }
0x14c7   :  { %v3762_v31 = vsel %vm325_vm3, %v3750_v42, 0.0  ;;  %v3744_v41 = vmul.f32 %v5492_v3, %v7160_v57  ;;  %5497 = vrcp.f32 %v3724_v44 }
0x14c8   :  { %v3730_v37 = vrot.slane %v3729_v60, 1  ;;  %v3885_v42 = vpop.permute.xlu0 %3884 }
0x14c9   :  { %3763 = vadd.xlane.f32.xlu0 %v3762_v31  ;;  %v3752_v23 = vmul.f32 %v5591_v49, %v3744_v41 }
0x14ca   :  { %v3731_v34 = vadd.f32 %v3730_v37, %v3729_v60 }
0x14cb   :  { %v3768_v36 = vsel %vm325_vm3, %v3752_v23, 0.0  ;;  %v4907_v23 = vld [vmem:[%s7600_s2 + $0x88] sm:$0xf] }
0x14cc   :  { %v5494_v29 = vpop.eup %5493  ;;  %3769 = vadd.xlane.f32.xlu1 %v3768_v36  ;;  %5499 = vrcp.f32 %v3731_v34 }
0x14cd   :  { %v3743_v40 = vmul.f32 %v5494_v29, %v7164_v32 }
0x14cf   :  { %v3751_v2 = vmul.f32 %v5591_v49, %v3743_v40 }
0x14d0   :  { %v5496_v8 = vpop.eup %5495 }
0x14d1   :  { %v3765_v59 = vsel %vm325_vm3, %v3751_v2, 0.0  ;;  %v3745_v16 = vmul.f32 %v5496_v8, %v7168_v26  ;;  %v3858_v26 = vpop.permute.xlu1 %3857 }
0x14d2   :  { %3766 = vadd.xlane.f32.xlu1 %v3765_v59  ;;  %v4909_v59 = vld [vmem:[%s7600_s2 + $0x90] sm:$0xf] }
0x14d3   :  { %v3753_v57 = vmul.f32 %v5591_v49, %v3745_v16 }
0x14d4   :  { %v5498_v5 = vpop.eup %5497 }
0x14d5   :  { %v3771_v48 = vsel %vm325_vm3, %v3753_v57, 0.0  ;;  %v3746_v24 = vmul.f32 %v5498_v5, %v5482_v12  ;;  %v3867_v12 = vpop.permute.xlu1 %3866  ;;  %v3860_v5 = vmul.f32 %v3858_v26, %v6238_v52 }
0x14d6   :  { %3772 = vadd.xlane.f32.xlu1 %v3771_v48  ;;  %v3869_v2 = vmul.f32 %v3867_v12, %v6608_v25 }
0x14d7   :  { %v3754_v38 = vmul.f32 %v5591_v49, %v3746_v24 }
0x14d9   :  { %v5500_v43 = vpop.eup %5499  ;;  %v3774_v11 = vsel %vm325_vm3, %v3754_v38, 0.0 }
0x14da   :  { %3775 = vadd.xlane.f32.xlu1 %v3774_v11  ;;  %v3747_v32 = vmul.f32 %v5500_v43, %v5486_v50  ;;  %v3302_v50 = vpop.permute.xlu1 %3301 }
0x14db   :  { %v3304_v48 = vmul.f32 %v3302_v50, %v7020_v56 }
0x14dc   :  { %v3755_v14 = vmul.f32 %v5591_v49, %v3747_v32 }
0x14de   :  { %v3777_v22 = vsel %vm325_vm3, %v3755_v14, 0.0  ;;  %v3876_v49 = vpop.permute.xlu1 %3875 }
0x14df   :  { %3778 = vadd.xlane.f32.xlu1 %v3777_v22  ;;  %3313 = vrot.lane.b32.xlu0 %v3311_v6, %s5631_s30  ;;  %v3878_v24 = vmul.f32 %v3876_v49, %v6894_v4  ;;  %v3870_v6 = vadd.f32 %v3869_v2, %v3860_v5  ;;  %v7240_v2 = vld [vmem:[%s7605_s7] ss:$0 sm:$0xff] }
0x14e3   :  { %4095 = vrot.lane.b32.xlu0 %v7045_v63, %s5629_s15  ;;  %v4906_v63 = vld [vmem:[%s7600_s2 + $0x84] sm:$0xf] }
0x14e7   :  { %4110 = vrot.lane.b32.xlu0 %v7047_v54, %s5630_s20 }
0x14f0   :  { %4100 = vrot.lane.b32.xlu1 %v7047_v54, %s5629_s15 }
0x154a   :  { %v3758_v44 = vpop.xlane.xlu1 %3757 }
0x154b   :  { %v3789_v3 = vmul.f32 %v4905_v58, %v3758_v44 }
0x154d   :  { %v3797_v60 = vsel %vm532_vm4, %v3789_v3, 0.0  ;;  %v3879_v3 = vadd.f32 %v3878_v24, %v3870_v6 }
0x154e   :  { %v3798_v31 = vrot.slane %v3797_v60, 4  ;;  %v3761_v41 = vpop.xlane.xlu0 %3760 }
0x154f   :  { %v3790_v54 = vmul.f32 %v4906_v63, %v3761_v41  ;;  %v4908_v63 = vld [vmem:[%s7600_s2 + $0x8c] sm:$0xf] }
0x1550   :  { %v3799_v37 = vadd.f32 %v3798_v31, %v3797_v60 }
0x1551   :  { %v3804_v34 = vsel %vm532_vm4, %v3790_v54, 0.0 }
0x1552   :  { %v3800_v36 = vrot.slane %v3799_v37, 2  ;;  %v3805_v29 = vrot.slane %v3804_v34, 4  ;;  %v3764_v40 = vpop.xlane.xlu0 %3763 }
0x1553   :  { %v3791_v8 = vmul.f32 %v4907_v23, %v3764_v40 }
0x1554   :  { %v3801_v16 = vadd.f32 %v3800_v36, %v3799_v37  ;;  %v3806_v57 = vadd.f32 %v3805_v29, %v3804_v34 }
0x1555   :  { %v3811_v38 = vsel %vm532_vm4, %v3791_v8, 0.0  ;;  %v3770_v43 = vpop.xlane.xlu1 %3769 }
0x1556   :  { %v3807_v11 = vrot.slane %v3806_v57, 2  ;;  %v3812_v10 = vrot.slane %v3811_v38, 4  ;;  %v3793_v32 = vmul.f32 %v4909_v59, %v3770_v43  ;;  %v3314_v14 = vpop.permute.xlu0 %3313  ;;  %v3802_v12 = vrot.slane %v3801_v16, 1 }
0x1557   :  { %v7219_v22 = vsel %vm46_vm13, %v3304_v48, %v3314_v14 }
0x1558   :  { %v3808_v58 = vadd.f32 %v3807_v11, %v3806_v57  ;;  %v3813_v44 = vadd.f32 %v3812_v10, %v3811_v38  ;;  %v3825_v26 = vsel %vm532_vm4, %v3793_v32, 0.0  ;;  %v3887_v49 = vmul.f32 %v3885_v42, %v7219_v22  ;;  %v4910_v42 = vld [vmem:[%s7600_s2 + $0x94] sm:$0xf] }
0x1559   :  { %v3826_v50 = vrot.slane %v3825_v26, 4  ;;  %v7228_v23 = vadd.f32 %v3802_v12, %v3801_v16 }
0x155a   :  { %v3809_v60 = vrot.slane %v3808_v58, 1  ;;  %v3814_v31 = vrot.slane %v3813_v44, 2  ;;  %v7226_v54 = vadd.f32 %v3887_v49, %v3879_v3 }
0x155b   :  { %v3827_v41 = vadd.f32 %v3826_v50, %v3825_v26  ;;  %v3767_v37 = vpop.xlane.xlu1 %3766  ;;  %v3889_v24 = vmul.f32 %v7240_v2, %v7228_v23 }
0x155c   :  { %v7230_v34 = vadd.f32 %v3809_v60, %v3808_v58  ;;  %v3815_v36 = vadd.f32 %v3814_v31, %v3813_v44  ;;  %v3792_v29 = vmul.f32 %v4908_v63, %v3767_v37  ;;  %5247 = vmatmul.mubr.msk.f32.vlgmr.msra.gmra.mxu0 %vm644_vm14, %v7226_v54 }
0x155d   :  { %v3828_v40 = vrot.slane %v3827_v41, 2  ;;  %5250 = vmatpush3.msra.mxu0 %v6910_v47  ;;  %5273 = vmatprep.mubr.msk.f32.mxu0 %vm5626_vm0, %v5625_v1  ;;  %v4911_v47 = vld [vmem:[%s7600_s2 + $0x98] sm:$0xf]  ;;  %vm4798_vm0 = vcmask 23552  }
0x155e   :  { %v3890_v8 = vmul.f32 %v7240_v2, %v7230_v34  ;;  %v3816_v59 = vrot.slane %v3815_v36, 1  ;;  %v3818_v16 = vsel %vm532_vm4, %v3792_v29, 0.0  ;;  %5251 = vmatprep.subr.mxu0 %v5625_v1 }
0x155f   :  { %v3829_v57 = vadd.f32 %v3828_v40, %v3827_v41  ;;  %v3819_v5 = vrot.slane %v3818_v16, 4  ;;  %v3773_v48 = vpop.xlane.xlu1 %3772  ;;  %5252 = vmatpush3.msra.mxu0 %v6921_v39 }
0x1560   :  { %v3905_v38 = vrot.slane %v3890_v8, 7  ;;  %v7251_v43 = vadd.f32 %v3816_v59, %v3815_v36  ;;  %v3794_v11 = vmul.f32 %v4910_v42, %v3773_v48  ;;  %5253 = vmatprep.subr.mxu0 %v5625_v1 }
0x1561   :  { %v3820_v10 = vadd.f32 %v3819_v5, %v3818_v16  ;;  %5254 = vmatpush3.msra.mxu0 %v6928_v51  ;;  %v3830_v12 = vrot.slane %v3829_v57, 1  ;;  %v4912_v51 = vld [vmem:[%s7600_s2 + $0x9c] sm:$0xf] }
0x1562   :  { %v3906_v32 = vsel %vm612_vm5, %v3905_v38, %v3889_v24  ;;  %v3891_v14 = vmul.f32 %v7240_v2, %v7251_v43  ;;  %v3832_v6 = vsel %vm532_vm4, %v3794_v11, 0.0  ;;  %5255 = vmatprep.subr.mxu0 %v5625_v1 }
0x1563   :  { %v3821_v58 = vrot.slane %v3820_v10, 2  ;;  %v3833_v44 = vrot.slane %v3832_v6, 4  ;;  %v3776_v39 = vpop.xlane.xlu1 %3775  ;;  %5256 = vmatpush3.msra.mxu0 %v6937_v53  ;;  %v3831_v31 = vadd.f32 %v3830_v12, %v3829_v57 }
0x1564   :  { %v3907_v26 = vrot.slane %v3891_v14, 6  ;;  %v3795_v3 = vmul.f32 %v4911_v47, %v3776_v39  ;;  %5257 = vmatprep.subr.mxu0 %v5625_v1 }
0x1565   :  { %v3822_v50 = vadd.f32 %v3821_v58, %v3820_v10  ;;  %v3834_v49 = vadd.f32 %v3833_v44, %v3832_v6  ;;  %5258 = vmatpush3.msra.mxu0 %v6945_v61  ;;  %v3893_v61 = vmul.f32 %v7240_v2, %v3831_v31  ;;  %v5593_v44 = vld [vmem:[%s7608_s10 + $0x8] sm:$0xff] }
0x1566   :  { %v3839_v63 = vsel %vm532_vm4, %v3795_v3, 0.0  ;;  %v3908_v60 = vsel %vm615_vm6, %v3907_v26, %v3906_v32  ;;  %5259 = vmatprep.subr.mxu0 %v5625_v1  ;;  %v4015_v32 = vsel %vm612_vm5, %v7230_v34, %v7228_v23  ;;  %v5594_v26 = vld [vmem:[%s7608_s10] sm:$0xff] }
0x1567   :  { %v3823_v41 = vrot.slane %v3822_v50, 1  ;;  %v3835_v37 = vrot.slane %v3834_v49, 2  ;;  %v3840_v36 = vrot.slane %v3839_v63, 4  ;;  %5260 = vmatpush3.msra.mxu0 %v6953_v13  ;;  %v4016_v58 = vsel %vm615_vm6, %v7251_v43, %v4015_v32 }
0x1568   :  { %v3779_v53 = vpop.xlane.xlu1 %3778  ;;  %5261 = vmatprep.subr.mxu0 %v5625_v1 }
0x1569   :  { %v3824_v29 = vadd.f32 %v3823_v41, %v3822_v50  ;;  %v3836_v40 = vadd.f32 %v3835_v37, %v3834_v49  ;;  %v3841_v42 = vadd.f32 %v3840_v36, %v3839_v63  ;;  %v3796_v8 = vmul.f32 %v4912_v51, %v3779_v53  ;;  %5262 = vmatpush3.msra.mxu0 %v6966_v18 }
0x156a   :  { %5263 = vmatprep.subr.mxu0 %v5625_v1  ;;  %v3911_v18 = vrot.slane %v3893_v61, 4 }
0x156b   :  { %v3892_v59 = vmul.f32 %v7240_v2, %v3824_v29  ;;  %v3837_v16 = vrot.slane %v3836_v40, 1  ;;  %v3842_v57 = vrot.slane %v3841_v42, 2  ;;  %v3846_v5 = vsel %vm532_vm4, %v3796_v8, 0.0  ;;  %5264 = vmatpush3.msra.mxu0 %v6973_v19 }
0x156c   :  { %v3847_v38 = vrot.slane %v3846_v5, 4  ;;  %5265 = vmatprep.subr.mxu0 %v5625_v1  ;;  %v4017_v23 = vsel %vm618_vm7, %v3824_v29, %v4016_v58 }
0x156d   :  { %v3909_v13 = vrot.slane %v3892_v59, 5  ;;  %v3838_v48 = vadd.f32 %v3837_v16, %v3836_v40  ;;  %v3843_v24 = vadd.f32 %v3842_v57, %v3841_v42  ;;  %5266 = vmatpush3.msra.mxu0 %v6983_v0  ;;  %v4018_v50 = vsel %vm621_vm8, %v3831_v31, %v4017_v23  ;;  %v4096_v42 = vpop.permute.xlu0 %4095  ;;  %v4101_v59 = vpop.permute.xlu1 %4100 }
0x156e   :  { %v3848_v47 = vadd.f32 %v3847_v38, %v3846_v5  ;;  %5267 = vmatprep.subr.mxu0 %v5625_v1 }
0x156f   :  { %v3894_v11 = vmul.f32 %v7240_v2, %v3838_v48  ;;  %v3844_v10 = vrot.slane %v3843_v24, 1  ;;  %5268 = vmatpush3.msra.mxu0 %v6990_v33  ;;  %v3910_v19 = vsel %vm618_vm7, %v3909_v13, %v3908_v60  ;;  %v4019_v63 = vsel %vm624_vm9, %v3838_v48, %v4018_v50  ;;  %v4922_v50 = vld [vmem:[%s7599_s1 + $0xa0] sm:$0xf] }
0x1570   :  { %v3849_v12 = vrot.slane %v3848_v47, 2  ;;  %5269 = vmatprep.subr.mxu0 %v5625_v1  ;;  %v3912_v0 = vsel %vm621_vm8, %v3911_v18, %v3910_v19 }
0x1571   :  { %v3913_v14 = vrot.slane %v3894_v11, 3  ;;  %v3845_v6 = vadd.f32 %v3844_v10, %v3843_v24  ;;  %5270 = vmatpush3.msra.mxu0 %v5593_v44  ;;  %v4111_v48 = vpop.permute.xlu0 %4110 }
0x1572   :  { %v3850_v34 = vadd.f32 %v3849_v12, %v3848_v47  ;;  %5271 = vmatprep.subr.mxu0 %v5625_v1 }
0x1573   :  { %v3895_v33 = vmul.f32 %v7240_v2, %v3845_v6  ;;  %v3914_v39 = vsel %vm624_vm9, %v3913_v14, %v3912_v0  ;;  %5272 = vmatpush3.msra.mxu0 %v5594_v26  ;;  %v4020_v60 = vsel %vm627_vm10, %v3845_v6, %v4019_v63  ;;  %v4920_v6 = vld [vmem:[%s7598_s0 + $0x28] sm:$0xff]  ;;  %v4923_v63 = vld [vmem:[%s7599_s1 + $0xa4] sm:$0xf] }
0x1574   :  { %v3851_v43 = vrot.slane %v3850_v34, 1 }
0x1575   :  { %v3915_v3 = vrot.slane %v3895_v33, 2 }
0x1576   :  { %v3852_v49 = vadd.f32 %v3851_v43, %v3850_v34 }
0x1577   :  { %v3916_v51 = vsel %vm627_vm10, %v3915_v3, %v3914_v39 }
0x1578   :  { %v4021_v1 = vsel %vm630_vm11, %v3852_v49, %v4020_v60  ;;  %v3896_v41 = vmul.f32 %v7240_v2, %v3852_v49 }
0x1579   :  { %5274 = vmatmul.mubr.msk.f32.vlgmr.msra.gmra.mxu0 %vm633_vm12, %v4021_v1 }
0x157a   :  { %v3917_v37 = vrot.slane %v3896_v41, 1 }
0x157c   :  { %v7312_v36 = vsel %vm630_vm11, %v3917_v37, %v3916_v51 }
0x161c   :  { %v4003_v53 = vpop.f32.mrf.mxu0 }
0x161e   :  { %v5248_v29 = vpop.f32.mrf.mxu0 }
0x1639   :  { %v4090_v31 = vpop.f32.mrf.mxu0 }
0x163a   :  { %v4091_v40 = vadd.f32 %v4090_v31, %v4003_v53 }
0x163b   :  { %v5275_v8 = vpop.f32.mrf.mxu0 }
0x163c   :  { %v4098_v61 = vadd.f32 %v4096_v42, %v4091_v40  ;;  %v4926_v40 = vld [vmem:[%s7599_s1 + $0xb0] sm:$0xf]  ;;  %v4924_v42 = vld [vmem:[%s7599_s1 + $0xa8] sm:$0xf] }
0x163e   :  { %v4103_v16 = vadd.f32 %v4101_v59, %v4098_v61 }
0x1640   :  { %v4919_v57 = vmul.f32 -1.442695, %v4103_v16 }
0x1642   :  { %5501 = vpow2.f32 %v4919_v57  ;;  %v4928_v57 = vld [vmem:[%s7599_s1 + $0xb8] sm:$0xf] }
0x164f   :  { %v5502_v5 = vpop.eup %5501 }
0x1650   :  { %v4107_v13 = vadd.f32 1.0, %v5502_v5 }
0x1652   :  { %5503 = vrcp.f32 %v4107_v13  ;;  %v4925_v13 = vld [vmem:[%s7599_s1 + $0xac] sm:$0xf] }
0x165f   :  { %v5504_v2 = vpop.eup %5503 }
0x1660   :  { %v4113_v24 = vmul.f32 %v5504_v2, %v4111_v48  ;;  %v4120_v10 = vsub.f32 1.0, %v5504_v2  ;;  %v4126_v32 = vmul.f32 %v5504_v2, %v7020_v56 }
0x1662   :  { %4115 = vrot.lane.b32.xlu0 %v4113_v24, %s5631_s30 }
0x16d4   :  { %v4116_v38 = vpop.permute.xlu0 %4115 }
0x16d5   :  { %v4118_v18 = vadd.f32 %v4116_v38, %v4098_v61  ;;  %v4927_v38 = vld [vmem:[%s7599_s1 + $0xb4] sm:$0xf] }
0x16d7   :  { %5505 = vtanh.f32 %v4118_v18 }
0x16e4   :  { %v5506_v11 = vpop.eup %5505 }
0x16e5   :  { %4122 = vrot.lane.b32.xlu0 %v5506_v11, %s5629_s15 }
0x1757   :  { %v4123_v47 = vpop.permute.xlu0 %4122 }
0x1758   :  { %v4125_v19 = vmul.f32 %v4123_v47, %v4120_v10  ;;  %v4929_v10 = vld [vmem:[%s7599_s1 + $0xbc] sm:$0xf] }
0x175a   :  { %v7317_v14 = vadd.f32 %v4126_v32, %v4125_v19 }
0x175c   :  { %5281 = vmatmul.mubr.msk.f32.vlgmr.msra.gmra.mxu1 %vm46_vm13, %v7317_v14 }
0x181c   :  { %v4216_v12 = vpop.f32.mrf.mxu1 }
0x181d   :  { %v4220_v0 = vadd.f32 %v4920_v6, %v4216_v12 }
0x181e   :  { %v5282_v58 = vpop.f32.mrf.mxu1 }
0x181f   :  { %v4231_v44 = vcombine.high %v4220_v0, %v4220_v0  ;;  %v4238_v23 = vrot.slane %v4220_v0, %v5729_v9 }
0x1821   :  { %v4245_v33 = vrot.slane %v4231_v44, %v5729_v9  ;;  %v4246_v34 = vcombine.high %v4238_v23, %v4238_v23  ;;  %v4254_v39 = vrot.slane %v4238_v23, %v5729_v9 }
0x1823   :  { %v4261_v26 = vrot.slane %v4245_v33, %v5729_v9  ;;  %v4268_v43 = vrot.slane %v4246_v34, %v5729_v9  ;;  %v4276_v3 = vcombine.high %v4254_v39, %v4254_v39  ;;  %v4283_v49 = vrot.slane %v4254_v39, %v5736_v15 }
0x1824   :  { %v4247_v37 = vcombine.high %v4245_v33, %v4245_v33 }
0x1825   :  { %v4287_v51 = vrot.slane %v4268_v43, %v5736_v15  ;;  %v4277_v60 = vcombine.high %v4261_v26, %v4261_v26  ;;  %v4299_v1 = vrot.slane %v4261_v26, %v5736_v15  ;;  %v4320_v41 = vmul.f32 %v4922_v50, %v4283_v49 }
0x1826   :  { %v4278_v53 = vcombine.high %v4268_v43, %v4268_v43  ;;  %v4291_v29 = vrot.slane %v4276_v3, %v5736_v15  ;;  %v4275_v59 = vrot.slane %v4247_v37, %v5729_v9 }
0x1827   :  { %v4321_v31 = vmul.f32 %v4923_v63, %v4287_v51  ;;  %4360 = vrot.lane.b32.xlu1 %v4320_v41, %s5628_s29  ;;  %v4324_v8 = vmul.f32 %v4926_v40, %v4299_v1  ;;  %v4307_v61 = vrot.slane %v4277_v60, %v5736_v15  ;;  %v4939_v40 = vld [vmem:[%s7601_s3 + $0x128] sm:$0xff] }
0x1828   :  { %v4322_v16 = vmul.f32 %v4924_v42, %v4291_v29  ;;  %v4295_v5 = vrot.slane %v4278_v53, %v5736_v15  ;;  %v4279_v48 = vcombine.high %v4275_v59, %v4275_v59  ;;  %v4303_v9 = vrot.slane %v4275_v59, %v5736_v15  ;;  %v7389_v29 = vld [vmem:[%s7598_s0 + $0x20] sm:$0xff] }
0x1829   :  { %4362 = vrot.lane.b32.xlu0 %v4321_v31, %s5628_s29  ;;  %v4326_v2 = vmul.f32 %v4928_v57, %v4307_v61  ;;  %v4331_v32 = vsel %vm227_vm1, %v4321_v31, 0.0  ;;  %v4340_v12 = vsel %vm227_vm1, %v4324_v8, 0.0  ;;  %v4133_v31 = vsub.f32 1.0, %v7389_v29  ;;  %v4938_v42 = vld [vmem:[%s7601_s3 + $0x120] sm:$0xff]  ;;  %v4941_v61 = vld [vmem:[%s7601_s3 + $0x138] sm:$0xff] }
0x182a   :  { %v4323_v24 = vmul.f32 %v4925_v13, %v4295_v5  ;;  %v4325_v18 = vmul.f32 %v4927_v38, %v4303_v9  ;;  %v4311_v11 = vrot.slane %v4279_v48, %v5736_v15  ;;  %v4334_v6 = vsel %vm227_vm1, %v4322_v16, 0.0 }
0x182b   :  { %4368 = vrot.lane.b32.xlu1 %v4324_v8, %s5628_s29  ;;  %v4328_v15 = vsel %vm227_vm1, %v4320_v41, 0.0  ;;  %v4346_v3 = vsel %vm227_vm1, %v4326_v2, 0.0  ;;  %v4940_v8 = vld [vmem:[%s7601_s3 + $0x130] sm:$0xff] }
0x182c   :  { %v4327_v47 = vmul.f32 %v4929_v10, %v4311_v11  ;;  %v4337_v19 = vsel %vm227_vm1, %v4323_v24, 0.0  ;;  %v4343_v0 = vsel %vm227_vm1, %v4325_v18, 0.0 }
0x182d   :  { %4364 = vrot.lane.b32.xlu0 %v4322_v16, %s5628_s29 }
0x182e   :  { %v4349_v49 = vsel %vm227_vm1, %v4327_v47, 0.0 }
0x182f   :  { %4372 = vrot.lane.b32.xlu1 %v4326_v2, %s5628_s29 }
0x1831   :  { %4366 = vrot.lane.b32.xlu0 %v4323_v24, %s5628_s29 }
0x1835   :  { %4370 = vrot.lane.b32.xlu0 %v4325_v18, %s5628_s29 }
0x1839   :  { %4374 = vrot.lane.b32.xlu0 %v4327_v47, %s5628_s29 }
0x1853   :  { %4332 = vadd.xlane.f32.xlu1 %v4331_v32 }
0x1857   :  { %4338 = vadd.xlane.f32.xlu1 %v4337_v19 }
0x1858   :  { %4335 = vadd.xlane.f32.xlu0 %v4334_v6 }
0x185c   :  { %4329 = vadd.xlane.f32.xlu0 %v4328_v15 }
0x1860   :  { %4341 = vadd.xlane.f32.xlu0 %v4340_v12 }
0x1864   :  { %4344 = vadd.xlane.f32.xlu0 %v4343_v0 }
0x1899   :  { %v4361_v58 = vpop.permute.xlu1 %4360 }
0x189a   :  { %v4384_v44 = vsel %vm227_vm1, %v4361_v58, 0.0 }
0x189b   :  { %v4363_v23 = vpop.permute.xlu0 %4362  ;;  %4385 = vadd.xlane.f32.xlu0 %v4384_v44 }
0x189c   :  { %v4387_v33 = vsel %vm227_vm1, %v4363_v23, 0.0 }
0x189d   :  { %v4369_v26 = vpop.permute.xlu1 %4368 }
0x189e   :  { %v4396_v50 = vsel %vm227_vm1, %v4369_v26, 0.0 }
0x189f   :  { %v4365_v34 = vpop.permute.xlu0 %4364  ;;  %4388 = vadd.xlane.f32.xlu0 %v4387_v33 }
0x18a0   :  { %v4390_v39 = vsel %vm227_vm1, %v4365_v34, 0.0 }
0x18a1   :  { %4391 = vadd.xlane.f32.xlu1 %v4390_v39  ;;  %v4373_v1 = vpop.permute.xlu1 %4372 }
0x18a2   :  { %v4402_v41 = vsel %vm227_vm1, %v4373_v1, 0.0 }
0x18a3   :  { %v4367_v43 = vpop.permute.xlu0 %4366  ;;  %4347 = vadd.xlane.f32.xlu0 %v4346_v3 }
0x18a4   :  { %v4393_v63 = vsel %vm227_vm1, %v4367_v43, 0.0 }
0x18a5   :  { %4397 = vadd.xlane.f32.xlu1 %v4396_v50 }
0x18a7   :  { %4350 = vadd.xlane.f32.xlu0 %v4349_v49  ;;  %v4371_v51 = vpop.permute.xlu0 %4370 }
0x18a8   :  { %v4399_v60 = vsel %vm227_vm1, %v4371_v51, 0.0 }
0x18a9   :  { %4394 = vadd.xlane.f32.xlu1 %v4393_v63 }
0x18ab   :  { %v4375_v37 = vpop.permute.xlu0 %4374 }
0x18ac   :  { %v4405_v53 = vsel %vm227_vm1, %v4375_v37, 0.0  ;;  %vm4800_vm1 = vcmask 31744  }
0x18ad   :  { %4400 = vadd.xlane.f32.xlu1 %v4399_v60 }
0x18b1   :  { %4403 = vadd.xlane.f32.xlu1 %v4402_v41 }
0x18b5   :  { %4406 = vadd.xlane.f32.xlu1 %v4405_v53 }
0x18bd   :  { %4136 = vperm.xlu0 %5313, %v4133_v31  }
0x18c1   :  { %5314 = vset.pattern.permute.xlu0 %v5633_v35 }
0x18c2   :  { %4694 = vperm.xlu0 %5314, %v4939_v40  }
0x18c6   :  { %4685 = vperm.xlu1 %5311, %v4938_v42   ;;  %5315 = vset.pattern.permute.xlu0 %v5632_v7 }
0x18c7   :  { %4129 = vperm.xlu0 %5315, %v7389_v29  }
0x18ca   :  { %4703 = vperm.xlu1 %5311, %v4940_v8  }
0x18cb   :  { %5316 = vset.pattern.permute.xlu0 %v5633_v35 }
0x18ce   :  { %4712 = vperm.xlu1 %5311, %v4941_v61  }
0x18dc   :  { %v4333_v5 = vpop.xlane.xlu1 %4332 }
0x18e0   :  { %v4339_v2 = vpop.xlane.xlu1 %4338 }
0x18e1   :  { %v4336_v59 = vpop.xlane.xlu0 %4335 }
0x18e5   :  { %v4330_v16 = vpop.xlane.xlu0 %4329 }
0x18e9   :  { %v4342_v57 = vpop.xlane.xlu0 %4341 }
0x18ed   :  { %v4345_v13 = vpop.xlane.xlu0 %4344 }
0x1924   :  { %v4386_v7 = vpop.xlane.xlu0 %4385 }
0x1925   :  { %v4408_v48 = vsel %vm308_vm2, %v4330_v16, %v4386_v7 }
0x1926   :  { %v4416_v24 = vmul.f32 0.25, %v4408_v48 }
0x1928   :  { %v4424_v9 = vsel %vm325_vm3, %v4416_v24, -inf  ;;  %v4389_v38 = vpop.xlane.xlu0 %4388 }
0x1929   :  { %v4425_v18 = vrot.slane %v4424_v9, 4  ;;  %v4409_v11 = vsel %vm308_vm2, %v4333_v5, %v4389_v38 }
0x192a   :  { %v4392_v10 = vpop.xlane.xlu1 %4391  ;;  %v4417_v47 = vmul.f32 0.25, %v4409_v11 }
0x192b   :  { %v4410_v35 = vsel %vm308_vm2, %v4336_v59, %v4392_v10  ;;  %v4426_v32 = vmax.f32 %v4424_v9, %v4425_v18 }
0x192c   :  { %v4418_v19 = vmul.f32 0.25, %v4410_v35  ;;  %v4431_v6 = vsel %vm325_vm3, %v4417_v47, -inf  ;;  %v4348_v23 = vpop.xlane.xlu0 %4347 }
0x192d   :  { %v4427_v15 = vrot.slane %v4426_v32, 2  ;;  %v4432_v12 = vrot.slane %v4431_v6, 4 }
0x192e   :  { %v4438_v0 = vsel %vm325_vm3, %v4418_v19, -inf  ;;  %v4398_v58 = vpop.xlane.xlu1 %4397 }
0x192f   :  { %v4439_v44 = vrot.slane %v4438_v0, 4  ;;  %v4412_v33 = vsel %vm308_vm2, %v4342_v57, %v4398_v58  ;;  %v4428_v34 = vmax.f32 %v4426_v32, %v4427_v15  ;;  %v4433_v39 = vmax.f32 %v4431_v6, %v4432_v12 }
0x1930   :  { %v4420_v26 = vmul.f32 0.25, %v4412_v33  ;;  %v4351_v42 = vpop.xlane.xlu0 %4350 }
0x1931   :  { %v4440_v43 = vmax.f32 %v4438_v0, %v4439_v44  ;;  %v4429_v3 = vrot.slane %v4428_v34, 1  ;;  %v4434_v50 = vrot.slane %v4433_v39, 2 }
0x1932   :  { %v4452_v49 = vsel %vm325_vm3, %v4420_v26, -inf  ;;  %v4395_v63 = vpop.xlane.xlu1 %4394 }
0x1933   :  { %v4441_v51 = vrot.slane %v4440_v43, 2  ;;  %v4453_v60 = vrot.slane %v4452_v49, 4  ;;  %v4411_v1 = vsel %vm308_vm2, %v4339_v2, %v4395_v63  ;;  %v4430_v41 = vmax.f32 %v4428_v34, %v4429_v3 }
0x1934   :  { %v4435_v37 = vmax.f32 %v4433_v39, %v4434_v50  ;;  %v4419_v53 = vmul.f32 0.25, %v4411_v1 }
0x1935   :  { %v4442_v31 = vmax.f32 %v4440_v43, %v4441_v51  ;;  %v4454_v40 = vmax.f32 %v4452_v49, %v4453_v60  ;;  %v4480_v8 = vsub.f32 %v4416_v24, %v4430_v41 }
0x1936   :  { %v4436_v61 = vrot.slane %v4435_v37, 1  ;;  %v4445_v59 = vsel %vm325_vm3, %v4419_v53, -inf  ;;  %v4401_v16 = vpop.xlane.xlu1 %4400 }
0x1937   :  { %v4443_v57 = vrot.slane %v4442_v31, 1  ;;  %v4455_v5 = vrot.slane %v4454_v40, 2  ;;  %v4446_v7 = vrot.slane %v4445_v59, 4  ;;  %v4413_v48 = vsel %vm308_vm2, %v4345_v13, %v4401_v16 }
0x1938   :  { %v4488_v9 = vmul.f32 1.442695, %v4480_v8  ;;  %v4437_v38 = vmax.f32 %v4435_v37, %v4436_v61  ;;  %v4421_v18 = vmul.f32 0.25, %v4413_v48  ;;  %v4137_v35 = vpop.permute.xlu0 %4136 }
0x1939   :  { %v4444_v2 = vmax.f32 %v4442_v31, %v4443_v57  ;;  %v4456_v11 = vmax.f32 %v4454_v40, %v4455_v5  ;;  %v4447_v10 = vmax.f32 %v4445_v59, %v4446_v7  ;;  %v4139_v6 = vmul.f32 %v4137_v35, %v7317_v14 }
0x193a   :  { %5507 = vpow2.f32 %v4488_v9  ;;  %v4481_v32 = vsub.f32 %v4417_v47, %v4437_v38  ;;  %v4459_v24 = vsel %vm325_vm3, %v4421_v18, -inf  ;;  %v4404_v15 = vpop.xlane.xlu1 %4403 }
0x193b   :  { %v4482_v12 = vsub.f32 %v4418_v19, %v4444_v2  ;;  %v4457_v0 = vrot.slane %v4456_v11, 1  ;;  %v4448_v58 = vrot.slane %v4447_v10, 2  ;;  %v4460_v44 = vrot.slane %v4459_v24, 4  ;;  %4141 = vrot.lane.b32.xlu0 %v4139_v6, %s5631_s30 }
0x193c   :  { %v4490_v33 = vmul.f32 1.442695, %v4481_v32  ;;  %v4414_v13 = vsel %vm308_vm2, %v4348_v23, %v4404_v15 }
0x193d   :  { %v4492_v34 = vmul.f32 1.442695, %v4482_v12  ;;  %v4458_v39 = vmax.f32 %v4456_v11, %v4457_v0  ;;  %v4449_v43 = vmax.f32 %v4447_v10, %v4448_v58  ;;  %v4461_v3 = vmax.f32 %v4459_v24, %v4460_v44 }
0x193e   :  { %5509 = vpow2.f32 %v4490_v33  ;;  %v4422_v47 = vmul.f32 0.25, %v4414_v13  ;;  %v4407_v50 = vpop.xlane.xlu1 %4406 }
0x193f   :  { %5511 = vpow2.f32 %v4492_v34  ;;  %v4484_v49 = vsub.f32 %v4420_v26, %v4458_v39  ;;  %v4450_v63 = vrot.slane %v4449_v43, 1  ;;  %v4462_v51 = vrot.slane %v4461_v3, 2 }
0x1940   :  { %v4466_v19 = vsel %vm325_vm3, %v4422_v47, -inf  ;;  %v4415_v60 = vsel %vm308_vm2, %v4351_v42, %v4407_v50 }
0x1941   :  { %v4496_v1 = vmul.f32 1.442695, %v4484_v49  ;;  %v4451_v41 = vmax.f32 %v4449_v43, %v4450_v63  ;;  %v4463_v23 = vmax.f32 %v4461_v3, %v4462_v51  ;;  %v4467_v37 = vrot.slane %v4466_v19, 4 }
0x1942   :  { %v4423_v31 = vmul.f32 0.25, %v4415_v60 }
0x1943   :  { %5513 = vpow2.f32 %v4496_v1  ;;  %v4483_v40 = vsub.f32 %v4419_v53, %v4451_v41  ;;  %v4464_v8 = vrot.slane %v4463_v23, 1  ;;  %v4468_v61 = vmax.f32 %v4466_v19, %v4467_v37 }
0x1944   :  { %v4473_v59 = vsel %vm325_vm3, %v4423_v31, -inf }
0x1945   :  { %v4494_v16 = vmul.f32 1.442695, %v4483_v40  ;;  %v4465_v57 = vmax.f32 %v4463_v23, %v4464_v8  ;;  %v4469_v26 = vrot.slane %v4468_v61, 2  ;;  %v4474_v5 = vrot.slane %v4473_v59, 4 }
0x1947   :  { %v7426_v7 = vpop.eup %5507  ;;  %5515 = vpow2.f32 %v4494_v16  ;;  %v4485_v48 = vsub.f32 %v4421_v18, %v4465_v57  ;;  %v4470_v42 = vmax.f32 %v4468_v61, %v4469_v26  ;;  %v4475_v9 = vmax.f32 %v4473_v59, %v4474_v5 }
0x1948   :  { %v4504_v38 = vsel %vm325_vm3, %v7426_v7, 0.0 }
0x1949   :  { %v4505_v2 = vrot.slane %v4504_v38, 4  ;;  %v4498_v11 = vmul.f32 1.442695, %v4485_v48  ;;  %v4471_v53 = vrot.slane %v4470_v42, 1  ;;  %v4476_v10 = vrot.slane %v4475_v9, 2 }
0x194b   :  { %v7430_v35 = vpop.eup %5509  ;;  %v4506_v32 = vadd.f32 %v4505_v2, %v4504_v38  ;;  %5517 = vpow2.f32 %v4498_v11  ;;  %v4472_v24 = vmax.f32 %v4470_v42, %v4471_v53  ;;  %v4477_v6 = vmax.f32 %v4475_v9, %v4476_v10 }
0x194c   :  { %v7432_v15 = vpop.eup %5511  ;;  %v4511_v18 = vsel %vm325_vm3, %v7430_v35, 0.0 }
0x194d   :  { %v4507_v12 = vrot.slane %v4506_v32, 2  ;;  %v4512_v0 = vrot.slane %v4511_v18, 4  ;;  %v4518_v58 = vsel %vm325_vm3, %v7432_v15, 0.0  ;;  %v4486_v44 = vsub.f32 %v4422_v47, %v4472_v24  ;;  %v7445_v47 = vld [vmem:[%s7606_s8] ss:$0 sm:$0xff]  ;;  %s5635_s8 = smov 49  }
0x194e   :  { %v4519_v33 = vrot.slane %v4518_v58, 4  ;;  %v4478_v13 = vrot.slane %v4477_v6, 1  ;;  %v643_v16 = vmul.f32 0.0, %v7445_v47 }
0x194f   :  { %v4508_v34 = vadd.f32 %v4507_v12, %v4506_v32  ;;  %v4513_v39 = vadd.f32 %v4512_v0, %v4511_v18  ;;  %v4500_v43 = vmul.f32 1.442695, %v4486_v44 }
0x1950   :  { %v7438_v3 = vpop.eup %5513  ;;  %v4520_v50 = vadd.f32 %v4519_v33, %v4518_v58  ;;  %v4479_v49 = vmax.f32 %v4477_v6, %v4478_v13  ;;  %v645_v11 = vsel %vm644_vm14, %v643_v16, 0.0  ;;  %v1463_v33 = vsel %vm633_vm12, %v6300_v28, 0.0  ;;  %v5596_v16 = vld [vmem:[%s7603_s5] ss:$0 sm:$0xff] }
0x1951   :  { %v4514_v63 = vrot.slane %v4513_v39, 2  ;;  %v4532_v51 = vsel %vm325_vm3, %v7438_v3, 0.0  ;;  %5519 = vpow2.f32 %v4500_v43  ;;  %v4509_v19 = vrot.slane %v4508_v34, 1 }
0x1952   :  { %v4521_v60 = vrot.slane %v4520_v50, 2  ;;  %v4533_v1 = vrot.slane %v4532_v51, 4  ;;  %v4487_v41 = vsub.f32 %v4423_v31, %v4479_v49  ;;  %v2273_v28 = vsel %vm633_vm12, %v6646_v20, 0.0 }
0x1953   :  { %v4515_v23 = vadd.f32 %v4514_v63, %v4513_v39  ;;  %v4510_v37 = vadd.f32 %v4509_v19, %v4508_v34  ;;  %v7466_v39 = vld [vmem:[%s7607_s9] ss:$0 sm:$0xff] }
0x1954   :  { %v7447_v40 = vpop.eup %5515  ;;  %v4522_v8 = vadd.f32 %v4521_v60, %v4520_v50  ;;  %v4534_v61 = vadd.f32 %v4533_v1, %v4532_v51  ;;  %v4502_v59 = vmul.f32 1.442695, %v4487_v41  ;;  %v655_v49 = vmul.f32 0.0, %v7466_v39 }
0x1955   :  { %v4525_v57 = vsel %vm325_vm3, %v7447_v40, 0.0  ;;  %5521 = vrcp.f32 %v4510_v37  ;;  %v4516_v26 = vrot.slane %v4515_v23, 1 }
0x1956   :  { %v4535_v31 = vrot.slane %v4534_v61, 2  ;;  %v4526_v5 = vrot.slane %v4525_v57, 4  ;;  %5523 = vpow2.f32 %v4502_v59  ;;  %v4523_v48 = vrot.slane %v4522_v8, 1 }
0x1957   :  { %v4517_v42 = vadd.f32 %v4516_v26, %v4515_v23 }
0x1958   :  { %v7452_v9 = vpop.eup %5517  ;;  %v4536_v38 = vadd.f32 %v4535_v31, %v4534_v61  ;;  %v4527_v2 = vadd.f32 %v4526_v5, %v4525_v57  ;;  %v4524_v53 = vadd.f32 %v4523_v48, %v4522_v8  ;;  %v656_v8 = vsel %vm46_vm13, %v655_v49, 0.0 }
0x1959   :  { %v4539_v10 = vsel %vm325_vm3, %v7452_v9, 0.0  ;;  %5525 = vrcp.f32 %v4517_v42 }
0x195a   :  { %v4528_v32 = vrot.slane %v4527_v2, 2  ;;  %v4540_v24 = vrot.slane %v4539_v10, 4  ;;  %5527 = vrcp.f32 %v4524_v53  ;;  %v4537_v6 = vrot.slane %v4536_v38, 1  ;;  %646 = vadd.xlane.f32.xlu0 %v645_v11 }
0x195b   :  { %v3092_v53 = vsel %vm633_vm12, %v6958_v46, 0.0  ;;  %v3923_v46 = vmul.f32 %v7445_v47, %v7226_v54 }
0x195c   :  { %v4529_v18 = vadd.f32 %v4528_v32, %v4527_v2  ;;  %v4541_v12 = vadd.f32 %v4540_v24, %v4539_v10  ;;  %v4538_v0 = vadd.f32 %v4537_v6, %v4536_v38  ;;  %v2281_v10 = vmul.f32 %v7466_v39, %v6377_v17 }
0x195e   :  { %v7457_v58 = vpop.eup %5519  ;;  %v4542_v44 = vrot.slane %v4541_v12, 2  ;;  %5529 = vrcp.f32 %v4538_v0  ;;  %v4530_v13 = vrot.slane %v4529_v18, 1  ;;  %1464 = vadd.xlane.f32.xlu0 %v1463_v33  ;;  %v2282_v0 = vsel %vm46_vm13, %v2281_v10, 0.0 }
0x195f   :  { %v4546_v34 = vsel %vm325_vm3, %v7457_v58, 0.0 }
0x1960   :  { %v4543_v43 = vadd.f32 %v4542_v44, %v4541_v12  ;;  %v4547_v50 = vrot.slane %v4546_v34, 4  ;;  %v4531_v63 = vadd.f32 %v4530_v13, %v4529_v18 }
0x1962   :  { %v5522_v51 = vpop.eup %5521  ;;  %v4548_v19 = vadd.f32 %v4547_v50, %v4546_v34  ;;  %5531 = vrcp.f32 %v4531_v63  ;;  %v4544_v60 = vrot.slane %v4543_v43, 1  ;;  %2274 = vadd.xlane.f32.xlu0 %v2273_v28 }
0x1963   :  { %v5524_v1 = vpop.eup %5523  ;;  %v4568_v41 = vmul.f32 %v5522_v51, %v7426_v7 }
0x1964   :  { %v4549_v23 = vrot.slane %v4548_v19, 2  ;;  %v4553_v37 = vsel %vm325_vm3, %v5524_v1, 0.0  ;;  %v4545_v61 = vadd.f32 %v4544_v60, %v4543_v43  ;;  %v3924_v43 = vsel %vm644_vm14, %v3923_v46, 0.0 }
0x1965   :  { %v4554_v59 = vrot.slane %v4553_v37, 4  ;;  %v4576_v57 = vmul.f32 %v5596_v16, %v4568_v41 }
0x1966   :  { %v5526_v26 = vpop.eup %5525  ;;  %v4550_v20 = vadd.f32 %v4549_v23, %v4548_v19  ;;  %5533 = vrcp.f32 %v4545_v61  ;;  %657 = vadd.xlane.f32.xlu0 %v656_v8 }
0x1967   :  { %v5528_v31 = vpop.eup %5527  ;;  %v4555_v5 = vadd.f32 %v4554_v59, %v4553_v37  ;;  %v4584_v7 = vsel %vm325_vm3, %v4576_v57, 0.0  ;;  %v4569_v48 = vmul.f32 %v5526_v26, %v7430_v35  ;;  %v1466_v59 = vmul.f32 %v7445_v47, %v6243_v55 }
0x1968   :  { %4585 = vadd.xlane.f32.xlu1 %v4584_v7  ;;  %v4570_v42 = vmul.f32 %v5528_v31, %v7432_v15  ;;  %v4551_v38 = vrot.slane %v4550_v20, 1  ;;  %v1471_v26 = vmul.f32 %v7466_v39, %v6021_v27  ;;  %v3920_v31 = vsel %vm633_vm12, %v7312_v36, 0.0  ;;  %v4686_v27 = vpop.permute.xlu1 %4685 }
0x1969   :  { %v4556_v2 = vrot.slane %v4555_v5, 2  ;;  %v4577_v11 = vmul.f32 %v5596_v16, %v4569_v48  ;;  %v1467_v57 = vsel %vm644_vm14, %v1466_v59, 0.0 }
0x196a   :  { %v4552_v32 = vadd.f32 %v4551_v38, %v4550_v20  ;;  %3093 = vadd.xlane.f32.xlu0 %v3092_v53  ;;  %v4578_v12 = vmul.f32 %v5596_v16, %v4570_v42  ;;  %v1472_v20 = vsel %vm46_vm13, %v1471_v26, 0.0  ;;  %v4930_v38 = vld [vmem:[%s7600_s2 + $0xa0] sm:$0xf] }
0x196b   :  { %v5530_v24 = vpop.eup %5529  ;;  %v4557_v6 = vadd.f32 %v4556_v2, %v4555_v5  ;;  %v4587_v18 = vsel %vm325_vm3, %v4577_v11, 0.0 }
0x196c   :  { %4588 = vadd.xlane.f32.xlu1 %v4587_v18  ;;  %v4572_v35 = vmul.f32 %v5530_v24, %v7438_v3  ;;  %5535 = vrcp.f32 %v4552_v32  ;;  %v4590_v17 = vsel %vm325_vm3, %v4578_v12, 0.0  ;;  %v4704_v7 = vpop.permute.xlu1 %4703  ;;  %v4934_v18 = vld [vmem:[%s7600_s2 + $0xb0] sm:$0xf] }
0x196d   :  { %v4558_v15 = vrot.slane %v4557_v6, 1 }
0x196e   :  { %2283 = vadd.xlane.f32.xlu0 %v2282_v0  ;;  %v4580_v33 = vmul.f32 %v5596_v16, %v4572_v35 }
0x196f   :  { %v5532_v44 = vpop.eup %5531  ;;  %v4559_v13 = vadd.f32 %v4558_v15, %v4557_v6 }
0x1970   :  { %4591 = vadd.xlane.f32.xlu1 %v4590_v17  ;;  %v4571_v34 = vmul.f32 %v5532_v44, %v7447_v40  ;;  %v4596_v50 = vsel %vm325_vm3, %v4580_v33, 0.0  ;;  %v4713_v48 = vpop.permute.xlu1 %4712  ;;  %v4933_v33 = vld [vmem:[%s7600_s2 + $0xac] sm:$0xf] }
0x1971   :  { %5537 = vrcp.f32 %v4559_v13 }
0x1972   :  { %3925 = vadd.xlane.f32.xlu0 %v3924_v43  ;;  %v4579_v49 = vmul.f32 %v5596_v16, %v4571_v34 }
0x1973   :  { %v5534_v3 = vpop.eup %5533 }
0x1974   :  { %4597 = vadd.xlane.f32.xlu1 %v4596_v50  ;;  %v4573_v54 = vmul.f32 %v5534_v3, %v7452_v9  ;;  %v4593_v63 = vsel %vm325_vm3, %v4579_v49, 0.0  ;;  %v4942_v9 = vld [vmem:[%s7601_s3 + $0x140] sm:$0xff]  ;;  %s5637_s3 = smov 51  }
0x1976   :  { %v4581_v51 = vmul.f32 %v5596_v16, %v4573_v54 }
0x1978   :  { %4594 = vadd.xlane.f32.xlu1 %v4593_v63  ;;  %v4599_v40 = vsel %vm325_vm3, %v4581_v51, 0.0  ;;  %v4935_v63 = vld [vmem:[%s7600_s2 + $0xb4] sm:$0xf]  ;;  %v4695_v51 = vpop.permute.xlu0 %4694 }
0x1979   :  { %v5536_v19 = vpop.eup %5535 }
0x197a   :  { %v4574_v28 = vmul.f32 %v5536_v19, %v7457_v58  ;;  %v634_v58 = vsel %vm633_vm12, %v6016_v62, 0.0  ;;  %v3095_v62 = vmul.f32 %v7445_v47, %v6902_v45  ;;  %v4931_v45 = vld [vmem:[%s7600_s2 + $0xa4] sm:$0xf] }
0x197c   :  { %4600 = vadd.xlane.f32.xlu1 %v4599_v40  ;;  %v4582_v60 = vmul.f32 %v5596_v16, %v4574_v28  ;;  %v3096_v55 = vsel %vm644_vm14, %v3095_v62, 0.0 }
0x197e   :  { %v5538_v41 = vpop.eup %5537  ;;  %v4602_v23 = vsel %vm325_vm3, %v4582_v60, 0.0 }
0x197f   :  { %v4575_v37 = vmul.f32 %v5538_v41, %v5524_v1  ;;  %v2276_v1 = vmul.f32 %v7445_v47, %v6615_v21  ;;  %v3100_v21 = vmul.f32 %v7466_v39, %v6652_v30  ;;  %v4932_v30 = vld [vmem:[%s7600_s2 + $0xa8] sm:$0xf] }
0x1980   :  { %4603 = vadd.xlane.f32.xlu1 %v4602_v23 }
0x1981   :  { %v4583_v8 = vmul.f32 %v5596_v16, %v4575_v37  ;;  %v2277_v16 = vsel %vm644_vm14, %v2276_v1, 0.0  ;;  %v3101_v5 = vsel %vm46_vm13, %v3100_v21, 0.0  ;;  %v4697_v1 = vmul.f32 %v4695_v51, %v6608_v25 }
0x1983   :  { %v4605_v61 = vsel %vm325_vm3, %v4583_v8, 0.0  ;;  %vm4802_vm3 = vcmask 39936  }
0x1984   :  { %4606 = vadd.xlane.f32.xlu1 %v4605_v61  ;;  %v4688_v61 = vmul.f32 %v4686_v27, %v6238_v52 }
0x1986   :  { %v4698_v27 = vadd.f32 %v4697_v1, %v4688_v61 }
0x1995   :  { %4721 = vperm.xlu1 %5311, %v4942_v9  }
0x19b9   :  { %635 = vadd.xlane.f32.xlu1 %v634_v58  ;;  %v4936_v58 = vld [vmem:[%s7600_s2 + $0xb8] sm:$0xf] }
0x19bd   :  { %1468 = vadd.xlane.f32.xlu1 %v1467_v57 }
0x19c1   :  { %2278 = vadd.xlane.f32.xlu1 %v2277_v16  ;;  %v4706_v16 = vmul.f32 %v4704_v7, %v6894_v4 }
0x19c3   :  { %v4707_v7 = vadd.f32 %v4706_v16, %v4698_v27 }
0x19c5   :  { %1473 = vadd.xlane.f32.xlu1 %v1472_v20 }
0x19c9   :  { %3097 = vadd.xlane.f32.xlu1 %v3096_v55  ;;  %v4130_v55 = vpop.permute.xlu0 %4129 }
0x19cd   :  { %3921 = vadd.xlane.f32.xlu1 %v3920_v31 }
0x19d1   :  { %3102 = vadd.xlane.f32.xlu1 %v3101_v5 }
0x19f1   :  { %v4586_v42 = vpop.xlane.xlu1 %4585 }
0x19f2   :  { %v4617_v11 = vmul.f32 %v4930_v38, %v4586_v42  ;;  %v4715_v38 = vmul.f32 %v4713_v48, %v7219_v22 }
0x19f4   :  { %v4625_v6 = vsel %vm532_vm4, %v4617_v11, 0.0 }
0x19f5   :  { %v4589_v36 = vpop.xlane.xlu1 %4588  ;;  %v4626_v46 = vrot.slane %v4625_v6, 4 }
0x19f6   :  { %v4618_v2 = vmul.f32 %v4931_v45, %v4589_v36  ;;  %v4937_v45 = vld [vmem:[%s7600_s2 + $0xbc] sm:$0xf] }
0x19f7   :  { %v4627_v50 = vadd.f32 %v4626_v46, %v4625_v6 }
0x19f8   :  { %v4632_v53 = vsel %vm532_vm4, %v4618_v2, 0.0 }
0x19f9   :  { %v4633_v10 = vrot.slane %v4632_v53, 4  ;;  %v4592_v32 = vpop.xlane.xlu1 %4591  ;;  %v4628_v23 = vrot.slane %v4627_v50, 2 }
0x19fa   :  { %v4619_v24 = vmul.f32 %v4932_v30, %v4592_v32 }
0x19fb   :  { %v4634_v35 = vadd.f32 %v4633_v10, %v4632_v53  ;;  %v4629_v31 = vadd.f32 %v4628_v23, %v4627_v50  ;;  %v4142_v10 = vpop.permute.xlu0 %4141 }
0x19fc   :  { %v4639_v12 = vsel %vm532_vm4, %v4619_v24, 0.0 }
0x19fd   :  { %v4640_v15 = vrot.slane %v4639_v12, 4  ;;  %v4598_v0 = vpop.xlane.xlu1 %4597  ;;  %v4635_v34 = vrot.slane %v4634_v35, 2  ;;  %v4630_v32 = vrot.slane %v4629_v31, 1 }
0x19fe   :  { %v4621_v44 = vmul.f32 %v4934_v18, %v4598_v0  ;;  %v4716_v0 = vadd.f32 %v4715_v38, %v4707_v7 }
0x19ff   :  { %v4641_v17 = vadd.f32 %v4640_v15, %v4639_v12  ;;  %v4636_v40 = vadd.f32 %v4635_v34, %v4634_v35  ;;  %v4132_v12 = vmul.f32 %v4130_v55, %v7317_v14 }
0x1a00   :  { %v4653_v13 = vsel %vm532_vm4, %v4621_v44, 0.0  ;;  %v5597_v44 = vld [vmem:[%s7605_s7] ss:$0 sm:$0xff] }
0x1a01   :  { %v4654_v43 = vrot.slane %v4653_v13, 4  ;;  %v4595_v3 = vpop.xlane.xlu1 %4594  ;;  %v4642_v49 = vrot.slane %v4641_v17, 2  ;;  %v4637_v26 = vrot.slane %v4636_v40, 1 }
0x1a02   :  { %v4620_v54 = vmul.f32 %v4933_v33, %v4595_v3  ;;  %v4631_v3 = vadd.f32 %v4630_v32, %v4629_v31 }
0x1a03   :  { %v4655_v19 = vadd.f32 %v4654_v43, %v4653_v13  ;;  %v4643_v37 = vadd.f32 %v4642_v49, %v4641_v17  ;;  %v4638_v2 = vadd.f32 %v4637_v26, %v4636_v40  ;;  %v4144_v43 = vsel %vm46_vm13, %v4132_v12, %v4142_v10 }
0x1a04   :  { %v4646_v28 = vsel %vm532_vm4, %v4620_v54, 0.0 }
0x1a05   :  { %v4647_v60 = vrot.slane %v4646_v28, 4  ;;  %v4601_v41 = vpop.xlane.xlu1 %4600  ;;  %v4656_v59 = vrot.slane %v4655_v19, 2  ;;  %v4644_v21 = vrot.slane %v4643_v37, 1  ;;  %v4727_v17 = vmul.f32 %v5597_v44, %v4638_v2 }
0x1a06   :  { %v4622_v8 = vmul.f32 %v4935_v63, %v4601_v41 }
0x1a07   :  { %v4648_v9 = vadd.f32 %v4647_v60, %v4646_v28  ;;  %v4657_v36 = vadd.f32 %v4656_v59, %v4655_v19  ;;  %v4645_v24 = vadd.f32 %v4644_v21, %v4643_v37  ;;  %v4742_v41 = vrot.slane %v4727_v17, 7 }
0x1a08   :  { %v4660_v57 = vsel %vm532_vm4, %v4622_v8, 0.0  ;;  %v4726_v8 = vmul.f32 %v5597_v44, %v4631_v3  ;;  %v5600_v3 = vld [vmem:[%s7598_s0 + $0x10] sm:$0xff] }
0x1a09   :  { %v4649_v20 = vrot.slane %v4648_v9, 2  ;;  %v4604_v62 = vpop.xlane.xlu1 %4603  ;;  %v4661_v5 = vrot.slane %v4660_v57, 4  ;;  %v4658_v22 = vrot.slane %v4657_v36, 1  ;;  %v4728_v50 = vmul.f32 %v5597_v44, %v4645_v24 }
0x1a0a   :  { %v4623_v52 = vmul.f32 %v4936_v58, %v4604_v62  ;;  %v4743_v62 = vsel %vm612_vm5, %v4742_v41, %v4726_v8 }
0x1a0b   :  { %v4650_v42 = vadd.f32 %v4649_v20, %v4648_v9  ;;  %v4662_v25 = vadd.f32 %v4661_v5, %v4660_v57  ;;  %v4659_v28 = vadd.f32 %v4658_v22, %v4657_v36  ;;  %v4744_v61 = vrot.slane %v4728_v50, 6 }
0x1a0c   :  { %v4667_v4 = vsel %vm532_vm4, %v4623_v52, 0.0  ;;  %v4765_v20 = vmul.f32 %v7466_v39, %v7317_v14 }
0x1a0d   :  { %v4651_v11 = vrot.slane %v4650_v42, 1  ;;  %v4668_v30 = vrot.slane %v4667_v4, 4  ;;  %v4607_v53 = vpop.xlane.xlu1 %4606  ;;  %v4663_v6 = vrot.slane %v4662_v25, 2  ;;  %v4730_v16 = vmul.f32 %v5597_v44, %v4659_v28 }
0x1a0e   :  { %v4624_v18 = vmul.f32 %v4937_v45, %v4607_v53  ;;  %v4745_v21 = vsel %vm615_vm6, %v4744_v61, %v4743_v62  ;;  %v647_v53 = vpop.xlane.xlu0 %646 }
0x1a0f   :  { %v4652_v35 = vadd.f32 %v4651_v11, %v4650_v42  ;;  %v4669_v15 = vadd.f32 %v4668_v30, %v4667_v4  ;;  %v4664_v48 = vadd.f32 %v4663_v6, %v4662_v25  ;;  %v4748_v27 = vrot.slane %v4730_v16, 4 }
0x1a10   :  { %v4674_v46 = vsel %vm532_vm4, %v4624_v18, 0.0  ;;  %v4766_v42 = vsel %vm46_vm13, %v4765_v20, 0.0  ;;  %v3928_v11 = vmul.f32 %v7466_v39, %v7020_v56  ;;  %vm4804_vm4 = vcmask 48128  }
0x1a11   :  { %v4670_v33 = vrot.slane %v4669_v15, 2  ;;  %v4675_v13 = vrot.slane %v4674_v46, 4  ;;  %v4722_v34 = vpop.permute.xlu1 %4721  ;;  %v4665_v49 = vrot.slane %v4664_v48, 1  ;;  %v4729_v63 = vmul.f32 %v5597_v44, %v4652_v35 }
0x1a12   :  { %v4724_v54 = vmul.f32 %v4722_v34, %v4144_v43  ;;  %v3929_v30 = vsel %vm46_vm13, %v3928_v11, 0.0  ;;  %v1465_v10 = vpop.xlane.xlu0 %1464 }
0x1a13   :  { %v4671_v51 = vadd.f32 %v4670_v33, %v4669_v15  ;;  %v4676_v19 = vadd.f32 %v4675_v13, %v4674_v46  ;;  %v4666_v40 = vadd.f32 %v4665_v49, %v4664_v48  ;;  %v4746_v58 = vrot.slane %v4729_v63, 5  ;;  %v5598_v15 = vld [vmem:[%s7598_s0] sm:$0xff]  ;;  %v5599_v13 = vld [vmem:[%s7598_s0 + $0x8] sm:$0xff] }
0x1a14   :  { %v4725_v60 = vadd.f32 %v4724_v54, %v4716_v0 }
0x1a15   :  { %v4672_v23 = vrot.slane %v4671_v51, 1  ;;  %v4677_v37 = vrot.slane %v4676_v19, 2  ;;  %v4731_v59 = vmul.f32 %v5597_v44, %v4666_v40 }
0x1a16   :  { %v4760_v9 = vmul.f32 %v7445_v47, %v4725_v60  ;;  %v4747_v47 = vsel %vm618_vm7, %v4746_v58, %v4745_v21  ;;  %v2275_v32 = vpop.xlane.xlu0 %2274  ;;  %v5602_v58 = vld [vmem:[%s7598_s0 + $0x28] sm:$0xff] }
0x1a17   :  { %v4673_v57 = vadd.f32 %v4672_v23, %v4671_v51  ;;  %v4678_v1 = vadd.f32 %v4677_v37, %v4676_v19  ;;  %v4750_v5 = vrot.slane %v4731_v59, 3  ;;  %v4749_v36 = vsel %vm621_vm8, %v4748_v27, %v4747_v47  ;;  %v5601_v19 = vld [vmem:[%s7598_s0 + $0x18] sm:$0xff]  ;;  %s5603_s0 = scalar_lea.vmem %s4813_s25, 128 }
0x1a18   :  { %v4761_v26 = vsel %vm644_vm14, %v4760_v9, 0.0  ;;  %p5604_p0 = scmp.ne.s32.totalorder %s4813_s25, %s5603_s0  ;;  %p5609_p2 = scmp.lt.s32.totalorder %s5603_s0, %s5603_s0 }
0x1a19   :  { %v4732_v55 = vmul.f32 %v5597_v44, %v4673_v57  ;;  %v4679_v31 = vrot.slane %v4678_v1, 1  ;;  %4762 = vadd.xlane.f32.xlu1 %v4761_v26  ;;  %v4751_v14 = vsel %vm624_vm9, %v4750_v5, %v4749_v36 }
0x1a1a   :  { %v658_v18 = vpop.xlane.xlu0 %657  ;;  %p5610_p3 = por %p5609_p2, %p5608_p1 }
0x1a1b   :  { %v4680_v52 = vadd.f32 %v4679_v31, %v4678_v1  ;;  %v4752_v45 = vrot.slane %v4732_v55, 2 }
0x1a1c   :  { %p5611_p4 = pnand %p5610_p3, %p5604_p0 }
0x1a1d   :  { %4767 = vadd.xlane.f32.xlu1 %v4766_v42  ;;  %v4733_v38 = vmul.f32 %v5597_v44, %v4680_v52  ;;  %v4753_v4 = vsel %vm627_vm10, %v4752_v45, %v4751_v14 }
0x1a1e   :  { %v3094_v56 = vpop.xlane.xlu0 %3093 }
0x1a1f   :  { %v4754_v25 = vrot.slane %v4733_v38, 1 }
0x1a21   :  { %v4755_v7 = vsel %vm630_vm11, %v4754_v25, %v4753_v4 }
0x1a22   :  { %v4757_v2 = vsel %vm633_vm12, %v4755_v7, 0.0  ;;  %v2284_v17 = vpop.xlane.xlu0 %2283 }
0x1a23   :  { %4758 = vadd.xlane.f32.xlu0 %v4757_v2 }
0x1a26   :  { %v3926_v40 = vpop.xlane.xlu0 %3925 }
0x1a27   :  { %3930 = vadd.xlane.f32.xlu0 %v3929_v30 }
0x1a42   :  { %v636_v24 = vpop.xlane.xlu1 %635 }
0x1a43   :  { %v648_v6 = vadd.f32 %v647_v53, %v636_v24 }
0x1a45   :  { %v659_v12 = vadd.f32 %v658_v18, %v648_v6 }
0x1a46   :  { %v1469_v35 = vpop.xlane.xlu1 %1468 }
0x1a47   :  { %v660_v0 = vadd.f32 %v5598_v15, %v659_v12  ;;  %v1470_v22 = vadd.f32 %v1469_v35, %v1465_v10 }
0x1a49   :  { %4772 = vrot.lane.b32.xlu0 %v660_v0, %s5634_s6 }
0x1a4a   :  { %v2279_v39 = vpop.xlane.xlu1 %2278 }
0x1a4b   :  { %v2280_v48 = vadd.f32 %v2279_v39, %v2275_v32 }
0x1a4d   :  { %v2285_v33 = vadd.f32 %v2284_v17, %v2280_v48 }
0x1a4e   :  { %v1474_v46 = vpop.xlane.xlu1 %1473 }
0x1a4f   :  { %v1475_v44 = vadd.f32 %v1474_v46, %v1470_v22  ;;  %v2286_v50 = vadd.f32 %v5600_v3, %v2285_v33 }
0x1a51   :  { %v1476_v34 = vadd.f32 %v5599_v13, %v1475_v44 }
0x1a52   :  { %v3098_v43 = vpop.xlane.xlu1 %3097 }
0x1a53   :  { %4776 = vrot.lane.b32.xlu1 %v1476_v34, %s5635_s8  ;;  %v3099_v54 = vadd.f32 %v3098_v43, %v3094_v56 }
0x1a56   :  { %v3922_v49 = vpop.xlane.xlu1 %3921 }
0x1a57   :  { %4780 = vrot.lane.b32.xlu1 %v2286_v50, %s5636_s18  ;;  %v3927_v8 = vadd.f32 %v3926_v40, %v3922_v49 }
0x1a5a   :  { %v3103_v63 = vpop.xlane.xlu1 %3102 }
0x1a5b   :  { %v3104_v51 = vadd.f32 %v3103_v63, %v3099_v54 }
0x1a5d   :  { %v3105_v28 = vadd.f32 %v5601_v19, %v3104_v51 }
0x1a5f   :  { %4784 = vrot.lane.b32.xlu0 %v3105_v28, %s5637_s3 }
0x1aa2   :  { %v4763_v60 = vpop.xlane.xlu1 %4762 }
0x1aa6   :  { %v4768_v37 = vpop.xlane.xlu1 %4767 }
0x1aac   :  { %v4759_v41 = vpop.xlane.xlu0 %4758 }
0x1aad   :  { %v4764_v23 = vadd.f32 %v4763_v60, %v4759_v41 }
0x1aaf   :  { %v4769_v61 = vadd.f32 %v4768_v37, %v4764_v23 }
0x1ab0   :  { %v3931_v9 = vpop.xlane.xlu0 %3930 }
0x1ab1   :  { %v4770_v59 = vadd.f32 %v5602_v58, %v4769_v61  ;;  %v3932_v57 = vadd.f32 %v3931_v9, %v3927_v8 }
0x1ab3   :  { %v3933_v1 = vadd.f32 %v7389_v29, %v3932_v57  ;;  %4792 = vrot.lane.b32.xlu0 %v4770_v59, %s5638_s4 }
0x1ab5   :  { %4788 = vrot.lane.b32.xlu1 %v3933_v1, %s5639_s23 }
0x1abb   :  { %v4773_v26 = vpop.permute.xlu0 %4772 }
0x1ac5   :  { %v4777_v16 = vpop.permute.xlu1 %4776 }
0x1ac6   :  { %v4795_v55 = vsel %vm308_vm2, %v4773_v26, %v4777_v16 }
0x1ac9   :  { %v4781_v20 = vpop.permute.xlu1 %4780 }
0x1aca   :  { %v4797_v31 = vsel %vm4796_vm15, %v4795_v55, %v4781_v20 }
0x1ad1   :  { %v4785_v62 = vpop.permute.xlu0 %4784 }
0x1ad2   :  { %v4799_v21 = vsel %vm4798_vm0, %v4797_v31, %v4785_v62 }
0x1b25   :  { %v4793_v29 = vpop.permute.xlu0 %4792 }
0x1b27   :  { %v4789_v5 = vpop.permute.xlu1 %4788 }
0x1b28   :  { %v4801_v52 = vsel %vm4800_vm1, %v4799_v21, %v4789_v5 }
0x1b29   :  { %v4803_v47 = vsel %vm4802_vm3, %v4801_v52, %v4793_v29 }
0x1b2a   :  { %4805 = vst.msk [vmem:[#allocation2] sm:$0xff] %vm4804_vm4, %v4803_v47 }
0x1b2b   :  { %5614 = shalt.err (!%p5611_p4)
}
0x1b2c   :  { %4815 = dma.vmem_to_hbm [thread:$0]  %s4813_s25, 128, %s7609_s11, [#allocation3]  }
0x1b2d   :  { %5623 = dma.done.wait [#allocation3], 128  }
0x1b2e   :  { %5624 = vsyncadd [#allocation3], 4294967168 }
0x1b2f   :  { %4819 = vsyncpa [#allocation3], 1 }

</bundles_post_ra>
